<compile_context>
chip_gen: v6e
topology: v6e:2x2x1
jax: 0.10.0
libtpu: 0.0.40
codegen_flags: <defaults>
</compile_context>

<pallas_src>
import functools

import jax
import jax.numpy as jnp
from jax import lax
from jax.experimental import pallas as pl
from jax.experimental.pallas import tpu as pltpu


def _resnet_block_kernel(x_ref, w1_ref, s1_ref, t1_ref, w2_ref, s2_ref, t2_ref,
                         o_ref, pad_ref, col_ref, *, ksize, use_skip):
    """Fused ResNet block for one batch element.

    x_ref  : (1, H, W, C)        input, NHWC
    w*_ref : (k*k*C, C)          im2col conv weights (HWIO flattened)
    s*_ref : (1, C)              folded scale  (gamma/sqrt(var+eps), or 1)
    t*_ref : (1, C)              folded shift  (bias folded in)
    o_ref  : (1, H, W, C)        output
    pad_ref: (H+2p, W+2p, C) f32 VMEM scratch, zero-padded activation
    col_ref: (H, W, k*k*C)   f32 VMEM scratch, im2col patches
    """
    H, W, C = o_ref.shape[1], o_ref.shape[2], o_ref.shape[3]
    p = (ksize - 1) // 2

    def conv_affine(w_ref, s_ref, t_ref):
        # im2col: gather the k*k taps, then one MXU matmul (contraction k*k*C)
        # instead of k*k tiny Cin=4 matmuls.
        for idx in range(ksize * ksize):
            kh, kw = idx // ksize, idx % ksize
            col_ref[:, :, idx * C:(idx + 1) * C] = pad_ref[kh:kh + H, kw:kw + W, :]
        acc = lax.dot_general(
            col_ref[...], w_ref[...],
            dimension_numbers=(((2,), (0,)), ((), ())),
            preferred_element_type=jnp.float32)          # (H, W, C)
        # conv bias is folded into t in the wrapper; BN is the same affine form.
        return acc * s_ref[...] + t_ref[...]

    x = x_ref[0].astype(jnp.float32)                     # (H, W, C)

    # Zero-padded activation lives only in VMEM (no HBM jnp.pad round trip).
    pad_ref[...] = jnp.zeros_like(pad_ref)
    pad_ref[p:p + H, p:p + W, :] = x

    # y1 = relu(bn1(conv1(x)))  -- kept entirely in VMEM, reusing pad_ref
    # (its halo is still zero after the interior overwrite).
    y1 = jnp.maximum(conv_affine(w1_ref, s1_ref, t1_ref), 0.0)
    pad_ref[p:p + H, p:p + W, :] = y1

    # y2 = relu(bn2(conv2(y1)) [+ x])
    y2 = conv_affine(w2_ref, s2_ref, t2_ref)
    if use_skip:
        y2 = y2 + x                                      # residual from resident x block
    o_ref[0] = jnp.maximum(y2, 0.0).astype(o_ref.dtype)


def resnet_block_forward(x_nchw, params, *, batch_normalization, skip_connections,
                         eps=1e-5):
    """ResNetBlock.forward. x_nchw: (N, C, H, W) like PyTorch."""
    N, C, H, W = x_nchw.shape
    k = params["w1"].shape[2]
    assert k % 2 == 1, "PyTorch-'same' padding (k-1)//2 assumes an odd kernel size"
    p = (k - 1) // 2
    Hp, Wp = H + 2 * p, W + 2 * p

    x = jnp.transpose(x_nchw, (0, 2, 3, 1))              # NCHW -> NHWC

    def fold(w_oihw, bias, bn):
        # OIHW -> HWIO -> (k*k*Cin, Cout), matching the kernel's im2col order.
        w = jnp.transpose(w_oihw, (2, 3, 1, 0)).reshape(k * k * C, C)
        if batch_normalization:
            gamma, beta, mean, var = bn
            s = gamma / jnp.sqrt(var + eps)
            t = beta + (bias - mean) * s                 # conv bias folded into shift
        else:
            s = jnp.ones((C,), jnp.float32)
            t = bias
        return w, s.reshape(1, C).astype(jnp.float32), t.reshape(1, C).astype(jnp.float32)

    w1, s1, t1 = fold(params["w1"], params["b1"], params["bn1"])
    w2, s2, t2 = fold(params["w2"], params["b2"], params["bn2"])

    kern = functools.partial(_resnet_block_kernel, ksize=k, use_skip=skip_connections)
    y = pl.pallas_call(
        kern,
        out_shape=jax.ShapeDtypeStruct((N, H, W, C), x.dtype),
        grid_spec=pltpu.PrefetchScalarGridSpec(
            num_scalar_prefetch=0,
            grid=(N,),
            in_specs=[
                pl.BlockSpec((1, H, W, C), lambda n: (n, 0, 0, 0)),
                pl.BlockSpec((k * k * C, C), lambda n: (0, 0)),   # weights stay resident
                pl.BlockSpec((1, C), lambda n: (0, 0)),
                pl.BlockSpec((1, C), lambda n: (0, 0)),
                pl.BlockSpec((k * k * C, C), lambda n: (0, 0)),
                pl.BlockSpec((1, C), lambda n: (0, 0)),
                pl.BlockSpec((1, C), lambda n: (0, 0)),
            ],
            out_specs=pl.BlockSpec((1, H, W, C), lambda n: (n, 0, 0, 0)),
            scratch_shapes=[
                pltpu.VMEM((Hp, Wp, C), jnp.float32),           # padded activation
                pltpu.VMEM((H, W, k * k * C), jnp.float32),     # im2col patches
            ],
        ),
        compiler_params=pltpu.CompilerParams(
            dimension_semantics=("parallel",),
            vmem_limit_bytes=32 * 1024 * 1024),
    )(x, w1, s1, t1, w2, s2, t2)

    return jnp.transpose(y, (0, 3, 1, 2))                # NHWC -> NCHW


def ref_forward(x, params, use_bn, use_skip):
    """Pure-JAX reference mimicking the PyTorch module (eval-mode BN)."""
    def conv(z, w, b):
        out = lax.conv_general_dilated(
            z, w, window_strides=(1, 1), padding="SAME",
            dimension_numbers=("NCHW", "OIHW", "NCHW"))
        return out + b[None, :, None, None]

    def bn(z, p, eps=1e-5):
        g, bta, m, v = p
        s = g / jnp.sqrt(v + eps)
        return (z - m[None, :, None, None]) * s[None, :, None, None] + bta[None, :, None, None]

    y = conv(x, params["w1"], params["b1"])
    if use_bn:
        y = bn(y, params["bn1"])
    y = jax.nn.relu(y)
    y = conv(y, params["w2"], params["b2"])
    if use_bn:
        y = bn(y, params["bn2"])
    if use_skip:
        y = y + x
    return jax.nn.relu(y)


if __name__ == "__main__":
    N, C, H, W, K = 2, 4, 16, 16, 3

    key = jax.random.PRNGKey(0)
    keys = jax.random.split(key, 9)
    bound = 1.0 / (C * K * K) ** 0.5            # PyTorch Conv2d default init bound

    w1 = jax.random.uniform(keys[0], (C, C, K, K), jnp.float32, -bound, bound)
    b1 = jax.random.uniform(keys[1], (C,), jnp.float32, -bound, bound)
    w2 = jax.random.uniform(keys[2], (C, C, K, K), jnp.float32, -bound, bound)
    b2 = jax.random.uniform(keys[3], (C,), jnp.float32, -bound, bound)

    g1 = 1.0 + 0.1 * jax.random.normal(keys[4], (C,), jnp.float32)
    be1 = 0.1 * jax.random.normal(keys[5], (C,), jnp.float32)
    g2 = 1.0 + 0.1 * jax.random.normal(keys[6], (C,), jnp.float32)
    be2 = 0.1 * jax.random.normal(keys[7], (C,), jnp.float32)
    rm1, rv1 = jnp.zeros((C,), jnp.float32), jnp.ones((C,), jnp.float32)
    rm2, rv2 = jnp.zeros((C,), jnp.float32), jnp.ones((C,), jnp.float32)

    params = dict(w1=w1, b1=b1, w2=w2, b2=b2,
                  bn1=(g1, be1, rm1, rv1), bn2=(g2, be2, rm2, rv2))

    x = jax.random.normal(keys[8], (N, C, H, W), jnp.float32)

    # BN + skip path (module defaults under test)
    out = resnet_block_forward(x, params,
                               batch_normalization=True, skip_connections=True)
    out = jax.block_until_ready(out)
    ref = ref_forward(x, params, True, True)
    err1 = float(jnp.max(jnp.abs(out - ref)))

    # plain conv+bias path (exercises the no-BN / no-skip epilogue)
    out2 = resnet_block_forward(x, params,
                                batch_normalization=False, skip_connections=False)
    out2 = jax.block_until_ready(out2)
    ref2 = ref_forward(x, params, False, False)
    err2 = float(jnp.max(jnp.abs(out2 - ref2)))

    assert out.shape == x.shape
    if err1 < 1e-4 and err2 < 1e-4:
        print("KERNEL_OK")
    else:
        print("MISMATCH", err1, err2)
</pallas_src>

<mosaic_0001>
module attributes {stable_mosaic.version = 11 : i64} {
  func.func @_resnet_block_kernel(%arg0: i32, %arg1: memref<1x16x16x4xf32, #tpu.memory_space<vmem>>, %arg2: memref<36x4xf32, #tpu.memory_space<vmem>>, %arg3: memref<1x4xf32, #tpu.memory_space<vmem>>, %arg4: memref<1x4xf32, #tpu.memory_space<vmem>>, %arg5: memref<36x4xf32, #tpu.memory_space<vmem>>, %arg6: memref<1x4xf32, #tpu.memory_space<vmem>>, %arg7: memref<1x4xf32, #tpu.memory_space<vmem>>, %arg8: memref<1x16x16x4xf32, #tpu.memory_space<vmem>>, %arg9: memref<18x18x4xf32, #tpu.memory_space<vmem>>, %arg10: memref<16x16x36xf32, #tpu.memory_space<vmem>>) attributes {dimension_semantics = [#tpu.dimension_semantics<parallel>], iteration_bounds = array<i64: 2>, scalar_prefetch = 0 : i64, scratch_operands = 2 : i64, tpu.core_type = #tpu.core_type<tc>, window_params = [{transform_indices = @transform_0, window_bounds = array<i64: 1, 16, 16, 4>}, {pipeline_mode = #tpu.pipeline_mode<synchronous>, transform_indices = @transform_1, window_bounds = array<i64: 36, 4>}, {pipeline_mode = #tpu.pipeline_mode<synchronous>, transform_indices = @transform_2, window_bounds = array<i64: 1, 4>}, {pipeline_mode = #tpu.pipeline_mode<synchronous>, transform_indices = @transform_3, window_bounds = array<i64: 1, 4>}, {pipeline_mode = #tpu.pipeline_mode<synchronous>, transform_indices = @transform_4, window_bounds = array<i64: 36, 4>}, {pipeline_mode = #tpu.pipeline_mode<synchronous>, transform_indices = @transform_5, window_bounds = array<i64: 1, 4>}, {pipeline_mode = #tpu.pipeline_mode<synchronous>, transform_indices = @transform_6, window_bounds = array<i64: 1, 4>}, {transform_indices = @transform_7, window_bounds = array<i64: 1, 16, 16, 4>}]} {
    %c0 = arith.constant 0 : index
    %c0_0 = arith.constant 0 : index
    %c0_1 = arith.constant 0 : index
    %c0_2 = arith.constant 0 : index
    %0 = vector.load %arg1[%c0, %c0_0, %c0_1, %c0_2] : memref<1x16x16x4xf32, #tpu.memory_space<vmem>>, vector<1x16x16x4xf32>
    %1 = vector.shape_cast %0 : vector<1x16x16x4xf32> to vector<16x16x4xf32>
    %cst = arith.constant 0.000000e+00 : f32
    %2 = vector.broadcast %cst : f32 to vector<18x18x4xf32>
    %c0_3 = arith.constant 0 : index
    %c0_4 = arith.constant 0 : index
    %c0_5 = arith.constant 0 : index
    %3 = vector.load %arg9[%c0_3, %c0_4, %c0_5] : memref<18x18x4xf32, #tpu.memory_space<vmem>>, vector<18x18x4xf32>
    tpu.vector_store %arg9[%c0_3, %c0_4, %c0_5], %2 {strides = array<i32>} : memref<18x18x4xf32, #tpu.memory_space<vmem>>, vector<18x18x4xf32>,
    %c1 = arith.constant 1 : index
    %c1_6 = arith.constant 1 : index
    %c0_7 = arith.constant 0 : index
    %4 = vector.load %arg9[%c1, %c1_6, %c0_7] : memref<18x18x4xf32, #tpu.memory_space<vmem>>, vector<16x16x4xf32>
    tpu.vector_store %arg9[%c1, %c1_6, %c0_7], %1 {strides = array<i32>} : memref<18x18x4xf32, #tpu.memory_space<vmem>>, vector<16x16x4xf32>,
    %c0_8 = arith.constant 0 : index
    %c0_9 = arith.constant 0 : index
    %c0_10 = arith.constant 0 : index
    %5 = vector.load %arg9[%c0_8, %c0_9, %c0_10] : memref<18x18x4xf32, #tpu.memory_space<vmem>>, vector<16x16x4xf32>
    %c0_11 = arith.constant 0 : index
    %c0_12 = arith.constant 0 : index
    %c0_13 = arith.constant 0 : index
    %6 = vector.load %arg10[%c0_11, %c0_12, %c0_13] : memref<16x16x36xf32, #tpu.memory_space<vmem>>, vector<16x16x4xf32>
    tpu.vector_store %arg10[%c0_11, %c0_12, %c0_13], %5 {strides = array<i32>} : memref<16x16x36xf32, #tpu.memory_space<vmem>>, vector<16x16x4xf32>,
    %c0_14 = arith.constant 0 : index
    %c1_15 = arith.constant 1 : index
    %c0_16 = arith.constant 0 : index
    %7 = vector.load %arg9[%c0_14, %c1_15, %c0_16] : memref<18x18x4xf32, #tpu.memory_space<vmem>>, vector<16x16x4xf32>
    %c0_17 = arith.constant 0 : index
    %c0_18 = arith.constant 0 : index
    %c4 = arith.constant 4 : index
    %8 = vector.load %arg10[%c0_17, %c0_18, %c4] : memref<16x16x36xf32, #tpu.memory_space<vmem>>, vector<16x16x4xf32>
    tpu.vector_store %arg10[%c0_17, %c0_18, %c4], %7 {strides = array<i32>} : memref<16x16x36xf32, #tpu.memory_space<vmem>>, vector<16x16x4xf32>,
    %c0_19 = arith.constant 0 : index
    %c2 = arith.constant 2 : index
    %c0_20 = arith.constant 0 : index
    %9 = vector.load %arg9[%c0_19, %c2, %c0_20] : memref<18x18x4xf32, #tpu.memory_space<vmem>>, vector<16x16x4xf32>
    %c0_21 = arith.constant 0 : index
    %c0_22 = arith.constant 0 : index
    %c8 = arith.constant 8 : index
    %10 = vector.load %arg10[%c0_21, %c0_22, %c8] : memref<16x16x36xf32, #tpu.memory_space<vmem>>, vector<16x16x4xf32>
    tpu.vector_store %arg10[%c0_21, %c0_22, %c8], %9 {strides = array<i32>} : memref<16x16x36xf32, #tpu.memory_space<vmem>>, vector<16x16x4xf32>,
    %c1_23 = arith.constant 1 : index
    %c0_24 = arith.constant 0 : index
    %c0_25 = arith.constant 0 : index
    %11 = vector.load %arg9[%c1_23, %c0_24, %c0_25] : memref<18x18x4xf32, #tpu.memory_space<vmem>>, vector<16x16x4xf32>
    %c0_26 = arith.constant 0 : index
    %c0_27 = arith.constant 0 : index
    %c12 = arith.constant 12 : index
    %12 = vector.load %arg10[%c0_26, %c0_27, %c12] : memref<16x16x36xf32, #tpu.memory_space<vmem>>, vector<16x16x4xf32>
    tpu.vector_store %arg10[%c0_26, %c0_27, %c12], %11 {strides = array<i32>} : memref<16x16x36xf32, #tpu.memory_space<vmem>>, vector<16x16x4xf32>,
    %c1_28 = arith.constant 1 : index
    %c1_29 = arith.constant 1 : index
    %c0_30 = arith.constant 0 : index
    %13 = vector.load %arg9[%c1_28, %c1_29, %c0_30] : memref<18x18x4xf32, #tpu.memory_space<vmem>>, vector<16x16x4xf32>
    %c0_31 = arith.constant 0 : index
    %c0_32 = arith.constant 0 : index
    %c16 = arith.constant 16 : index
    %14 = vector.load %arg10[%c0_31, %c0_32, %c16] : memref<16x16x36xf32, #tpu.memory_space<vmem>>, vector<16x16x4xf32>
    tpu.vector_store %arg10[%c0_31, %c0_32, %c16], %13 {strides = array<i32>} : memref<16x16x36xf32, #tpu.memory_space<vmem>>, vector<16x16x4xf32>,
    %c1_33 = arith.constant 1 : index
    %c2_34 = arith.constant 2 : index
    %c0_35 = arith.constant 0 : index
    %15 = vector.load %arg9[%c1_33, %c2_34, %c0_35] : memref<18x18x4xf32, #tpu.memory_space<vmem>>, vector<16x16x4xf32>
    %c0_36 = arith.constant 0 : index
    %c0_37 = arith.constant 0 : index
    %c20 = arith.constant 20 : index
    %16 = vector.load %arg10[%c0_36, %c0_37, %c20] : memref<16x16x36xf32, #tpu.memory_space<vmem>>, vector<16x16x4xf32>
    tpu.vector_store %arg10[%c0_36, %c0_37, %c20], %15 {strides = array<i32>} : memref<16x16x36xf32, #tpu.memory_space<vmem>>, vector<16x16x4xf32>,
    %c2_38 = arith.constant 2 : index
    %c0_39 = arith.constant 0 : index
    %c0_40 = arith.constant 0 : index
    %17 = vector.load %arg9[%c2_38, %c0_39, %c0_40] : memref<18x18x4xf32, #tpu.memory_space<vmem>>, vector<16x16x4xf32>
    %c0_41 = arith.constant 0 : index
    %c0_42 = arith.constant 0 : index
    %c24 = arith.constant 24 : index
    %18 = vector.load %arg10[%c0_41, %c0_42, %c24] : memref<16x16x36xf32, #tpu.memory_space<vmem>>, vector<16x16x4xf32>
    tpu.vector_store %arg10[%c0_41, %c0_42, %c24], %17 {strides = array<i32>} : memref<16x16x36xf32, #tpu.memory_space<vmem>>, vector<16x16x4xf32>,
    %c2_43 = arith.constant 2 : index
    %c1_44 = arith.constant 1 : index
    %c0_45 = arith.constant 0 : index
    %19 = vector.load %arg9[%c2_43, %c1_44, %c0_45] : memref<18x18x4xf32, #tpu.memory_space<vmem>>, vector<16x16x4xf32>
    %c0_46 = arith.constant 0 : index
    %c0_47 = arith.constant 0 : index
    %c28 = arith.constant 28 : index
    %20 = vector.load %arg10[%c0_46, %c0_47, %c28] : memref<16x16x36xf32, #tpu.memory_space<vmem>>, vector<16x16x4xf32>
    tpu.vector_store %arg10[%c0_46, %c0_47, %c28], %19 {strides = array<i32>} : memref<16x16x36xf32, #tpu.memory_space<vmem>>, vector<16x16x4xf32>,
    %c2_48 = arith.constant 2 : index
    %c2_49 = arith.constant 2 : index
    %c0_50 = arith.constant 0 : index
    %21 = vector.load %arg9[%c2_48, %c2_49, %c0_50] : memref<18x18x4xf32, #tpu.memory_space<vmem>>, vector<16x16x4xf32>
    %c0_51 = arith.constant 0 : index
    %c0_52 = arith.constant 0 : index
    %c32 = arith.constant 32 : index
    %22 = vector.load %arg10[%c0_51, %c0_52, %c32] : memref<16x16x36xf32, #tpu.memory_space<vmem>>, vector<16x16x4xf32>
    tpu.vector_store %arg10[%c0_51, %c0_52, %c32], %21 {strides = array<i32>} : memref<16x16x36xf32, #tpu.memory_space<vmem>>, vector<16x16x4xf32>,
    %c0_53 = arith.constant 0 : index
    %c0_54 = arith.constant 0 : index
    %c0_55 = arith.constant 0 : index
    %23 = vector.load %arg10[%c0_53, %c0_54, %c0_55] : memref<16x16x36xf32, #tpu.memory_space<vmem>>, vector<16x16x36xf32>
    %c0_56 = arith.constant 0 : index
    %c0_57 = arith.constant 0 : index
    %24 = vector.load %arg2[%c0_56, %c0_57] : memref<36x4xf32, #tpu.memory_space<vmem>>, vector<36x4xf32>
    %cst_58 = arith.constant dense<0.000000e+00> : vector<16x16x4xf32>
    %25 = tpu.matmul %23, %24, %cst_58 {dimension_numbers = #tpu.dot_dimension_numbers<[2], [0], [0, 1], [1], [0, 0, 0, 1, 1, 1], [], []>} : vector<16x16x36xf32>, vector<36x4xf32>, vector<16x16x4xf32> -> vector<16x16x4xf32>
    %c0_59 = arith.constant 0 : index
    %c0_60 = arith.constant 0 : index
    %26 = vector.load %arg3[%c0_59, %c0_60] : memref<1x4xf32, #tpu.memory_space<vmem>>, vector<1x4xf32>
    %27 = vector.shape_cast %26 : vector<1x4xf32> to vector<1x1x4xf32>
    %28 = vector.broadcast %27 : vector<1x1x4xf32> to vector<16x16x4xf32>
    %29 = arith.mulf %25, %28 : vector<16x16x4xf32>
    %c0_61 = arith.constant 0 : index
    %c0_62 = arith.constant 0 : index
    %30 = vector.load %arg4[%c0_61, %c0_62] : memref<1x4xf32, #tpu.memory_space<vmem>>, vector<1x4xf32>
    %31 = vector.shape_cast %30 : vector<1x4xf32> to vector<1x1x4xf32>
    %32 = vector.broadcast %31 : vector<1x1x4xf32> to vector<16x16x4xf32>
    %33 = arith.addf %29, %32 : vector<16x16x4xf32>
    %cst_63 = arith.constant 0.000000e+00 : f32
    %34 = vector.broadcast %cst_63 : f32 to vector<16x16x4xf32>
    %35 = arith.maximumf %33, %34 : vector<16x16x4xf32>
    %c1_64 = arith.constant 1 : index
    %c1_65 = arith.constant 1 : index
    %c0_66 = arith.constant 0 : index
    %36 = vector.load %arg9[%c1_64, %c1_65, %c0_66] : memref<18x18x4xf32, #tpu.memory_space<vmem>>, vector<16x16x4xf32>
    tpu.vector_store %arg9[%c1_64, %c1_65, %c0_66], %35 {strides = array<i32>} : memref<18x18x4xf32, #tpu.memory_space<vmem>>, vector<16x16x4xf32>,
    %c0_67 = arith.constant 0 : index
    %c0_68 = arith.constant 0 : index
    %c0_69 = arith.constant 0 : index
    %37 = vector.load %arg9[%c0_67, %c0_68, %c0_69] : memref<18x18x4xf32, #tpu.memory_space<vmem>>, vector<16x16x4xf32>
    %c0_70 = arith.constant 0 : index
    %c0_71 = arith.constant 0 : index
    %c0_72 = arith.constant 0 : index
    %38 = vector.load %arg10[%c0_70, %c0_71, %c0_72] : memref<16x16x36xf32, #tpu.memory_space<vmem>>, vector<16x16x4xf32>
    tpu.vector_store %arg10[%c0_70, %c0_71, %c0_72], %37 {strides = array<i32>} : memref<16x16x36xf32, #tpu.memory_space<vmem>>, vector<16x16x4xf32>,
    %c0_73 = arith.constant 0 : index
    %c1_74 = arith.constant 1 : index
    %c0_75 = arith.constant 0 : index
    %39 = vector.load %arg9[%c0_73, %c1_74, %c0_75] : memref<18x18x4xf32, #tpu.memory_space<vmem>>, vector<16x16x4xf32>
    %c0_76 = arith.constant 0 : index
    %c0_77 = arith.constant 0 : index
    %c4_78 = arith.constant 4 : index
    %40 = vector.load %arg10[%c0_76, %c0_77, %c4_78] : memref<16x16x36xf32, #tpu.memory_space<vmem>>, vector<16x16x4xf32>
    tpu.vector_store %arg10[%c0_76, %c0_77, %c4_78], %39 {strides = array<i32>} : memref<16x16x36xf32, #tpu.memory_space<vmem>>, vector<16x16x4xf32>,
    %c0_79 = arith.constant 0 : index
    %c2_80 = arith.constant 2 : index
    %c0_81 = arith.constant 0 : index
    %41 = vector.load %arg9[%c0_79, %c2_80, %c0_81] : memref<18x18x4xf32, #tpu.memory_space<vmem>>, vector<16x16x4xf32>
    %c0_82 = arith.constant 0 : index
    %c0_83 = arith.constant 0 : index
    %c8_84 = arith.constant 8 : index
    %42 = vector.load %arg10[%c0_82, %c0_83, %c8_84] : memref<16x16x36xf32, #tpu.memory_space<vmem>>, vector<16x16x4xf32>
    tpu.vector_store %arg10[%c0_82, %c0_83, %c8_84], %41 {strides = array<i32>} : memref<16x16x36xf32, #tpu.memory_space<vmem>>, vector<16x16x4xf32>,
    %c1_85 = arith.constant 1 : index
    %c0_86 = arith.constant 0 : index
    %c0_87 = arith.constant 0 : index
    %43 = vector.load %arg9[%c1_85, %c0_86, %c0_87] : memref<18x18x4xf32, #tpu.memory_space<vmem>>, vector<16x16x4xf32>
    %c0_88 = arith.constant 0 : index
    %c0_89 = arith.constant 0 : index
    %c12_90 = arith.constant 12 : index
    %44 = vector.load %arg10[%c0_88, %c0_89, %c12_90] : memref<16x16x36xf32, #tpu.memory_space<vmem>>, vector<16x16x4xf32>
    tpu.vector_store %arg10[%c0_88, %c0_89, %c12_90], %43 {strides = array<i32>} : memref<16x16x36xf32, #tpu.memory_space<vmem>>, vector<16x16x4xf32>,
    %c1_91 = arith.constant 1 : index
    %c1_92 = arith.constant 1 : index
    %c0_93 = arith.constant 0 : index
    %45 = vector.load %arg9[%c1_91, %c1_92, %c0_93] : memref<18x18x4xf32, #tpu.memory_space<vmem>>, vector<16x16x4xf32>
    %c0_94 = arith.constant 0 : index
    %c0_95 = arith.constant 0 : index
    %c16_96 = arith.constant 16 : index
    %46 = vector.load %arg10[%c0_94, %c0_95, %c16_96] : memref<16x16x36xf32, #tpu.memory_space<vmem>>, vector<16x16x4xf32>
    tpu.vector_store %arg10[%c0_94, %c0_95, %c16_96], %45 {strides = array<i32>} : memref<16x16x36xf32, #tpu.memory_space<vmem>>, vector<16x16x4xf32>,
    %c1_97 = arith.constant 1 : index
    %c2_98 = arith.constant 2 : index
    %c0_99 = arith.constant 0 : index
    %47 = vector.load %arg9[%c1_97, %c2_98, %c0_99] : memref<18x18x4xf32, #tpu.memory_space<vmem>>, vector<16x16x4xf32>
    %c0_100 = arith.constant 0 : index
    %c0_101 = arith.constant 0 : index
    %c20_102 = arith.constant 20 : index
    %48 = vector.load %arg10[%c0_100, %c0_101, %c20_102] : memref<16x16x36xf32, #tpu.memory_space<vmem>>, vector<16x16x4xf32>
    tpu.vector_store %arg10[%c0_100, %c0_101, %c20_102], %47 {strides = array<i32>} : memref<16x16x36xf32, #tpu.memory_space<vmem>>, vector<16x16x4xf32>,
    %c2_103 = arith.constant 2 : index
    %c0_104 = arith.constant 0 : index
    %c0_105 = arith.constant 0 : index
    %49 = vector.load %arg9[%c2_103, %c0_104, %c0_105] : memref<18x18x4xf32, #tpu.memory_space<vmem>>, vector<16x16x4xf32>
    %c0_106 = arith.constant 0 : index
    %c0_107 = arith.constant 0 : index
    %c24_108 = arith.constant 24 : index
    %50 = vector.load %arg10[%c0_106, %c0_107, %c24_108] : memref<16x16x36xf32, #tpu.memory_space<vmem>>, vector<16x16x4xf32>
    tpu.vector_store %arg10[%c0_106, %c0_107, %c24_108], %49 {strides = array<i32>} : memref<16x16x36xf32, #tpu.memory_space<vmem>>, vector<16x16x4xf32>,
    %c2_109 = arith.constant 2 : index
    %c1_110 = arith.constant 1 : index
    %c0_111 = arith.constant 0 : index
    %51 = vector.load %arg9[%c2_109, %c1_110, %c0_111] : memref<18x18x4xf32, #tpu.memory_space<vmem>>, vector<16x16x4xf32>
    %c0_112 = arith.constant 0 : index
    %c0_113 = arith.constant 0 : index
    %c28_114 = arith.constant 28 : index
    %52 = vector.load %arg10[%c0_112, %c0_113, %c28_114] : memref<16x16x36xf32, #tpu.memory_space<vmem>>, vector<16x16x4xf32>
    tpu.vector_store %arg10[%c0_112, %c0_113, %c28_114], %51 {strides = array<i32>} : memref<16x16x36xf32, #tpu.memory_space<vmem>>, vector<16x16x4xf32>,
    %c2_115 = arith.constant 2 : index
    %c2_116 = arith.constant 2 : index
    %c0_117 = arith.constant 0 : index
    %53 = vector.load %arg9[%c2_115, %c2_116, %c0_117] : memref<18x18x4xf32, #tpu.memory_space<vmem>>, vector<16x16x4xf32>
    %c0_118 = arith.constant 0 : index
    %c0_119 = arith.constant 0 : index
    %c32_120 = arith.constant 32 : index
    %54 = vector.load %arg10[%c0_118, %c0_119, %c32_120] : memref<16x16x36xf32, #tpu.memory_space<vmem>>, vector<16x16x4xf32>
    tpu.vector_store %arg10[%c0_118, %c0_119, %c32_120], %53 {strides = array<i32>} : memref<16x16x36xf32, #tpu.memory_space<vmem>>, vector<16x16x4xf32>,
    %c0_121 = arith.constant 0 : index
    %c0_122 = arith.constant 0 : index
    %c0_123 = arith.constant 0 : index
    %55 = vector.load %arg10[%c0_121, %c0_122, %c0_123] : memref<16x16x36xf32, #tpu.memory_space<vmem>>, vector<16x16x36xf32>
    %c0_124 = arith.constant 0 : index
    %c0_125 = arith.constant 0 : index
    %56 = vector.load %arg5[%c0_124, %c0_125] : memref<36x4xf32, #tpu.memory_space<vmem>>, vector<36x4xf32>
    %cst_126 = arith.constant dense<0.000000e+00> : vector<16x16x4xf32>
    %57 = tpu.matmul %55, %56, %cst_126 {dimension_numbers = #tpu.dot_dimension_numbers<[2], [0], [0, 1], [1], [0, 0, 0, 1, 1, 1], [], []>} : vector<16x16x36xf32>, vector<36x4xf32>, vector<16x16x4xf32> -> vector<16x16x4xf32>
    %c0_127 = arith.constant 0 : index
    %c0_128 = arith.constant 0 : index
    %58 = vector.load %arg6[%c0_127, %c0_128] : memref<1x4xf32, #tpu.memory_space<vmem>>, vector<1x4xf32>
    %59 = vector.shape_cast %58 : vector<1x4xf32> to vector<1x1x4xf32>
    %60 = vector.broadcast %59 : vector<1x1x4xf32> to vector<16x16x4xf32>
    %61 = arith.mulf %57, %60 : vector<16x16x4xf32>
    %c0_129 = arith.constant 0 : index
    %c0_130 = arith.constant 0 : index
    %62 = vector.load %arg7[%c0_129, %c0_130] : memref<1x4xf32, #tpu.memory_space<vmem>>, vector<1x4xf32>
    %63 = vector.shape_cast %62 : vector<1x4xf32> to vector<1x1x4xf32>
    %64 = vector.broadcast %63 : vector<1x1x4xf32> to vector<16x16x4xf32>
    %65 = arith.addf %61, %64 : vector<16x16x4xf32>
    %66 = arith.addf %65, %1 : vector<16x16x4xf32>
    %cst_131 = arith.constant 0.000000e+00 : f32
    %67 = vector.broadcast %cst_131 : f32 to vector<16x16x4xf32>
    %68 = arith.maximumf %66, %67 : vector<16x16x4xf32>
    %c0_132 = arith.constant 0 : index
    %c0_133 = arith.constant 0 : index
    %c0_134 = arith.constant 0 : index
    %c0_135 = arith.constant 0 : index
    %69 = vector.load %arg8[%c0_132, %c0_133, %c0_134, %c0_135] : memref<1x16x16x4xf32, #tpu.memory_space<vmem>>, vector<1x16x16x4xf32>
    %70 = vector.shape_cast %69 : vector<1x16x16x4xf32> to vector<16x16x4xf32>
    %71 = vector.shape_cast %68 : vector<16x16x4xf32> to vector<1x16x16x4xf32>
    tpu.vector_store %arg8[%c0_132, %c0_133, %c0_134, %c0_135], %71 {strides = array<i32>} : memref<1x16x16x4xf32, #tpu.memory_space<vmem>>, vector<1x16x16x4xf32>,
    return
  }
  func.func @transform_0(%arg0: i32) -> (i32, i32, i32, i32) {
    %c0_i32 = arith.constant 0 : i32
    %c0_i32_0 = arith.constant 0 : i32
    %c0_i32_1 = arith.constant 0 : i32
    %c0_i32_2 = arith.constant 0 : i32
    return %arg0, %c0_i32, %c0_i32_0, %c0_i32_1 : i32, i32, i32, i32
  }
  func.func @transform_1(%arg0: i32) -> (i32, i32) {
    %c0_i32 = arith.constant 0 : i32
    %c0_i32_0 = arith.constant 0 : i32
    %c0_i32_1 = arith.constant 0 : i32
    return %c0_i32, %c0_i32_0 : i32, i32
  }
  func.func @transform_2(%arg0: i32) -> (i32, i32) {
    %c0_i32 = arith.constant 0 : i32
    %c0_i32_0 = arith.constant 0 : i32
    %c0_i32_1 = arith.constant 0 : i32
    return %c0_i32, %c0_i32_0 : i32, i32
  }
  func.func @transform_3(%arg0: i32) -> (i32, i32) {
    %c0_i32 = arith.constant 0 : i32
    %c0_i32_0 = arith.constant 0 : i32
    %c0_i32_1 = arith.constant 0 : i32
    return %c0_i32, %c0_i32_0 : i32, i32
  }
  func.func @transform_4(%arg0: i32) -> (i32, i32) {
    %c0_i32 = arith.constant 0 : i32
    %c0_i32_0 = arith.constant 0 : i32
    %c0_i32_1 = arith.constant 0 : i32
    return %c0_i32, %c0_i32_0 : i32, i32
  }
  func.func @transform_5(%arg0: i32) -> (i32, i32) {
    %c0_i32 = arith.constant 0 : i32
    %c0_i32_0 = arith.constant 0 : i32
    %c0_i32_1 = arith.constant 0 : i32
    return %c0_i32, %c0_i32_0 : i32, i32
  }
  func.func @transform_6(%arg0: i32) -> (i32, i32) {
    %c0_i32 = arith.constant 0 : i32
    %c0_i32_0 = arith.constant 0 : i32
    %c0_i32_1 = arith.constant 0 : i32
    return %c0_i32, %c0_i32_0 : i32, i32
  }
  func.func @transform_7(%arg0: i32) -> (i32, i32, i32, i32) {
    %c0_i32 = arith.constant 0 : i32
    %c0_i32_0 = arith.constant 0 : i32
    %c0_i32_1 = arith.constant 0 : i32
    %c0_i32_2 = arith.constant 0 : i32
    return %arg0, %c0_i32, %c0_i32_0, %c0_i32_1 : i32, i32, i32, i32
  }
}

</mosaic_0001>

<bundles_post_ra>
// kernel: tpu_custom_call.1
= control target key start
LH: loop header
LB: loop body
LE: loop exit
PB: predicated region body
PF: predicated region fallthrough
CT: control target
= control target key end

     0   :  { %s5051_s24 = smov 0   ;;  %s7418_s0 = inlined_call_operand.vmem [shape: f32[2,16,16,4], index: 0, kind: input, shape index: {}]   ;;  %s7419_s1 = inlined_call_operand.vmem [shape: f32[36,4], index: 1, kind: input, shape index: {}]   ;;  %s7420_s2 = inlined_call_operand.vmem [shape: f32[1,4], index: 2, kind: input, shape index: {}]   ;;  %s7421_s3 = inlined_call_operand.vmem [shape: f32[1,4], index: 3, kind: input, shape index: {}]   ;;  %s7422_s4 = inlined_call_operand.vmem [shape: f32[36,4], index: 4, kind: input, shape index: {}]   ;;  %s7423_s5 = inlined_call_operand.vmem [shape: f32[1,4], index: 5, kind: input, shape index: {}]   ;;  %s7424_s6 = inlined_call_operand.vmem [shape: f32[1,4], index: 6, kind: input, shape index: {}]   ;;  %s7425_s7 = inlined_call_operand.vmem [shape: f32[2,16,16,4], index: 7, kind: output, shape index: {}]  }
   0x1 LB: > { %s4704_s25 = sadd.s32 4294967295, %s5000_s24   ;;  %p4708_p0 = scmp.ge.s32.totalorder %s5000_s24, 1  ;;  %s5000_s24 = sphi %s5051_s24, %s17_s24  }
   0x2   : > { %p237_p1 = scmp.lt.s32.totalorder %s5000_s24, 3 }
   0x4   : > { %p238_p2 = pnand %p4708_p0, %p237_p1 }
   0x6   : > { %241 = sbr.rel (%p238_p2) target bundleno = 1656 (0x678), region = 48 }
   0xb   : > { %vm311_vm0 = vcmask 31744   ;;  %p5061_p3 = scmp.lt.s32.totalorder %s4704_s25, 1  ;;  %vm314_vm1 = vcmask 25600   ;;  %v5002_v0 = vmov 0.0   ;;  %s5003_s8 = smov 4   ;;  %vm624_vm2 = vcmask 64544  }
   0xc   : > { %312 = vst.msk [vmem:[#allocation2] sm:$0xff] %vm311_vm0, %v5002_v0  ;;  %313 = vst.msk [vmem:[#allocation2 + $0x8] sm:$0xff] %vm311_vm0, %v5002_v0  ;;  %s5004_s9 = smov 8   ;;  %s5005_s10 = smov 12   ;;  %vm817_vm3 = vcmask 97344   ;;  %vm1010_vm4 = vcmask 130144  }
   0xd   : > { %316 = vst.msk [vmem:[#allocation2 + $0x18] sm:$0xff] %vm311_vm0, %v5002_v0  ;;  %317 = vst.msk [vmem:[#allocation2 + $0x20] sm:$0xff] %vm311_vm0, %v5002_v0  ;;  %s7614_s25 = smov (!%p5061_p3, %s4704_s25), 1  ;;  %s5006_s11 = smov 16   ;;  %vm1203_vm5 = vcmask 162944   ;;  %vm1396_vm6 = vcmask 195744  }
   0xe   : > { %319 = vst.msk [vmem:[#allocation2 + $0x30] sm:$0xff] %vm311_vm0, %v5002_v0  ;;  %320 = vst.msk [vmem:[#allocation2 + $0x38] sm:$0xff] %vm311_vm0, %v5002_v0  ;;  %s4785_s27 = sshll.u32 %s7614_s25, 8  ;;  %s5007_s12 = smov 20   ;;  %vm2143_vm7 = vcmask 1043456   ;;  %vm1590_vm8 = vcmask 228544  }
   0xf   : > { %322 = vst.msk [vmem:[#allocation2 + $0x48] sm:$0xff] %vm311_vm0, %v5002_v0  ;;  %323 = vst.msk [vmem:[#allocation2 + $0x50] sm:$0xff] %vm311_vm0, %v5002_v0  ;;  %s5131_s30 = scalar_lea.vmem %s7418_s0, %s4785_s27  ;;  %s5008_s13 = smov 24   ;;  %vm1783_vm9 = vcmask 261344   ;;  %vm1976_vm10 = vcmask 294144   ;;  %vm2046_vm11 = vcmask 293888  }
  0x10   : > { %325 = vst.msk [vmem:[#allocation2 + $0x60] sm:$0xff] %vm311_vm0, %v5002_v0  ;;  %326 = vst.msk [vmem:[#allocation2 + $0x68] sm:$0xff] %vm311_vm0, %v5002_v0  ;;  %v5134_v1 = vld [vmem:[%s5131_s30] sm:$0xff]  ;;  %v5137_v2 = vld [vmem:[%s5131_s30 + $0x8] sm:$0xff]  ;;  %s5009_s14 = smov 28   ;;  %s5010_s28 = smov 32  }
  0x11   : > { %328 = vst.msk [vmem:[#allocation2 + $0x78] sm:$0xff] %vm311_vm0, %v5002_v0  ;;  %329 = vst.msk [vmem:[#allocation2 + $0x80] sm:$0xff] %vm311_vm0, %v5002_v0  ;;  %v5140_v3 = vld [vmem:[%s5131_s30 + $0x10] sm:$0xff]  ;;  %v5149_v4 = vld [vmem:[%s5131_s30 + $0x18] sm:$0xff]  ;;  %s7193_s29 = scalar_lea.vmem %s7425_s7, %s4785_s27 }
  0x12   : > { %331 = vst.msk [vmem:[#allocation2 + $0x90] sm:$0xff] %vm311_vm0, %v5002_v0  ;;  %332 = vst.msk [vmem:[#allocation2 + $0x98] sm:$0xff] %vm311_vm0, %v5002_v0  ;;  %v5152_v5 = vld [vmem:[%s5131_s30 + $0x20] sm:$0xff]  ;;  %v5155_v6 = vld [vmem:[%s5131_s30 + $0x28] sm:$0xff] }
  0x13   : > { %334 = vst.msk [vmem:[#allocation2 + $0xa8] sm:$0xff] %vm311_vm0, %v5002_v0  ;;  %335 = vst.msk [vmem:[#allocation2 + $0xb0] sm:$0xff] %vm311_vm0, %v5002_v0  ;;  %v464_v7 = vld [vmem:[#allocation2 + $0x1] sm:$0xff]  ;;  %v5164_v9 = vld [vmem:[%s5131_s30 + $0x30] sm:$0xff] }
  0x14   : > { %337 = vst.msk [vmem:[#allocation2 + $0xc0] sm:$0xff] %vm311_vm0, %v5002_v0  ;;  %338 = vst.msk [vmem:[#allocation2 + $0xc8] sm:$0xff] %vm311_vm0, %v5002_v0  ;;  %528 = vrot.lane.b32.xlu0 %v464_v7, %s5003_s8  ;;  %v5170_v10 = vld [vmem:[%s5131_s30 + $0x38] sm:$0xff]  ;;  %v5173_v11 = vld [vmem:[%s5131_s30 + $0x40] sm:$0xff] }
  0x15   : > { %340 = vst.msk [vmem:[#allocation2 + $0xd8] sm:$0xff] %vm311_vm0, %v5002_v0  ;;  %341 = vst.msk [vmem:[#allocation2 + $0xe0] sm:$0xff] %vm311_vm0, %v5002_v0  ;;  %v5176_v12 = vld [vmem:[%s5131_s30 + $0x48] sm:$0xff]  ;;  %v5185_v13 = vld [vmem:[%s5131_s30 + $0x50] sm:$0xff] }
  0x16   : > { %343 = vst.msk [vmem:[#allocation2 + $0xf0] sm:$0xff] %vm311_vm0, %v5002_v0  ;;  %344 = vst.msk [vmem:[#allocation2 + $0xf8] sm:$0xff] %vm311_vm0, %v5002_v0  ;;  %v5188_v14 = vld [vmem:[%s5131_s30 + $0x58] sm:$0xff]  ;;  %v5191_v15 = vld [vmem:[%s5131_s30 + $0x60] sm:$0xff] }
  0x17   : > { %346 = vst.msk [vmem:[#allocation2 + $0x108] sm:$0xff] %vm311_vm0, %v5002_v0  ;;  %347 = vst.msk [vmem:[#allocation2 + $0x110] sm:$0xff] %vm311_vm0, %v5002_v0  ;;  %v5200_v16 = vld [vmem:[%s5131_s30 + $0x68] sm:$0xff]  ;;  %v5203_v17 = vld [vmem:[%s5131_s30 + $0x70] sm:$0xff] }
  0x18   : > { %349 = vst.msk [vmem:[#allocation2 + $0x120] sm:$0xff] %vm311_vm0, %v5002_v0  ;;  %350 = vst.msk [vmem:[#allocation2 + $0x128] sm:$0xff] %vm311_vm0, %v5002_v0  ;;  %v5206_v18 = vld [vmem:[%s5131_s30 + $0x78] sm:$0xff]  ;;  %v5215_v19 = vld [vmem:[%s5131_s30 + $0x80] sm:$0xff] }
  0x19   : > { %352 = vst.msk [vmem:[#allocation2 + $0x138] sm:$0xff] %vm311_vm0, %v5002_v0  ;;  %353 = vst.msk [vmem:[#allocation2 + $0x140] sm:$0xff] %vm311_vm0, %v5002_v0  ;;  %v5218_v20 = vld [vmem:[%s5131_s30 + $0x88] sm:$0xff]  ;;  %v5221_v21 = vld [vmem:[%s5131_s30 + $0x90] sm:$0xff] }
  0x1a   : > { %355 = vst.msk [vmem:[#allocation2 + $0x150] sm:$0xff] %vm311_vm0, %v5002_v0  ;;  %356 = vst.msk [vmem:[#allocation2 + $0x158] sm:$0xff] %vm311_vm0, %v5002_v0  ;;  %v5231_v22 = vld [vmem:[%s5131_s30 + $0x98] sm:$0xff]  ;;  %v5234_v23 = vld [vmem:[%s5131_s30 + $0xa0] sm:$0xff] }
  0x1b   : > { %358 = vst.msk [vmem:[#allocation2 + $0x168] sm:$0xff] %vm311_vm0, %v5002_v0  ;;  %359 = vst.msk [vmem:[#allocation2 + $0x170] sm:$0xff] %vm311_vm0, %v5002_v0  ;;  %v5237_v24 = vld [vmem:[%s5131_s30 + $0xa8] sm:$0xff]  ;;  %v5254_v28 = vld [vmem:[%s5131_s30 + $0xb0] sm:$0xff] }
  0x1c   : > { %361 = vst.msk [vmem:[#allocation2 + $0x180] sm:$0xff] %vm311_vm0, %v5002_v0  ;;  %362 = vst.msk [vmem:[#allocation2 + $0x188] sm:$0xff] %vm311_vm0, %v5002_v0  ;;  %v5257_v29 = vld [vmem:[%s5131_s30 + $0xb8] sm:$0xff]  ;;  %v5276_v33 = vld [vmem:[%s5131_s30 + $0xc0] sm:$0xff] }
  0x1d   : > { %364 = vst.msk [vmem:[#allocation2 + $0x198] sm:$0xff] %vm311_vm0, %v5002_v0  ;;  %365 = vst.msk [vmem:[#allocation2 + $0x1a0] sm:$0xff] %vm311_vm0, %v5002_v0  ;;  %v5279_v34 = vld [vmem:[%s5131_s30 + $0xc8] sm:$0xff]  ;;  %v5282_v35 = vld [vmem:[%s5131_s30 + $0xd0] sm:$0xff] }
  0x1e   : > { %315 = vst.msk [vmem:[#allocation2 + $0x10] sm:$0x3] %vm314_vm1, %v5002_v0  ;;  %318 = vst.msk [vmem:[#allocation2 + $0x28] sm:$0x3] %vm314_vm1, %v5002_v0  ;;  %v5293_v36 = vld [vmem:[%s5131_s30 + $0xd8] sm:$0xff]  ;;  %v5296_v37 = vld [vmem:[%s5131_s30 + $0xe0] sm:$0xff] }
  0x1f   : > { %321 = vst.msk [vmem:[#allocation2 + $0x40] sm:$0x3] %vm314_vm1, %v5002_v0  ;;  %324 = vst.msk [vmem:[#allocation2 + $0x58] sm:$0x3] %vm314_vm1, %v5002_v0  ;;  %v5299_v38 = vld [vmem:[%s5131_s30 + $0xe8] sm:$0xff]  ;;  %v400_v45 = vld [vmem:[#allocation2] sm:$0xff] }
  0x20   : > { %327 = vst.msk [vmem:[#allocation2 + $0x70] sm:$0x3] %vm314_vm1, %v5002_v0  ;;  %330 = vst.msk [vmem:[#allocation2 + $0x88] sm:$0x3] %vm314_vm1, %v5002_v0  ;;  %v401_v48 = vld [vmem:[#allocation2 + $0x8] sm:$0xff] }
  0x21   : > { %333 = vst.msk [vmem:[#allocation2 + $0xa0] sm:$0x3] %vm314_vm1, %v5002_v0  ;;  %336 = vst.msk [vmem:[#allocation2 + $0xb8] sm:$0x3] %vm314_vm1, %v5002_v0 }
  0x22   : > { %339 = vst.msk [vmem:[#allocation2 + $0xd0] sm:$0x3] %vm314_vm1, %v5002_v0  ;;  %342 = vst.msk [vmem:[#allocation2 + $0xe8] sm:$0x3] %vm314_vm1, %v5002_v0 }
  0x23   : > { %345 = vst.msk [vmem:[#allocation2 + $0x100] sm:$0x3] %vm314_vm1, %v5002_v0  ;;  %348 = vst.msk [vmem:[#allocation2 + $0x118] sm:$0x3] %vm314_vm1, %v5002_v0 }
  0x24   : > { %351 = vst.msk [vmem:[#allocation2 + $0x130] sm:$0x3] %vm314_vm1, %v5002_v0  ;;  %354 = vst.msk [vmem:[#allocation2 + $0x148] sm:$0x3] %vm314_vm1, %v5002_v0 }
  0x25   : > { %357 = vst.msk [vmem:[#allocation2 + $0x160] sm:$0x3] %vm314_vm1, %v5002_v0  ;;  %360 = vst.msk [vmem:[#allocation2 + $0x178] sm:$0x3] %vm314_vm1, %v5002_v0  ;;  %v465_v8 = vld [vmem:[#allocation2 + $0x9] sm:$0xff] }
  0x26   : > { %363 = vst.msk [vmem:[#allocation2 + $0x190] sm:$0x3] %vm314_vm1, %v5002_v0  ;;  %366 = vst.msk [vmem:[#allocation2 + $0x1a8] sm:$0x3] %vm314_vm1, %v5002_v0  ;;  %530 = vrot.lane.b32.xlu0 %v465_v8, %s5003_s8 }
  0x27   : > { %7489 = vst [vmem:[#allocation4_spill] sm:$0xff] %v5134_v1  ;;  %7490 = vst [vmem:[#allocation5_spill] sm:$0xff] %v5137_v2 }
  0x28   : > { %7491 = vst [vmem:[#allocation6_spill] sm:$0xff] %v5140_v3  ;;  %368 = vst.msk [vmem:[#allocation2 + $0x19] sm:$0xff] %vm311_vm0, %v5134_v1 }
  0x29   : > { %369 = vst.msk [vmem:[#allocation2 + $0x21] sm:$0xff] %vm311_vm0, %v5137_v2  ;;  %370 = vst.msk [vmem:[#allocation2 + $0x31] sm:$0xff] %vm311_vm0, %v5140_v3 }
  0x2a   : > { %7492 = vst [vmem:[#allocation7_spill] sm:$0xff] %v5149_v4  ;;  %7493 = vst [vmem:[#allocation8_spill] sm:$0xff] %v5152_v5 }
  0x2b   : > { %7494 = vst [vmem:[#allocation9_spill] sm:$0xff] %v5155_v6  ;;  %371 = vst.msk [vmem:[#allocation2 + $0x39] sm:$0xff] %vm311_vm0, %v5149_v4  ;;  %v657_v4 = vld [vmem:[#allocation2 + $0x2] sm:$0xff] }
  0x2c   : > { %372 = vst.msk [vmem:[#allocation2 + $0x49] sm:$0xff] %vm311_vm0, %v5152_v5  ;;  %373 = vst.msk [vmem:[#allocation2 + $0x51] sm:$0xff] %vm311_vm0, %v5155_v6  ;;  %v5521_v6 = vld [vmem:[%s5131_s30 + $0xf8] sm:$0xff] }
  0x2d   : > { %7495 = vst [vmem:[#allocation10_spill] sm:$0xff] %v5164_v9  ;;  %374 = vst.msk [vmem:[#allocation2 + $0x61] sm:$0xff] %vm311_vm0, %v5164_v9 }
  0x2e   : > { %7496 = vst [vmem:[#allocation11_spill] sm:$0xff] %v5170_v10  ;;  %7497 = vst [vmem:[#allocation12_spill] sm:$0xff] %v5173_v11 }
  0x2f   : > { %7498 = vst [vmem:[#allocation13_spill] sm:$0xff] %v5176_v12  ;;  %375 = vst.msk [vmem:[#allocation2 + $0x69] sm:$0xff] %vm311_vm0, %v5170_v10  ;;  %v5239_v25 = vld [vmem:[#allocation2 + $0x19] sm:$0xff]  ;;  %v5514_v10 = vld [vmem:[%s5131_s30 + $0xf0] sm:$0xff] }
  0x30   : > { %376 = vst.msk [vmem:[#allocation2 + $0x79] sm:$0xff] %vm311_vm0, %v5173_v11  ;;  %377 = vst.msk [vmem:[#allocation2 + $0x81] sm:$0xff] %vm311_vm0, %v5176_v12  ;;  %v5241_v26 = vld [vmem:[#allocation2 + $0x31] sm:$0xff]  ;;  %532 = vrot.lane.b32.xlu1 %v5239_v25, %s5003_s8  ;;  %v5251_v27 = vld [vmem:[#allocation2 + $0x21] sm:$0xff] }
  0x31   : > { %7499 = vst [vmem:[#allocation14_spill] sm:$0xff] %v5185_v13  ;;  %7500 = vst [vmem:[#allocation15_spill] sm:$0xff] %v5188_v14  ;;  %536 = vrot.lane.b32.xlu0 %v5241_v26, %s5003_s8  ;;  %v5331_v46 = vld [vmem:[#allocation2 + $0x18] sm:$0xff]  ;;  %v5341_v49 = vld [vmem:[#allocation2 + $0x20] sm:$0xff] }
  0x32   : > { %7501 = vst [vmem:[#allocation16_spill] sm:$0xff] %v5191_v15  ;;  %378 = vst.msk [vmem:[#allocation2 + $0x91] sm:$0xff] %vm311_vm0, %v5185_v13  ;;  %v5269_v31 = vld [vmem:[#allocation2 + $0x39] sm:$0xff]  ;;  %v5347_v51 = vld [vmem:[#allocation2 + $0x30] sm:$0xff] }
  0x33   : > { %379 = vst.msk [vmem:[#allocation2 + $0x99] sm:$0xff] %vm311_vm0, %v5188_v14  ;;  %380 = vst.msk [vmem:[#allocation2 + $0xa9] sm:$0xff] %vm311_vm0, %v5191_v15  ;;  %v5265_v30 = vld [vmem:[#allocation2 + $0x49] sm:$0xff]  ;;  %v5301_v39 = vld [vmem:[#allocation2 + $0x51] sm:$0xff] }
  0x34   : > { %7502 = vst [vmem:[#allocation17_spill] sm:$0xff] %v5200_v16  ;;  %7503 = vst [vmem:[#allocation18_spill] sm:$0xff] %v5203_v17  ;;  %534 = vrot.lane.b32.xlu1 %v5251_v27, %s5003_s8  ;;  %v5273_v32 = vld [vmem:[#allocation2 + $0x61] sm:$0xff]  ;;  %v5349_v52 = vld [vmem:[#allocation2 + $0x38] sm:$0xff] }
  0x35   : > { %7504 = vst [vmem:[#allocation19_spill] sm:$0xff] %v5206_v18  ;;  %381 = vst.msk [vmem:[#allocation2 + $0xb1] sm:$0xff] %vm311_vm0, %v5200_v16  ;;  %540 = vrot.lane.b32.xlu0 %v5265_v30, %s5003_s8  ;;  %v5359_v54 = vld [vmem:[#allocation2 + $0x48] sm:$0xff]  ;;  %v5361_v55 = vld [vmem:[#allocation2 + $0x50] sm:$0xff] }
  0x36   : > { %382 = vst.msk [vmem:[#allocation2 + $0xc1] sm:$0xff] %vm311_vm0, %v5203_v17  ;;  %383 = vst.msk [vmem:[#allocation2 + $0xc9] sm:$0xff] %vm311_vm0, %v5206_v18  ;;  %v5315_v41 = vld [vmem:[#allocation2 + $0x69] sm:$0xff]  ;;  %v5369_v57 = vld [vmem:[#allocation2 + $0x60] sm:$0xff] }
  0x37   : > { %7505 = vst [vmem:[#allocation20_spill] sm:$0xff] %v5215_v19  ;;  %7506 = vst [vmem:[#allocation21_spill] sm:$0xff] %v5218_v20  ;;  %v5311_v40 = vld [vmem:[#allocation2 + $0x79] sm:$0xff]  ;;  %v5323_v43 = vld [vmem:[#allocation2 + $0x81] sm:$0xff] }
  0x38   : > { %7507 = vst [vmem:[#allocation22_spill] sm:$0xff] %v5221_v21  ;;  %384 = vst.msk [vmem:[#allocation2 + $0xd9] sm:$0xff] %vm311_vm0, %v5215_v19  ;;  %538 = vrot.lane.b32.xlu1 %v5269_v31, %s5003_s8  ;;  %v5371_v58 = vld [vmem:[#allocation2 + $0x68] sm:$0xff]  ;;  %v5373_v59 = vld [vmem:[#allocation2 + $0x78] sm:$0xff] }
  0x39   : > { %385 = vst.msk [vmem:[#allocation2 + $0xe1] sm:$0xff] %vm311_vm0, %v5218_v20  ;;  %386 = vst.msk [vmem:[#allocation2 + $0xf1] sm:$0xff] %vm311_vm0, %v5221_v21  ;;  %544 = vrot.lane.b32.xlu0 %v5273_v32, %s5003_s8  ;;  %v5319_v42 = vld [vmem:[#allocation2 + $0x91] sm:$0xff]  ;;  %v5383_v60 = vld [vmem:[#allocation2 + $0x80] sm:$0xff] }
  0x3a   : > { %7508 = vst [vmem:[#allocation23_spill] sm:$0xff] %v5231_v22  ;;  %7509 = vst [vmem:[#allocation24_spill] sm:$0xff] %v5234_v23  ;;  %v5327_v44 = vld [vmem:[#allocation2 + $0xa9] sm:$0xff]  ;;  %v5333_v47 = vld [vmem:[#allocation2 + $0x99] sm:$0xff] }
  0x3b   : > { %7510 = vst [vmem:[#allocation25_spill] sm:$0xff] %v5237_v24  ;;  %387 = vst.msk [vmem:[#allocation2 + $0xf9] sm:$0xff] %vm311_vm0, %v5231_v22  ;;  %v5385_v61 = vld [vmem:[#allocation2 + $0x90] sm:$0xff]  ;;  %v5387_v62 = vld [vmem:[#allocation2 + $0x98] sm:$0xff] }
  0x3c   : > { %388 = vst.msk [vmem:[#allocation2 + $0x109] sm:$0xff] %vm311_vm0, %v5234_v23  ;;  %389 = vst.msk [vmem:[#allocation2 + $0x111] sm:$0xff] %vm311_vm0, %v5237_v24  ;;  %542 = vrot.lane.b32.xlu1 %v5301_v39, %s5003_s8  ;;  %v5353_v53 = vld [vmem:[#allocation2 + $0xb1] sm:$0xff]  ;;  %v5397_v0 = vld [vmem:[#allocation2 + $0xa8] sm:$0xff] }
  0x3d   : > { %7511 = vst [vmem:[#allocation26_spill] sm:$0xff] %v5254_v28  ;;  %7512 = vst [vmem:[#allocation27_spill] sm:$0xff] %v5257_v29  ;;  %548 = vrot.lane.b32.xlu0 %v5311_v40, %s5003_s8  ;;  %v5343_v50 = vld [vmem:[#allocation2 + $0xc1] sm:$0xff]  ;;  %v5389_v63 = vld [vmem:[#allocation2 + $0xc9] sm:$0xff] }
  0x3e   : > { %390 = vst.msk [vmem:[#allocation2 + $0x121] sm:$0xff] %vm311_vm0, %v5254_v28  ;;  %391 = vst.msk [vmem:[#allocation2 + $0x129] sm:$0xff] %vm311_vm0, %v5257_v29  ;;  %v5399_v7 = vld [vmem:[#allocation2 + $0xb0] sm:$0xff]  ;;  %v5401_v8 = vld [vmem:[#allocation2 + $0xc0] sm:$0xff] }
  0x3f   : > { %7513 = vst [vmem:[#allocation28_spill] sm:$0xff] %v5276_v33  ;;  %7514 = vst [vmem:[#allocation29_spill] sm:$0xff] %v5279_v34  ;;  %v5363_v56 = vld [vmem:[#allocation2 + $0xd9] sm:$0xff] }
  0x40   : > { %7515 = vst [vmem:[#allocation30_spill] sm:$0xff] %v5282_v35  ;;  %392 = vst.msk [vmem:[#allocation2 + $0x139] sm:$0xff] %vm311_vm0, %v5276_v33  ;;  %546 = vrot.lane.b32.xlu1 %v5315_v41, %s5003_s8  ;;  %v5449_v23 = vld [vmem:[#allocation2 + $0xe1] sm:$0xff]  ;;  %v5542_v2 = vld [vmem:[#allocation2 + $0x32] sm:$0xff] }
  0x41   : > { %393 = vst.msk [vmem:[#allocation2 + $0x141] sm:$0xff] %vm311_vm0, %v5279_v34  ;;  %394 = vst.msk [vmem:[#allocation2 + $0x151] sm:$0xff] %vm311_vm0, %v5282_v35  ;;  %552 = vrot.lane.b32.xlu0 %v5319_v42, %s5003_s8  ;;  %v5439_v34 = vld [vmem:[#allocation2 + $0xf1] sm:$0xff] }
  0x42   : > { %7516 = vst [vmem:[#allocation31_spill] sm:$0xff] %v5293_v36  ;;  %7517 = vst [vmem:[#allocation32_spill] sm:$0xff] %v5296_v37  ;;  %v5425_v35 = vld [vmem:[#allocation2 + $0xf8] sm:$0xff] }
  0x43   : > { %7518 = vst [vmem:[#allocation33_spill] sm:$0xff] %v5299_v38  ;;  %395 = vst.msk [vmem:[#allocation2 + $0x159] sm:$0xff] %vm311_vm0, %v5293_v36  ;;  %v5427_v36 = vld [vmem:[#allocation2 + $0x108] sm:$0xff]  ;;  %v5437_v33 = vld [vmem:[#allocation2 + $0x110] sm:$0xff] }
  0x44   : > { %396 = vst.msk [vmem:[#allocation2 + $0x169] sm:$0xff] %vm311_vm0, %v5296_v37  ;;  %397 = vst.msk [vmem:[#allocation2 + $0x171] sm:$0xff] %vm311_vm0, %v5299_v38  ;;  %550 = vrot.lane.b32.xlu1 %v5323_v43, %s5003_s8  ;;  %v5415_v37 = vld [vmem:[#allocation2 + $0xe0] sm:$0xff]  ;;  %v5423_v38 = vld [vmem:[#allocation2 + $0xf0] sm:$0xff] }
  0x45   : > { %432 = vst.msk [vmem:[#allocation3] sm:$0xff] %vm311_vm0, %v400_v45  ;;  %434 = vst.msk [vmem:[#allocation3 + $0x10] sm:$0xff] %vm311_vm0, %v5331_v46  ;;  %556 = vrot.lane.b32.xlu0 %v5327_v44, %s5003_s8  ;;  %v5411_v45 = vld [vmem:[#allocation2 + $0xc8] sm:$0xff]  ;;  %v5445_v28 = vld [vmem:[#allocation2 + $0x120] sm:$0xff] }
  0x46   : > { %433 = vst.msk [vmem:[#allocation3 + $0x8] sm:$0xff] %vm311_vm0, %v401_v48  ;;  %435 = vst.msk [vmem:[#allocation3 + $0x18] sm:$0xff] %vm311_vm0, %v5341_v49  ;;  %v5413_v48 = vld [vmem:[#allocation2 + $0xd8] sm:$0xff]  ;;  %v5447_v29 = vld [vmem:[#allocation2 + $0x128] sm:$0xff] }
  0x47   : > { %436 = vst.msk [vmem:[#allocation3 + $0x20] sm:$0xff] %vm311_vm0, %v5347_v51  ;;  %437 = vst.msk [vmem:[#allocation3 + $0x28] sm:$0xff] %vm311_vm0, %v5349_v52  ;;  %v5457_v24 = vld [vmem:[#allocation2 + $0x109] sm:$0xff]  ;;  %v5461_v21 = vld [vmem:[#allocation2 + $0x138] sm:$0xff] }
  0x48   : > { %554 = vrot.lane.b32.xlu1 %v5333_v47, %s5003_s8  ;;  %438 = vst.msk [vmem:[#allocation3 + $0x30] sm:$0xff] %vm311_vm0, %v5359_v54  ;;  %439 = vst.msk [vmem:[#allocation3 + $0x38] sm:$0xff] %vm311_vm0, %v5361_v55  ;;  %v5463_v22 = vld [vmem:[#allocation2 + $0x140] sm:$0xff]  ;;  %v5477_v17 = vld [vmem:[#allocation2 + $0x150] sm:$0xff] }
  0x49   : > { %560 = vrot.lane.b32.xlu0 %v5343_v50, %s5003_s8  ;;  %440 = vst.msk [vmem:[#allocation3 + $0x40] sm:$0xff] %vm311_vm0, %v5369_v57  ;;  %441 = vst.msk [vmem:[#allocation3 + $0x48] sm:$0xff] %vm311_vm0, %v5371_v58  ;;  %v5465_v19 = vld [vmem:[#allocation2 + $0xf9] sm:$0xff]  ;;  %v5473_v20 = vld [vmem:[#allocation2 + $0x121] sm:$0xff] }
  0x4a   : > { %442 = vst.msk [vmem:[#allocation3 + $0x50] sm:$0xff] %vm311_vm0, %v5373_v59  ;;  %443 = vst.msk [vmem:[#allocation3 + $0x58] sm:$0xff] %vm311_vm0, %v5383_v60  ;;  %v5479_v18 = vld [vmem:[#allocation2 + $0x158] sm:$0xff]  ;;  %v5497_v11 = vld [vmem:[#allocation2 + $0x129] sm:$0xff] }
  0x4b   : > { %444 = vst.msk [vmem:[#allocation3 + $0x60] sm:$0xff] %vm311_vm0, %v5385_v61  ;;  %445 = vst.msk [vmem:[#allocation3 + $0x68] sm:$0xff] %vm311_vm0, %v5387_v62  ;;  %v5481_v15 = vld [vmem:[#allocation2 + $0x111] sm:$0xff]  ;;  %v5489_v16 = vld [vmem:[#allocation2 + $0x139] sm:$0xff] }
  0x4c   : > { %558 = vrot.lane.b32.xlu1 %v5353_v53, %s5003_s8  ;;  %446 = vst.msk [vmem:[#allocation3 + $0x70] sm:$0xff] %vm311_vm0, %v5397_v0  ;;  %447 = vst.msk [vmem:[#allocation3 + $0x78] sm:$0xff] %vm311_vm0, %v5399_v7  ;;  %v5493_v13 = vld [vmem:[#allocation2 + $0x168] sm:$0xff]  ;;  %v5495_v14 = vld [vmem:[#allocation2 + $0x170] sm:$0xff] }
  0x4d   : > { %448 = vst.msk [vmem:[#allocation3 + $0x80] sm:$0xff] %vm311_vm0, %v5401_v8  ;;  %449 = vst.msk [vmem:[#allocation3 + $0x88] sm:$0xff] %vm311_vm0, %v5411_v45  ;;  %564 = vrot.lane.b32.xlu0 %v5363_v56, %s5003_s8  ;;  %v5505_v12 = vld [vmem:[#allocation2 + $0x151] sm:$0xff]  ;;  %v5509_v9 = vld [vmem:[#allocation2 + $0x141] sm:$0xff] }
  0x4e   : > { %450 = vst.msk [vmem:[#allocation3 + $0x90] sm:$0xff] %vm311_vm0, %v5413_v48  ;;  %451 = vst.msk [vmem:[#allocation3 + $0x98] sm:$0xff] %vm311_vm0, %v5415_v37  ;;  %v5516_v5 = vld [vmem:[#allocation2 + $0x169] sm:$0xff]  ;;  %v5527_v3 = vld [vmem:[#allocation2 + $0x159] sm:$0xff] }
  0x4f   : > { %452 = vst.msk [vmem:[#allocation3 + $0xa0] sm:$0xff] %vm311_vm0, %v5423_v38  ;;  %453 = vst.msk [vmem:[#allocation3 + $0xa8] sm:$0xff] %vm311_vm0, %v5425_v35  ;;  %v5533_v1 = vld [vmem:[#allocation2 + $0x171] sm:$0xff] }
  0x50   : > { %454 = vst.msk [vmem:[#allocation3 + $0xb0] sm:$0xff] %vm311_vm0, %v5427_v36  ;;  %455 = vst.msk [vmem:[#allocation3 + $0xb8] sm:$0xff] %vm311_vm0, %v5437_v33  ;;  %562 = vrot.lane.b32.xlu1 %v5389_v63, %s5003_s8 }
  0x51   : > { %456 = vst.msk [vmem:[#allocation3 + $0xc0] sm:$0xff] %vm311_vm0, %v5445_v28  ;;  %457 = vst.msk [vmem:[#allocation3 + $0xc8] sm:$0xff] %vm311_vm0, %v5447_v29  ;;  %568 = vrot.lane.b32.xlu0 %v5439_v34, %s5003_s8 }
  0x52   : > { %458 = vst.msk [vmem:[#allocation3 + $0xd0] sm:$0xff] %vm311_vm0, %v5461_v21  ;;  %459 = vst.msk [vmem:[#allocation3 + $0xd8] sm:$0xff] %vm311_vm0, %v5463_v22 }
  0x53   : > { %460 = vst.msk [vmem:[#allocation3 + $0xe0] sm:$0xff] %vm311_vm0, %v5477_v17  ;;  %461 = vst.msk [vmem:[#allocation3 + $0xe8] sm:$0xff] %vm311_vm0, %v5479_v18 }
  0x54   : > { %566 = vrot.lane.b32.xlu1 %v5449_v23, %s5003_s8  ;;  %462 = vst.msk [vmem:[#allocation3 + $0xf0] sm:$0xff] %vm311_vm0, %v5493_v13  ;;  %463 = vst.msk [vmem:[#allocation3 + $0xf8] sm:$0xff] %vm311_vm0, %v5495_v14 }
  0x55   : > { %572 = vrot.lane.b32.xlu0 %v5457_v24, %s5003_s8  ;;  %7519 = vst [vmem:[#allocation34_spill] sm:$0xff] %v5509_v9  ;;  %7520 = vst [vmem:[#allocation35_spill] sm:$0xff] %v5514_v10 }
  0x56   : > { %7521 = vst [vmem:[#allocation36_spill] sm:$0xff] %v5516_v5  ;;  %398 = vst.msk [vmem:[#allocation2 + $0x181] sm:$0xff] %vm311_vm0, %v5514_v10  ;;  %v5536_v10 = vld [vmem:[#allocation2 + $0x1a] sm:$0xff] }
  0x57   : > { %7522 = vst [vmem:[#allocation37_spill] sm:$0xff] %v5521_v6  ;;  %399 = vst.msk [vmem:[#allocation2 + $0x189] sm:$0xff] %vm311_vm0, %v5521_v6  ;;  %v658_v6 = vld [vmem:[#allocation2 + $0xa] sm:$0xff] }
  0x58   : > { %570 = vrot.lane.b32.xlu1 %v5465_v19, %s5003_s8  ;;  %7523 = vst [vmem:[#allocation38_spill] sm:$0xff] %v5527_v3  ;;  %7524 = vst [vmem:[#allocation39_spill] sm:$0xff] %v5533_v1 }
  0x59   : > { %576 = vrot.lane.b32.xlu0 %v5473_v20, %s5003_s8  ;;  %7525 = vst [vmem:[#allocation40_spill] sm:$0xff] %v5536_v10  ;;  %7526 = vst [vmem:[#allocation41_spill] sm:$0xff] %v5542_v2 }
  0x5c   : > { %574 = vrot.lane.b32.xlu1 %v5481_v15, %s5003_s8 }
  0x5d   : > { %580 = vrot.lane.b32.xlu0 %v5489_v16, %s5003_s8 }
  0x60   : > { %578 = vrot.lane.b32.xlu1 %v5497_v11, %s5003_s8 }
  0x61   : > { %584 = vrot.lane.b32.xlu0 %v5505_v12, %s5003_s8 }
  0x64   : > { %582 = vrot.lane.b32.xlu1 %v5509_v9, %s5003_s8 }
  0x65   : > { %588 = vrot.lane.b32.xlu0 %v5516_v5, %s5003_s8  ;;  %v5545_v5 = vld [vmem:[#allocation2 + $0x22] sm:$0xff] }
  0x66   : > { %7527 = vst [vmem:[#allocation42_spill] sm:$0xff] %v5545_v5 }
  0x68   : > { %586 = vrot.lane.b32.xlu1 %v5527_v3, %s5003_s8  ;;  %v5549_v3 = vld [vmem:[#allocation2 + $0x4a] sm:$0xff] }
  0x69   : > { %721 = vrot.lane.b32.xlu0 %v657_v4, %s5004_s9  ;;  %7528 = vst [vmem:[#allocation43_spill] sm:$0xff] %v5549_v3  ;;  %v5553_v4 = vld [vmem:[#allocation2 + $0x3a] sm:$0xff] }
  0x6a   : > { %7529 = vst [vmem:[#allocation44_spill] sm:$0xff] %v5553_v4 }
  0x6c   : > { %590 = vrot.lane.b32.xlu1 %v5533_v1, %s5003_s8  ;;  %v5633_v1 = vld [vmem:[#allocation2 + $0x12a] sm:$0xff] }
  0x6d   : > { %725 = vrot.lane.b32.xlu0 %v5536_v10, %s5004_s9  ;;  %v5557_v10 = vld [vmem:[#allocation2 + $0x62] sm:$0xff]  ;;  %7549 = vst [vmem:[#allocation64_spill] sm:$0xff] %v5633_v1 }
  0x6e   : > { %7530 = vst [vmem:[#allocation45_spill] sm:$0xff] %v5557_v10 }
  0x70   : > { %723 = vrot.lane.b32.xlu1 %v658_v6, %s5004_s9  ;;  %v5561_v6 = vld [vmem:[#allocation2 + $0x52] sm:$0xff] }
  0x71   : > { %729 = vrot.lane.b32.xlu0 %v5542_v2, %s5004_s9  ;;  %7531 = vst [vmem:[#allocation46_spill] sm:$0xff] %v5561_v6  ;;  %v5565_v2 = vld [vmem:[#allocation2 + $0x7a] sm:$0xff] }
  0x72   : > { %7532 = vst [vmem:[#allocation47_spill] sm:$0xff] %v5565_v2 }
  0x74   : > { %727 = vrot.lane.b32.xlu1 %v5545_v5, %s5004_s9  ;;  %v5569_v5 = vld [vmem:[#allocation2 + $0x6a] sm:$0xff] }
  0x75   : > { %733 = vrot.lane.b32.xlu0 %v5549_v3, %s5004_s9  ;;  %7533 = vst [vmem:[#allocation48_spill] sm:$0xff] %v5569_v5  ;;  %v5573_v3 = vld [vmem:[#allocation2 + $0x92] sm:$0xff] }
  0x76   : > { %7534 = vst [vmem:[#allocation49_spill] sm:$0xff] %v5573_v3 }
  0x78   : > { %731 = vrot.lane.b32.xlu1 %v5553_v4, %s5004_s9  ;;  %v5577_v4 = vld [vmem:[#allocation2 + $0x82] sm:$0xff] }
  0x79   : > { %737 = vrot.lane.b32.xlu0 %v5557_v10, %s5004_s9  ;;  %7535 = vst [vmem:[#allocation50_spill] sm:$0xff] %v5577_v4  ;;  %v5581_v10 = vld [vmem:[#allocation2 + $0xaa] sm:$0xff] }
  0x7a   : > { %7536 = vst [vmem:[#allocation51_spill] sm:$0xff] %v5581_v10 }
  0x7c   : > { %735 = vrot.lane.b32.xlu1 %v5561_v6, %s5004_s9  ;;  %v5585_v6 = vld [vmem:[#allocation2 + $0x9a] sm:$0xff] }
  0x7d   : > { %741 = vrot.lane.b32.xlu0 %v5565_v2, %s5004_s9  ;;  %7537 = vst [vmem:[#allocation52_spill] sm:$0xff] %v5585_v6  ;;  %v5589_v2 = vld [vmem:[#allocation2 + $0xc2] sm:$0xff] }
  0x7e   : > { %7538 = vst [vmem:[#allocation53_spill] sm:$0xff] %v5589_v2 }
  0x80   : > { %739 = vrot.lane.b32.xlu1 %v5569_v5, %s5004_s9  ;;  %v5593_v5 = vld [vmem:[#allocation2 + $0xb2] sm:$0xff] }
  0x81   : > { %745 = vrot.lane.b32.xlu0 %v5573_v3, %s5004_s9  ;;  %7539 = vst [vmem:[#allocation54_spill] sm:$0xff] %v5593_v5  ;;  %v5597_v3 = vld [vmem:[#allocation2 + $0xda] sm:$0xff] }
  0x82   : > { %7540 = vst [vmem:[#allocation55_spill] sm:$0xff] %v5597_v3 }
  0x84   : > { %743 = vrot.lane.b32.xlu1 %v5577_v4, %s5004_s9  ;;  %v5601_v4 = vld [vmem:[#allocation2 + $0xca] sm:$0xff] }
  0x85   : > { %749 = vrot.lane.b32.xlu0 %v5581_v10, %s5004_s9  ;;  %7541 = vst [vmem:[#allocation56_spill] sm:$0xff] %v5601_v4  ;;  %v5605_v10 = vld [vmem:[#allocation2 + $0xf2] sm:$0xff] }
  0x86   : > { %7542 = vst [vmem:[#allocation57_spill] sm:$0xff] %v5605_v10 }
  0x88   : > { %747 = vrot.lane.b32.xlu1 %v5585_v6, %s5004_s9  ;;  %v5609_v6 = vld [vmem:[#allocation2 + $0xe2] sm:$0xff] }
  0x89   : > { %753 = vrot.lane.b32.xlu0 %v5589_v2, %s5004_s9  ;;  %7543 = vst [vmem:[#allocation58_spill] sm:$0xff] %v5609_v6  ;;  %v5613_v2 = vld [vmem:[#allocation2 + $0x10a] sm:$0xff] }
  0x8a   : > { %7544 = vst [vmem:[#allocation59_spill] sm:$0xff] %v5613_v2 }
  0x8c   : > { %751 = vrot.lane.b32.xlu1 %v5593_v5, %s5004_s9  ;;  %v5617_v5 = vld [vmem:[#allocation2 + $0xfa] sm:$0xff] }
  0x8d   : > { %757 = vrot.lane.b32.xlu0 %v5597_v3, %s5004_s9  ;;  %7545 = vst [vmem:[#allocation60_spill] sm:$0xff] %v5617_v5  ;;  %v5621_v3 = vld [vmem:[#allocation2 + $0x122] sm:$0xff] }
  0x8e   : > { %7546 = vst [vmem:[#allocation61_spill] sm:$0xff] %v5621_v3 }
  0x90   : > { %755 = vrot.lane.b32.xlu1 %v5601_v4, %s5004_s9  ;;  %v5625_v4 = vld [vmem:[#allocation2 + $0x112] sm:$0xff] }
  0x91   : > { %761 = vrot.lane.b32.xlu0 %v5605_v10, %s5004_s9  ;;  %7547 = vst [vmem:[#allocation62_spill] sm:$0xff] %v5625_v4  ;;  %v5629_v10 = vld [vmem:[#allocation2 + $0x13a] sm:$0xff] }
  0x92   : > { %7548 = vst [vmem:[#allocation63_spill] sm:$0xff] %v5629_v10 }
  0x94   : > { %759 = vrot.lane.b32.xlu1 %v5609_v6, %s5004_s9  ;;  %v529_v6 = vpop.permute.xlu0 %528 }
  0x95   : > { %765 = vrot.lane.b32.xlu0 %v5613_v2, %s5004_s9  ;;  %625 = vst.msk [vmem:[#allocation3] sm:$0xff] %vm624_vm2, %v529_v6  ;;  %v5642_v2 = vld [vmem:[#allocation2 + $0x142] sm:$0xff]  ;;  %v5648_v6 = vld [vmem:[#allocation2 + $0x16a] sm:$0xff] }
  0x96   : > { %7550 = vst [vmem:[#allocation65_spill] sm:$0xff] %v5642_v2 }
  0x98   : > { %763 = vrot.lane.b32.xlu1 %v5617_v5, %s5004_s9  ;;  %v5638_v5 = vld [vmem:[#allocation2 + $0x152] sm:$0xff] }
  0x99   : > { %769 = vrot.lane.b32.xlu0 %v5621_v3, %s5004_s9  ;;  %v531_v3 = vpop.permute.xlu0 %530 }
  0x9a   : > { %626 = vst.msk [vmem:[#allocation3 + $0x8] sm:$0xff] %vm624_vm2, %v531_v3 }
  0x9c   : > { %767 = vrot.lane.b32.xlu1 %v5625_v4, %s5004_s9  ;;  %v5652_v4 = vld [vmem:[#allocation2 + $0x15a] sm:$0xff] }
  0x9d   : > { %773 = vrot.lane.b32.xlu0 %v5629_v10, %s5004_s9 }
  0xa0   : > { %771 = vrot.lane.b32.xlu1 %v5633_v1, %s5004_s9 }
  0xa1   : > { %777 = vrot.lane.b32.xlu0 %v5638_v5, %s5004_s9 }
  0xa2   : > { %v533_v9 = vpop.permute.xlu1 %532 }
  0xa3   : > { %627 = vst.msk [vmem:[#allocation3 + $0x10] sm:$0xff] %vm624_vm2, %v533_v9  ;;  %v537_v10 = vpop.permute.xlu0 %536  ;;  %v5660_v9 = vld [vmem:[#allocation2 + $0x172] sm:$0xff] }
  0xa4   : > { %775 = vrot.lane.b32.xlu1 %v5642_v2, %s5004_s9  ;;  %629 = vst.msk [vmem:[#allocation3 + $0x20] sm:$0xff] %vm624_vm2, %v537_v10 }
  0xa5   : > { %781 = vrot.lane.b32.xlu0 %v5648_v6, %s5004_s9 }
  0xa6   : > { %v535_v1 = vpop.permute.xlu1 %534 }
  0xa7   : > { %628 = vst.msk [vmem:[#allocation3 + $0x18] sm:$0xff] %vm624_vm2, %v535_v1  ;;  %v541_v3 = vpop.permute.xlu0 %540 }
  0xa8   : > { %779 = vrot.lane.b32.xlu1 %v5652_v4, %s5004_s9  ;;  %631 = vst.msk [vmem:[#allocation3 + $0x30] sm:$0xff] %vm624_vm2, %v541_v3 }
  0xa9   : > { %914 = vrot.lane.b32.xlu0 %v5331_v46, %s5005_s10 }
  0xaa   : > { %v539_v2 = vpop.permute.xlu1 %538 }
  0xab   : > { %630 = vst.msk [vmem:[#allocation3 + $0x28] sm:$0xff] %vm624_vm2, %v539_v2  ;;  %v545_v10 = vpop.permute.xlu0 %544 }
  0xac   : > { %783 = vrot.lane.b32.xlu1 %v5660_v9, %s5004_s9  ;;  %633 = vst.msk [vmem:[#allocation3 + $0x40] sm:$0xff] %vm624_vm2, %v545_v10 }
  0xad   : > { %918 = vrot.lane.b32.xlu0 %v5347_v51, %s5005_s10 }
  0xae   : > { %v543_v1 = vpop.permute.xlu1 %542 }
  0xaf   : > { %632 = vst.msk [vmem:[#allocation3 + $0x38] sm:$0xff] %vm624_vm2, %v543_v1  ;;  %v549_v3 = vpop.permute.xlu0 %548 }
  0xb0   : > { %916 = vrot.lane.b32.xlu1 %v5341_v49, %s5005_s10  ;;  %635 = vst.msk [vmem:[#allocation3 + $0x50] sm:$0xff] %vm624_vm2, %v549_v3 }
  0xb1   : > { %922 = vrot.lane.b32.xlu0 %v5359_v54, %s5005_s10 }
  0xb2   : > { %v547_v46 = vpop.permute.xlu1 %546 }
  0xb3   : > { %634 = vst.msk [vmem:[#allocation3 + $0x48] sm:$0xff] %vm624_vm2, %v547_v46  ;;  %v553_v2 = vpop.permute.xlu0 %552 }
  0xb4   : > { %920 = vrot.lane.b32.xlu1 %v5349_v52, %s5005_s10  ;;  %637 = vst.msk [vmem:[#allocation3 + $0x60] sm:$0xff] %vm624_vm2, %v553_v2 }
  0xb5   : > { %926 = vrot.lane.b32.xlu0 %v5369_v57, %s5005_s10 }
  0xb6   : > { %v551_v10 = vpop.permute.xlu1 %550 }
  0xb7   : > { %636 = vst.msk [vmem:[#allocation3 + $0x58] sm:$0xff] %vm624_vm2, %v551_v10  ;;  %v557_v49 = vpop.permute.xlu0 %556 }
  0xb8   : > { %924 = vrot.lane.b32.xlu1 %v5361_v55, %s5005_s10  ;;  %639 = vst.msk [vmem:[#allocation3 + $0x70] sm:$0xff] %vm624_vm2, %v557_v49 }
  0xb9   : > { %930 = vrot.lane.b32.xlu0 %v5373_v59, %s5005_s10 }
  0xba   : > { %v555_v1 = vpop.permute.xlu1 %554 }
  0xbb   : > { %638 = vst.msk [vmem:[#allocation3 + $0x68] sm:$0xff] %vm624_vm2, %v555_v1  ;;  %v561_v3 = vpop.permute.xlu0 %560 }
  0xbc   : > { %928 = vrot.lane.b32.xlu1 %v5371_v58, %s5005_s10  ;;  %641 = vst.msk [vmem:[#allocation3 + $0x80] sm:$0xff] %vm624_vm2, %v561_v3 }
  0xbd   : > { %934 = vrot.lane.b32.xlu0 %v5385_v61, %s5005_s10 }
  0xbe   : > { %v559_v46 = vpop.permute.xlu1 %558 }
  0xbf   : > { %640 = vst.msk [vmem:[#allocation3 + $0x78] sm:$0xff] %vm624_vm2, %v559_v46  ;;  %v565_v2 = vpop.permute.xlu0 %564 }
  0xc0   : > { %932 = vrot.lane.b32.xlu1 %v5383_v60, %s5005_s10  ;;  %643 = vst.msk [vmem:[#allocation3 + $0x90] sm:$0xff] %vm624_vm2, %v565_v2 }
  0xc1   : > { %938 = vrot.lane.b32.xlu0 %v5397_v0, %s5005_s10 }
  0xc2   : > { %v563_v10 = vpop.permute.xlu1 %562 }
  0xc3   : > { %642 = vst.msk [vmem:[#allocation3 + $0x88] sm:$0xff] %vm624_vm2, %v563_v10  ;;  %v569_v49 = vpop.permute.xlu0 %568 }
  0xc4   : > { %936 = vrot.lane.b32.xlu1 %v5387_v62, %s5005_s10  ;;  %645 = vst.msk [vmem:[#allocation3 + $0xa0] sm:$0xff] %vm624_vm2, %v569_v49 }
  0xc5   : > { %942 = vrot.lane.b32.xlu0 %v5401_v8, %s5005_s10 }
  0xc6   : > { %v567_v1 = vpop.permute.xlu1 %566 }
  0xc7   : > { %644 = vst.msk [vmem:[#allocation3 + $0x98] sm:$0xff] %vm624_vm2, %v567_v1  ;;  %v573_v3 = vpop.permute.xlu0 %572 }
  0xc8   : > { %940 = vrot.lane.b32.xlu1 %v5399_v7, %s5005_s10  ;;  %647 = vst.msk [vmem:[#allocation3 + $0xb0] sm:$0xff] %vm624_vm2, %v573_v3 }
  0xc9   : > { %946 = vrot.lane.b32.xlu0 %v5413_v48, %s5005_s10 }
  0xca   : > { %v571_v46 = vpop.permute.xlu1 %570 }
  0xcb   : > { %646 = vst.msk [vmem:[#allocation3 + $0xa8] sm:$0xff] %vm624_vm2, %v571_v46  ;;  %v577_v2 = vpop.permute.xlu0 %576 }
  0xcc   : > { %944 = vrot.lane.b32.xlu1 %v5411_v45, %s5005_s10  ;;  %649 = vst.msk [vmem:[#allocation3 + $0xc0] sm:$0xff] %vm624_vm2, %v577_v2 }
  0xcd   : > { %950 = vrot.lane.b32.xlu0 %v5423_v38, %s5005_s10 }
  0xce   : > { %v575_v10 = vpop.permute.xlu1 %574 }
  0xcf   : > { %648 = vst.msk [vmem:[#allocation3 + $0xb8] sm:$0xff] %vm624_vm2, %v575_v10  ;;  %v581_v49 = vpop.permute.xlu0 %580 }
  0xd0   : > { %948 = vrot.lane.b32.xlu1 %v5415_v37, %s5005_s10  ;;  %651 = vst.msk [vmem:[#allocation3 + $0xd0] sm:$0xff] %vm624_vm2, %v581_v49 }
  0xd1   : > { %954 = vrot.lane.b32.xlu0 %v5427_v36, %s5005_s10 }
  0xd2   : > { %v579_v1 = vpop.permute.xlu1 %578 }
  0xd3   : > { %650 = vst.msk [vmem:[#allocation3 + $0xc8] sm:$0xff] %vm624_vm2, %v579_v1  ;;  %v585_v3 = vpop.permute.xlu0 %584 }
  0xd4   : > { %952 = vrot.lane.b32.xlu1 %v5425_v35, %s5005_s10  ;;  %653 = vst.msk [vmem:[#allocation3 + $0xe0] sm:$0xff] %vm624_vm2, %v585_v3 }
  0xd5   : > { %958 = vrot.lane.b32.xlu0 %v5445_v28, %s5005_s10 }
  0xd6   : > { %v583_v46 = vpop.permute.xlu1 %582 }
  0xd7   : > { %652 = vst.msk [vmem:[#allocation3 + $0xd8] sm:$0xff] %vm624_vm2, %v583_v46  ;;  %v589_v2 = vpop.permute.xlu0 %588 }
  0xd8   : > { %956 = vrot.lane.b32.xlu1 %v5437_v33, %s5005_s10  ;;  %655 = vst.msk [vmem:[#allocation3 + $0xf0] sm:$0xff] %vm624_vm2, %v589_v2  ;;  %v5750_v2 = vld [vmem:[#allocation2 + $0x180] sm:$0xff] }
  0xd9   : > { %962 = vrot.lane.b32.xlu0 %v5461_v21, %s5005_s10 }
  0xda   : > { %v587_v10 = vpop.permute.xlu1 %586 }
  0xdb   : > { %654 = vst.msk [vmem:[#allocation3 + $0xe8] sm:$0xff] %vm624_vm2, %v587_v10  ;;  %v722_v49 = vpop.permute.xlu0 %721 }
  0xdc   : > { %960 = vrot.lane.b32.xlu1 %v5447_v29, %s5005_s10  ;;  %818 = vst.msk [vmem:[#allocation3] sm:$0xff] %vm817_vm3, %v722_v49 }
  0xdd   : > { %966 = vrot.lane.b32.xlu0 %v5477_v17, %s5005_s10 }
  0xde   : > { %v591_v1 = vpop.permute.xlu1 %590 }
  0xdf   : > { %656 = vst.msk [vmem:[#allocation3 + $0xf8] sm:$0xff] %vm624_vm2, %v591_v1  ;;  %v726_v3 = vpop.permute.xlu0 %725 }
  0xe0   : > { %964 = vrot.lane.b32.xlu1 %v5463_v22, %s5005_s10  ;;  %820 = vst.msk [vmem:[#allocation3 + $0x10] sm:$0xff] %vm817_vm3, %v726_v3  ;;  %v5760_v3 = vld [vmem:[#allocation2 + $0x188] sm:$0xff] }
  0xe1   : > { %970 = vrot.lane.b32.xlu0 %v5493_v13, %s5005_s10 }
  0xe2   : > { %v724_v46 = vpop.permute.xlu1 %723 }
  0xe3   : > { %819 = vst.msk [vmem:[#allocation3 + $0x8] sm:$0xff] %vm817_vm3, %v724_v46  ;;  %v730_v10 = vpop.permute.xlu0 %729 }
  0xe4   : > { %968 = vrot.lane.b32.xlu1 %v5479_v18, %s5005_s10  ;;  %822 = vst.msk [vmem:[#allocation3 + $0x20] sm:$0xff] %vm817_vm3, %v730_v10 }
  0xe5   : > { %974 = vrot.lane.b32.xlu0 %v5750_v2, %s5005_s10 }
  0xe6   : > { %v728_v49 = vpop.permute.xlu1 %727 }
  0xe7   : > { %821 = vst.msk [vmem:[#allocation3 + $0x18] sm:$0xff] %vm817_vm3, %v728_v49  ;;  %v734_v1 = vpop.permute.xlu0 %733 }
  0xe8   : > { %972 = vrot.lane.b32.xlu1 %v5495_v14, %s5005_s10  ;;  %824 = vst.msk [vmem:[#allocation3 + $0x30] sm:$0xff] %vm817_vm3, %v734_v1 }
  0xe9   : > { %1107 = vrot.lane.b32.xlu0 %v5239_v25, %s5006_s11 }
  0xea   : > { %v732_v46 = vpop.permute.xlu1 %731 }
  0xeb   : > { %823 = vst.msk [vmem:[#allocation3 + $0x28] sm:$0xff] %vm817_vm3, %v732_v46  ;;  %v738_v10 = vpop.permute.xlu0 %737 }
  0xec   : > { %976 = vrot.lane.b32.xlu1 %v5760_v3, %s5005_s10  ;;  %826 = vst.msk [vmem:[#allocation3 + $0x40] sm:$0xff] %vm817_vm3, %v738_v10 }
  0xed   : > { %1111 = vrot.lane.b32.xlu0 %v5241_v26, %s5006_s11 }
  0xee   : > { %v736_v49 = vpop.permute.xlu1 %735 }
  0xef   : > { %825 = vst.msk [vmem:[#allocation3 + $0x38] sm:$0xff] %vm817_vm3, %v736_v49  ;;  %v742_v1 = vpop.permute.xlu0 %741  ;;  %v7552_v49 = vld [vmem:[#allocation36_spill] sm:$0xff] }
  0xf0   : > { %1109 = vrot.lane.b32.xlu1 %v5251_v27, %s5006_s11  ;;  %828 = vst.msk [vmem:[#allocation3 + $0x50] sm:$0xff] %vm817_vm3, %v742_v1  ;;  %v7553_v1 = vld [vmem:[#allocation38_spill] sm:$0xff] }
  0xf1   : > { %1115 = vrot.lane.b32.xlu0 %v5265_v30, %s5006_s11 }
  0xf2   : > { %v740_v25 = vpop.permute.xlu1 %739 }
  0xf3   : > { %827 = vst.msk [vmem:[#allocation3 + $0x48] sm:$0xff] %vm817_vm3, %v740_v25  ;;  %v746_v46 = vpop.permute.xlu0 %745 }
  0xf4   : > { %1113 = vrot.lane.b32.xlu1 %v5269_v31, %s5006_s11  ;;  %830 = vst.msk [vmem:[#allocation3 + $0x60] sm:$0xff] %vm817_vm3, %v746_v46  ;;  %v7554_v46 = vld [vmem:[#allocation39_spill] sm:$0xff] }
  0xf5   : > { %1119 = vrot.lane.b32.xlu0 %v5273_v32, %s5006_s11 }
  0xf6   : > { %v744_v26 = vpop.permute.xlu1 %743 }
  0xf7   : > { %829 = vst.msk [vmem:[#allocation3 + $0x58] sm:$0xff] %vm817_vm3, %v744_v26  ;;  %v750_v27 = vpop.permute.xlu0 %749 }
  0xf8   : > { %1117 = vrot.lane.b32.xlu1 %v5301_v39, %s5006_s11  ;;  %832 = vst.msk [vmem:[#allocation3 + $0x70] sm:$0xff] %vm817_vm3, %v750_v27  ;;  %v5860_v27 = vld [vmem:[#allocation2 + $0x189] sm:$0xff] }
  0xf9   : > { %1123 = vrot.lane.b32.xlu0 %v5311_v40, %s5006_s11 }
  0xfa   : > { %v748_v30 = vpop.permute.xlu1 %747 }
  0xfb   : > { %831 = vst.msk [vmem:[#allocation3 + $0x68] sm:$0xff] %vm817_vm3, %v748_v30  ;;  %v754_v31 = vpop.permute.xlu0 %753 }
  0xfc   : > { %1121 = vrot.lane.b32.xlu1 %v5315_v41, %s5006_s11  ;;  %834 = vst.msk [vmem:[#allocation3 + $0x80] sm:$0xff] %vm817_vm3, %v754_v31  ;;  %v7555_v31 = vld [vmem:[#allocation40_spill] sm:$0xff] }
  0xfd   : > { %1127 = vrot.lane.b32.xlu0 %v5319_v42, %s5006_s11 }
  0xfe   : > { %v752_v32 = vpop.permute.xlu1 %751 }
  0xff   : > { %833 = vst.msk [vmem:[#allocation3 + $0x78] sm:$0xff] %vm817_vm3, %v752_v32  ;;  %v758_v39 = vpop.permute.xlu0 %757 }
 0x100   : > { %1125 = vrot.lane.b32.xlu1 %v5323_v43, %s5006_s11  ;;  %836 = vst.msk [vmem:[#allocation3 + $0x90] sm:$0xff] %vm817_vm3, %v758_v39 }
 0x101   : > { %1131 = vrot.lane.b32.xlu0 %v5327_v44, %s5006_s11 }
 0x102   : > { %v756_v40 = vpop.permute.xlu1 %755 }
 0x103   : > { %835 = vst.msk [vmem:[#allocation3 + $0x88] sm:$0xff] %vm817_vm3, %v756_v40  ;;  %v762_v41 = vpop.permute.xlu0 %761  ;;  %v7556_v40 = vld [vmem:[#allocation41_spill] sm:$0xff] }
 0x104   : > { %1129 = vrot.lane.b32.xlu1 %v5333_v47, %s5006_s11  ;;  %838 = vst.msk [vmem:[#allocation3 + $0xa0] sm:$0xff] %vm817_vm3, %v762_v41  ;;  %v7557_v41 = vld [vmem:[#allocation42_spill] sm:$0xff] }
 0x105   : > { %1135 = vrot.lane.b32.xlu0 %v5343_v50, %s5006_s11 }
 0x106   : > { %v760_v42 = vpop.permute.xlu1 %759 }
 0x107   : > { %837 = vst.msk [vmem:[#allocation3 + $0x98] sm:$0xff] %vm817_vm3, %v760_v42  ;;  %v766_v43 = vpop.permute.xlu0 %765 }
 0x108   : > { %1133 = vrot.lane.b32.xlu1 %v5353_v53, %s5006_s11  ;;  %840 = vst.msk [vmem:[#allocation3 + $0xb0] sm:$0xff] %vm817_vm3, %v766_v43 }
 0x109   : > { %1139 = vrot.lane.b32.xlu0 %v5363_v56, %s5006_s11 }
 0x10a   : > { %v764_v44 = vpop.permute.xlu1 %763 }
 0x10b   : > { %839 = vst.msk [vmem:[#allocation3 + $0xa8] sm:$0xff] %vm817_vm3, %v764_v44  ;;  %v770_v47 = vpop.permute.xlu0 %769  ;;  %v7558_v44 = vld [vmem:[#allocation43_spill] sm:$0xff] }
 0x10c   : > { %1137 = vrot.lane.b32.xlu1 %v5389_v63, %s5006_s11  ;;  %842 = vst.msk [vmem:[#allocation3 + $0xc0] sm:$0xff] %vm817_vm3, %v770_v47  ;;  %v7559_v47 = vld [vmem:[#allocation44_spill] sm:$0xff] }
 0x10d   : > { %1143 = vrot.lane.b32.xlu0 %v5439_v34, %s5006_s11 }
 0x10e   : > { %v768_v50 = vpop.permute.xlu1 %767 }
 0x10f   : > { %841 = vst.msk [vmem:[#allocation3 + $0xb8] sm:$0xff] %vm817_vm3, %v768_v50  ;;  %v774_v53 = vpop.permute.xlu0 %773 }
 0x110   : > { %1141 = vrot.lane.b32.xlu1 %v5449_v23, %s5006_s11  ;;  %844 = vst.msk [vmem:[#allocation3 + $0xd0] sm:$0xff] %vm817_vm3, %v774_v53 }
 0x111   : > { %1147 = vrot.lane.b32.xlu0 %v5457_v24, %s5006_s11 }
 0x112   : > { %v772_v56 = vpop.permute.xlu1 %771 }
 0x113   : > { %843 = vst.msk [vmem:[#allocation3 + $0xc8] sm:$0xff] %vm817_vm3, %v772_v56  ;;  %v778_v63 = vpop.permute.xlu0 %777  ;;  %v7560_v56 = vld [vmem:[#allocation45_spill] sm:$0xff] }
 0x114   : > { %1145 = vrot.lane.b32.xlu1 %v5465_v19, %s5006_s11  ;;  %846 = vst.msk [vmem:[#allocation3 + $0xe0] sm:$0xff] %vm817_vm3, %v778_v63  ;;  %v7561_v63 = vld [vmem:[#allocation46_spill] sm:$0xff] }
 0x115   : > { %1151 = vrot.lane.b32.xlu0 %v5473_v20, %s5006_s11 }
 0x116   : > { %v776_v34 = vpop.permute.xlu1 %775 }
 0x117   : > { %845 = vst.msk [vmem:[#allocation3 + $0xd8] sm:$0xff] %vm817_vm3, %v776_v34  ;;  %v782_v23 = vpop.permute.xlu0 %781 }
 0x118   : > { %1149 = vrot.lane.b32.xlu1 %v5481_v15, %s5006_s11  ;;  %848 = vst.msk [vmem:[#allocation3 + $0xf0] sm:$0xff] %vm817_vm3, %v782_v23  ;;  %v7551_v15 = vld [vmem:[#allocation34_spill] sm:$0xff] }
 0x119   : > { %1155 = vrot.lane.b32.xlu0 %v5489_v16, %s5006_s11 }
 0x11a   : > { %v780_v24 = vpop.permute.xlu1 %779 }
 0x11b   : > { %847 = vst.msk [vmem:[#allocation3 + $0xe8] sm:$0xff] %vm817_vm3, %v780_v24  ;;  %v915_v19 = vpop.permute.xlu0 %914  ;;  %v7562_v24 = vld [vmem:[#allocation47_spill] sm:$0xff] }
 0x11c   : > { %1153 = vrot.lane.b32.xlu1 %v5497_v11, %s5006_s11  ;;  %1011 = vst.msk [vmem:[#allocation3] sm:$0xff] %vm1010_vm4, %v915_v19  ;;  %v5850_v11 = vld [vmem:[#allocation2 + $0x181] sm:$0xff]  ;;  %v7563_v19 = vld [vmem:[#allocation48_spill] sm:$0xff] }
 0x11d   : > { %1159 = vrot.lane.b32.xlu0 %v5505_v12, %s5006_s11 }
 0x11e   : > { %v784_v20 = vpop.permute.xlu1 %783 }
 0x11f   : > { %849 = vst.msk [vmem:[#allocation3 + $0xf8] sm:$0xff] %vm817_vm3, %v784_v20  ;;  %v919_v10 = vpop.permute.xlu0 %918 }
 0x120   : > { %1157 = vrot.lane.b32.xlu1 %v7551_v15, %s5006_s11  ;;  %1013 = vst.msk [vmem:[#allocation3 + $0x10] sm:$0xff] %vm1010_vm4, %v919_v10  ;;  %v7564_v10 = vld [vmem:[#allocation49_spill] sm:$0xff] }
 0x121   : > { %1163 = vrot.lane.b32.xlu0 %v7552_v49, %s5006_s11 }
 0x122   : > { %v917_v16 = vpop.permute.xlu1 %916 }
 0x123   : > { %1012 = vst.msk [vmem:[#allocation3 + $0x8] sm:$0xff] %vm1010_vm4, %v917_v16  ;;  %v923_v12 = vpop.permute.xlu0 %922  ;;  %v7565_v16 = vld [vmem:[#allocation50_spill] sm:$0xff] }
 0x124   : > { %1161 = vrot.lane.b32.xlu1 %v7553_v1, %s5006_s11  ;;  %1015 = vst.msk [vmem:[#allocation3 + $0x20] sm:$0xff] %vm1010_vm4, %v923_v12  ;;  %v7566_v12 = vld [vmem:[#allocation51_spill] sm:$0xff] }
 0x125   : > { %1167 = vrot.lane.b32.xlu0 %v5850_v11, %s5006_s11 }
 0x126   : > { %v921_v25 = vpop.permute.xlu1 %920 }
 0x127   : > { %1014 = vst.msk [vmem:[#allocation3 + $0x18] sm:$0xff] %vm1010_vm4, %v921_v25  ;;  %v927_v26 = vpop.permute.xlu0 %926  ;;  %v7567_v25 = vld [vmem:[#allocation52_spill] sm:$0xff] }
 0x128   : > { %1165 = vrot.lane.b32.xlu1 %v7554_v46, %s5006_s11  ;;  %1017 = vst.msk [vmem:[#allocation3 + $0x30] sm:$0xff] %vm1010_vm4, %v927_v26 }
 0x129   : > { %1300 = vrot.lane.b32.xlu0 %v7555_v31, %s5007_s12  ;;  %v7569_v31 = vld [vmem:[#allocation54_spill] sm:$0xff] }
 0x12a   : > { %v925_v30 = vpop.permute.xlu1 %924 }
 0x12b   : > { %1016 = vst.msk [vmem:[#allocation3 + $0x28] sm:$0xff] %vm1010_vm4, %v925_v30  ;;  %v931_v32 = vpop.permute.xlu0 %930  ;;  %v7568_v30 = vld [vmem:[#allocation53_spill] sm:$0xff] }
 0x12c   : > { %1169 = vrot.lane.b32.xlu1 %v5860_v27, %s5006_s11  ;;  %1019 = vst.msk [vmem:[#allocation3 + $0x40] sm:$0xff] %vm1010_vm4, %v931_v32 }
 0x12d   : > { %1304 = vrot.lane.b32.xlu0 %v7556_v40, %s5007_s12  ;;  %v7570_v40 = vld [vmem:[#allocation55_spill] sm:$0xff] }
 0x12e   : > { %v929_v39 = vpop.permute.xlu1 %928 }
 0x12f   : > { %1018 = vst.msk [vmem:[#allocation3 + $0x38] sm:$0xff] %vm1010_vm4, %v929_v39  ;;  %v935_v42 = vpop.permute.xlu0 %934 }
 0x130   : > { %1302 = vrot.lane.b32.xlu1 %v7557_v41, %s5007_s12  ;;  %1021 = vst.msk [vmem:[#allocation3 + $0x50] sm:$0xff] %vm1010_vm4, %v935_v42  ;;  %v7571_v41 = vld [vmem:[#allocation56_spill] sm:$0xff] }
 0x131   : > { %1308 = vrot.lane.b32.xlu0 %v7558_v44, %s5007_s12  ;;  %v7572_v44 = vld [vmem:[#allocation57_spill] sm:$0xff] }
 0x132   : > { %v933_v43 = vpop.permute.xlu1 %932 }
 0x133   : > { %1020 = vst.msk [vmem:[#allocation3 + $0x48] sm:$0xff] %vm1010_vm4, %v933_v43  ;;  %v939_v50 = vpop.permute.xlu0 %938 }
 0x134   : > { %1306 = vrot.lane.b32.xlu1 %v7559_v47, %s5007_s12  ;;  %1023 = vst.msk [vmem:[#allocation3 + $0x60] sm:$0xff] %vm1010_vm4, %v939_v50  ;;  %v7573_v47 = vld [vmem:[#allocation58_spill] sm:$0xff] }
 0x135   : > { %1312 = vrot.lane.b32.xlu0 %v7560_v56, %s5007_s12  ;;  %v7574_v56 = vld [vmem:[#allocation59_spill] sm:$0xff] }
 0x136   : > { %v937_v53 = vpop.permute.xlu1 %936 }
 0x137   : > { %1022 = vst.msk [vmem:[#allocation3 + $0x58] sm:$0xff] %vm1010_vm4, %v937_v53  ;;  %v943_v34 = vpop.permute.xlu0 %942 }
 0x138   : > { %1310 = vrot.lane.b32.xlu1 %v7561_v63, %s5007_s12  ;;  %1025 = vst.msk [vmem:[#allocation3 + $0x70] sm:$0xff] %vm1010_vm4, %v943_v34  ;;  %v7575_v63 = vld [vmem:[#allocation60_spill] sm:$0xff] }
 0x139   : > { %1316 = vrot.lane.b32.xlu0 %v7562_v24, %s5007_s12  ;;  %v7576_v24 = vld [vmem:[#allocation61_spill] sm:$0xff] }
 0x13a   : > { %v941_v23 = vpop.permute.xlu1 %940 }
 0x13b   : > { %1024 = vst.msk [vmem:[#allocation3 + $0x68] sm:$0xff] %vm1010_vm4, %v941_v23  ;;  %v947_v20 = vpop.permute.xlu0 %946 }
 0x13c   : > { %1314 = vrot.lane.b32.xlu1 %v7563_v19, %s5007_s12  ;;  %1027 = vst.msk [vmem:[#allocation3 + $0x80] sm:$0xff] %vm1010_vm4, %v947_v20  ;;  %v7577_v19 = vld [vmem:[#allocation62_spill] sm:$0xff] }
 0x13d   : > { %1320 = vrot.lane.b32.xlu0 %v7564_v10, %s5007_s12  ;;  %v7578_v10 = vld [vmem:[#allocation63_spill] sm:$0xff] }
 0x13e   : > { %v945_v15 = vpop.permute.xlu1 %944 }
 0x13f   : > { %1026 = vst.msk [vmem:[#allocation3 + $0x78] sm:$0xff] %vm1010_vm4, %v945_v15  ;;  %v951_v49 = vpop.permute.xlu0 %950 }
 0x140   : > { %1318 = vrot.lane.b32.xlu1 %v7565_v16, %s5007_s12  ;;  %1029 = vst.msk [vmem:[#allocation3 + $0x90] sm:$0xff] %vm1010_vm4, %v951_v49  ;;  %v7579_v16 = vld [vmem:[#allocation64_spill] sm:$0xff] }
 0x141   : > { %1324 = vrot.lane.b32.xlu0 %v7566_v12, %s5007_s12  ;;  %v7580_v12 = vld [vmem:[#allocation65_spill] sm:$0xff] }
 0x142   : > { %v949_v1 = vpop.permute.xlu1 %948 }
 0x143   : > { %1028 = vst.msk [vmem:[#allocation3 + $0x88] sm:$0xff] %vm1010_vm4, %v949_v1  ;;  %v955_v46 = vpop.permute.xlu0 %954 }
 0x144   : > { %1322 = vrot.lane.b32.xlu1 %v7567_v25, %s5007_s12  ;;  %1031 = vst.msk [vmem:[#allocation3 + $0xa0] sm:$0xff] %vm1010_vm4, %v955_v46 }
 0x145   : > { %1328 = vrot.lane.b32.xlu0 %v7568_v30, %s5007_s12 }
 0x146   : > { %v953_v26 = vpop.permute.xlu1 %952 }
 0x147   : > { %1030 = vst.msk [vmem:[#allocation3 + $0x98] sm:$0xff] %vm1010_vm4, %v953_v26  ;;  %v959_v32 = vpop.permute.xlu0 %958  ;;  %v5950_v26 = vld [vmem:[#allocation2 + $0x182] sm:$0xff] }
 0x148   : > { %1326 = vrot.lane.b32.xlu1 %v7569_v31, %s5007_s12  ;;  %1033 = vst.msk [vmem:[#allocation3 + $0xb0] sm:$0xff] %vm1010_vm4, %v959_v32  ;;  %v5960_v31 = vld [vmem:[#allocation2 + $0x18a] sm:$0xff] }
 0x149   : > { %1332 = vrot.lane.b32.xlu0 %v7570_v40, %s5007_s12 }
 0x14a   : > { %v957_v39 = vpop.permute.xlu1 %956 }
 0x14b   : > { %1032 = vst.msk [vmem:[#allocation3 + $0xa8] sm:$0xff] %vm1010_vm4, %v957_v39  ;;  %v963_v42 = vpop.permute.xlu0 %962 }
 0x14c   : > { %1330 = vrot.lane.b32.xlu1 %v7571_v41, %s5007_s12  ;;  %1035 = vst.msk [vmem:[#allocation3 + $0xc0] sm:$0xff] %vm1010_vm4, %v963_v42 }
 0x14d   : > { %1336 = vrot.lane.b32.xlu0 %v7572_v44, %s5007_s12 }
 0x14e   : > { %v961_v43 = vpop.permute.xlu1 %960 }
 0x14f   : > { %1034 = vst.msk [vmem:[#allocation3 + $0xb8] sm:$0xff] %vm1010_vm4, %v961_v43  ;;  %v967_v50 = vpop.permute.xlu0 %966 }
 0x150   : > { %1334 = vrot.lane.b32.xlu1 %v7573_v47, %s5007_s12  ;;  %1037 = vst.msk [vmem:[#allocation3 + $0xd0] sm:$0xff] %vm1010_vm4, %v967_v50  ;;  %v1624_v47 = vld [vmem:[#allocation2 + $0x39] sm:$0xff] }
 0x151   : > { %1340 = vrot.lane.b32.xlu0 %v7574_v56, %s5007_s12  ;;  %v1626_v56 = vld [vmem:[#allocation2 + $0x51] sm:$0xff] }
 0x152   : > { %v965_v53 = vpop.permute.xlu1 %964 }
 0x153   : > { %1036 = vst.msk [vmem:[#allocation3 + $0xc8] sm:$0xff] %vm1010_vm4, %v965_v53  ;;  %v971_v34 = vpop.permute.xlu0 %970 }
 0x154   : > { %1338 = vrot.lane.b32.xlu1 %v7575_v63, %s5007_s12  ;;  %1039 = vst.msk [vmem:[#allocation3 + $0xe0] sm:$0xff] %vm1010_vm4, %v971_v34  ;;  %v1629_v34 = vld [vmem:[#allocation2 + $0x79] sm:$0xff] }
 0x155   : > { %1344 = vrot.lane.b32.xlu0 %v7576_v24, %s5007_s12  ;;  %v1628_v24 = vld [vmem:[#allocation2 + $0x69] sm:$0xff] }
 0x156   : > { %v969_v23 = vpop.permute.xlu1 %968 }
 0x157   : > { %1038 = vst.msk [vmem:[#allocation3 + $0xd8] sm:$0xff] %vm1010_vm4, %v969_v23  ;;  %v975_v20 = vpop.permute.xlu0 %974 }
 0x158   : > { %1342 = vrot.lane.b32.xlu1 %v7577_v19, %s5007_s12  ;;  %1041 = vst.msk [vmem:[#allocation3 + $0xf0] sm:$0xff] %vm1010_vm4, %v975_v20  ;;  %v1631_v20 = vld [vmem:[#allocation2 + $0x91] sm:$0xff] }
 0x159   : > { %1348 = vrot.lane.b32.xlu0 %v7578_v10, %s5007_s12  ;;  %v1630_v10 = vld [vmem:[#allocation2 + $0x81] sm:$0xff] }
 0x15a   : > { %v973_v15 = vpop.permute.xlu1 %972 }
 0x15b   : > { %1040 = vst.msk [vmem:[#allocation3 + $0xe8] sm:$0xff] %vm1010_vm4, %v973_v15  ;;  %v1108_v49 = vpop.permute.xlu0 %1107 }
 0x15c   : > { %1346 = vrot.lane.b32.xlu1 %v7579_v16, %s5007_s12  ;;  %1204 = vst.msk [vmem:[#allocation3] sm:$0xff] %vm1203_vm5, %v1108_v49  ;;  %v1633_v49 = vld [vmem:[#allocation2 + $0xa9] sm:$0xff] }
 0x15d   : > { %1352 = vrot.lane.b32.xlu0 %v5638_v5, %s5007_s12 }
 0x15e   : > { %v977_v1 = vpop.permute.xlu1 %976 }
 0x15f   : > { %1042 = vst.msk [vmem:[#allocation3 + $0xf8] sm:$0xff] %vm1010_vm4, %v977_v1  ;;  %v1112_v25 = vpop.permute.xlu0 %1111  ;;  %v2045_v1 = vld [vmem:[%s7419_s1 + $0x20] sm:$0xf] }
 0x160   : > { %1350 = vrot.lane.b32.xlu1 %v7580_v12, %s5007_s12  ;;  %1206 = vst.msk [vmem:[#allocation3 + $0x10] sm:$0xff] %vm1203_vm5, %v1112_v25  ;;  %4861 = vmatprep.subr.msk.mxu0 %vm2143_vm7, %v2045_v1  ;;  %v1632_v25 = vld [vmem:[#allocation2 + $0x99] sm:$0xff] }
 0x161   : > { %1356 = vrot.lane.b32.xlu0 %v5648_v6, %s5007_s12  ;;  %4862 = vmatpush3.msk.msra.mxu0 %vm2143_vm7, %v2045_v1  ;;  %v1834_v1 = vld [vmem:[#allocation2 + $0x10a] sm:$0xff] }
 0x162   : > { %v1110_v46 = vpop.permute.xlu1 %1109 }
 0x163   : > { %1205 = vst.msk [vmem:[#allocation3 + $0x8] sm:$0xff] %vm1203_vm5, %v1110_v46  ;;  %v1116_v5 = vpop.permute.xlu0 %1115 }
 0x164   : > { %1354 = vrot.lane.b32.xlu1 %v5652_v4, %s5007_s12  ;;  %1208 = vst.msk [vmem:[#allocation3 + $0x20] sm:$0xff] %vm1203_vm5, %v1116_v5  ;;  %v2044_v5 = vld [vmem:[%s7419_s1 + $0x18] sm:$0xff] }
 0x165   : > { %1360 = vrot.lane.b32.xlu0 %v5950_v26, %s5007_s12  ;;  %4863 = vmatprep.subr.mxu0 %v2044_v5 }
 0x166   : > { %v1114_v30 = vpop.permute.xlu1 %1113  ;;  %4864 = vmatpush3.msra.mxu0 %v2044_v5  ;;  %v1643_v5 = vld [vmem:[#allocation2 + $0x121] sm:$0xff] }
 0x167   : > { %1207 = vst.msk [vmem:[#allocation3 + $0x18] sm:$0xff] %vm1203_vm5, %v1114_v30  ;;  %v1120_v6 = vpop.permute.xlu0 %1119  ;;  %v1635_v30 = vld [vmem:[#allocation2 + $0xc1] sm:$0xff] }
 0x168   : > { %1358 = vrot.lane.b32.xlu1 %v5660_v9, %s5007_s12  ;;  %1210 = vst.msk [vmem:[#allocation3 + $0x30] sm:$0xff] %vm1203_vm5, %v1120_v6  ;;  %v2043_v6 = vld [vmem:[%s7419_s1 + $0x10] sm:$0xff] }
 0x169   : > { %1494 = vrot.lane.b32.xlu0 %v5347_v51, %s5008_s13  ;;  %4865 = vmatprep.subr.mxu0 %v2043_v6 }
 0x16a   : > { %v1118_v32 = vpop.permute.xlu1 %1117  ;;  %4866 = vmatpush3.msra.mxu0 %v2043_v6  ;;  %v1835_v6 = vld [vmem:[#allocation2 + $0x112] sm:$0xff] }
 0x16b   : > { %1209 = vst.msk [vmem:[#allocation3 + $0x28] sm:$0xff] %vm1203_vm5, %v1118_v32  ;;  %v1124_v4 = vpop.permute.xlu0 %1123 }
 0x16c   : > { %1362 = vrot.lane.b32.xlu1 %v5960_v31, %s5007_s12  ;;  %1212 = vst.msk [vmem:[#allocation3 + $0x40] sm:$0xff] %vm1203_vm5, %v1124_v4  ;;  %v1634_v4 = vld [vmem:[#allocation2 + $0xb1] sm:$0xff] }
 0x16d   : > { %1498 = vrot.lane.b32.xlu0 %v5359_v54, %s5008_s13 }
 0x16e   : > { %v1122_v39 = vpop.permute.xlu1 %1121 }
 0x16f   : > { %1211 = vst.msk [vmem:[#allocation3 + $0x38] sm:$0xff] %vm1203_vm5, %v1122_v39  ;;  %v1128_v9 = vpop.permute.xlu0 %1127 }
 0x170   : > { %1496 = vrot.lane.b32.xlu1 %v5349_v52, %s5008_s13  ;;  %1214 = vst.msk [vmem:[#allocation3 + $0x50] sm:$0xff] %vm1203_vm5, %v1128_v9  ;;  %v2042_v9 = vld [vmem:[%s7419_s1 + $0x8] sm:$0xff] }
 0x171   : > { %1502 = vrot.lane.b32.xlu0 %v5369_v57, %s5008_s13  ;;  %4867 = vmatprep.subr.mxu0 %v2042_v9 }
 0x172   : > { %v1126_v51 = vpop.permute.xlu1 %1125  ;;  %4868 = vmatpush3.msra.mxu0 %v2042_v9  ;;  %v1644_v9 = vld [vmem:[#allocation2 + $0x129] sm:$0xff] }
 0x173   : > { %1213 = vst.msk [vmem:[#allocation3 + $0x48] sm:$0xff] %vm1203_vm5, %v1126_v51  ;;  %v1132_v40 = vpop.permute.xlu0 %1131  ;;  %v1816_v51 = vld [vmem:[#allocation2 + $0x32] sm:$0xff] }
 0x174   : > { %1500 = vrot.lane.b32.xlu1 %v5361_v55, %s5008_s13  ;;  %1216 = vst.msk [vmem:[#allocation3 + $0x60] sm:$0xff] %vm1203_vm5, %v1132_v40  ;;  %v2041_v40 = vld [vmem:[%s7419_s1] sm:$0xff] }
 0x175   : > { %1506 = vrot.lane.b32.xlu0 %v5373_v59, %s5008_s13  ;;  %4869 = vmatprep.subr.mxu0 %v2041_v40 }
 0x176   : > { %v1130_v54 = vpop.permute.xlu1 %1129  ;;  %4870 = vmatpush3.msra.mxu0 %v2041_v40  ;;  %v1645_v40 = vld [vmem:[#allocation2 + $0x139] sm:$0xff] }
 0x177   : > { %1215 = vst.msk [vmem:[#allocation3 + $0x58] sm:$0xff] %vm1203_vm5, %v1130_v54  ;;  %v1136_v52 = vpop.permute.xlu0 %1135 }
 0x178   : > { %1504 = vrot.lane.b32.xlu1 %v5371_v58, %s5008_s13  ;;  %1218 = vst.msk [vmem:[#allocation3 + $0x70] sm:$0xff] %vm1203_vm5, %v1136_v52  ;;  %v1636_v52 = vld [vmem:[#allocation2 + $0xc9] sm:$0xff] }
 0x179   : > { %1510 = vrot.lane.b32.xlu0 %v5385_v61, %s5008_s13 }
 0x17a   : > { %v1134_v57 = vpop.permute.xlu1 %1133 }
 0x17b   : > { %1217 = vst.msk [vmem:[#allocation3 + $0x68] sm:$0xff] %vm1203_vm5, %v1134_v57  ;;  %v1140_v55 = vpop.permute.xlu0 %1139 }
 0x17c   : > { %1508 = vrot.lane.b32.xlu1 %v5383_v60, %s5008_s13  ;;  %1220 = vst.msk [vmem:[#allocation3 + $0x80] sm:$0xff] %vm1203_vm5, %v1140_v55  ;;  %v1818_v55 = vld [vmem:[#allocation2 + $0x4a] sm:$0xff] }
 0x17d   : > { %1514 = vrot.lane.b32.xlu0 %v5397_v0, %s5008_s13 }
 0x17e   : > { %v1138_v59 = vpop.permute.xlu1 %1137 }
 0x17f   : > { %1219 = vst.msk [vmem:[#allocation3 + $0x78] sm:$0xff] %vm1203_vm5, %v1138_v59  ;;  %v1144_v58 = vpop.permute.xlu0 %1143 }
 0x180   : > { %1512 = vrot.lane.b32.xlu1 %v5387_v62, %s5008_s13  ;;  %1222 = vst.msk [vmem:[#allocation3 + $0x90] sm:$0xff] %vm1203_vm5, %v1144_v58  ;;  %v1817_v58 = vld [vmem:[#allocation2 + $0x3a] sm:$0xff] }
 0x181   : > { %1518 = vrot.lane.b32.xlu0 %v5401_v8, %s5008_s13 }
 0x182   : > { %v1142_v61 = vpop.permute.xlu1 %1141 }
 0x183   : > { %1221 = vst.msk [vmem:[#allocation3 + $0x88] sm:$0xff] %vm1203_vm5, %v1142_v61  ;;  %v1148_v60 = vpop.permute.xlu0 %1147 }
 0x184   : > { %1516 = vrot.lane.b32.xlu1 %v5399_v7, %s5008_s13  ;;  %1224 = vst.msk [vmem:[#allocation3 + $0xa0] sm:$0xff] %vm1203_vm5, %v1148_v60  ;;  %v1820_v60 = vld [vmem:[#allocation2 + $0x62] sm:$0xff] }
 0x185   : > { %1522 = vrot.lane.b32.xlu0 %v5413_v48, %s5008_s13 }
 0x186   : > { %v1146_v0 = vpop.permute.xlu1 %1145 }
 0x187   : > { %1223 = vst.msk [vmem:[#allocation3 + $0x98] sm:$0xff] %vm1203_vm5, %v1146_v0  ;;  %v1152_v62 = vpop.permute.xlu0 %1151 }
 0x188   : > { %1520 = vrot.lane.b32.xlu1 %v5411_v45, %s5008_s13  ;;  %1226 = vst.msk [vmem:[#allocation3 + $0xb0] sm:$0xff] %vm1203_vm5, %v1152_v62  ;;  %v1819_v62 = vld [vmem:[#allocation2 + $0x52] sm:$0xff] }
 0x189   : > { %1526 = vrot.lane.b32.xlu0 %v5423_v38, %s5008_s13 }
 0x18a   : > { %v1150_v8 = vpop.permute.xlu1 %1149 }
 0x18b   : > { %1225 = vst.msk [vmem:[#allocation3 + $0xa8] sm:$0xff] %vm1203_vm5, %v1150_v8  ;;  %v1156_v7 = vpop.permute.xlu0 %1155 }
 0x18c   : > { %1524 = vrot.lane.b32.xlu1 %v5415_v37, %s5008_s13  ;;  %1228 = vst.msk [vmem:[#allocation3 + $0xc0] sm:$0xff] %vm1203_vm5, %v1156_v7  ;;  %v1822_v7 = vld [vmem:[#allocation2 + $0x7a] sm:$0xff] }
 0x18d   : > { %1530 = vrot.lane.b32.xlu0 %v5427_v36, %s5008_s13 }
 0x18e   : > { %v1154_v48 = vpop.permute.xlu1 %1153 }
 0x18f   : > { %1227 = vst.msk [vmem:[#allocation3 + $0xb8] sm:$0xff] %vm1203_vm5, %v1154_v48  ;;  %v1160_v45 = vpop.permute.xlu0 %1159 }
 0x190   : > { %1528 = vrot.lane.b32.xlu1 %v5425_v35, %s5008_s13  ;;  %1230 = vst.msk [vmem:[#allocation3 + $0xd0] sm:$0xff] %vm1203_vm5, %v1160_v45  ;;  %v1821_v45 = vld [vmem:[#allocation2 + $0x6a] sm:$0xff] }
 0x191   : > { %1534 = vrot.lane.b32.xlu0 %v5445_v28, %s5008_s13 }
 0x192   : > { %v1158_v38 = vpop.permute.xlu1 %1157 }
 0x193   : > { %1229 = vst.msk [vmem:[#allocation3 + $0xc8] sm:$0xff] %vm1203_vm5, %v1158_v38  ;;  %v1164_v37 = vpop.permute.xlu0 %1163 }
 0x194   : > { %1532 = vrot.lane.b32.xlu1 %v5437_v33, %s5008_s13  ;;  %1232 = vst.msk [vmem:[#allocation3 + $0xe0] sm:$0xff] %vm1203_vm5, %v1164_v37  ;;  %v1824_v37 = vld [vmem:[#allocation2 + $0x92] sm:$0xff] }
 0x195   : > { %1538 = vrot.lane.b32.xlu0 %v5461_v21, %s5008_s13 }
 0x196   : > { %v1162_v36 = vpop.permute.xlu1 %1161 }
 0x197   : > { %1231 = vst.msk [vmem:[#allocation3 + $0xd8] sm:$0xff] %vm1203_vm5, %v1162_v36  ;;  %v1168_v35 = vpop.permute.xlu0 %1167 }
 0x198   : > { %1536 = vrot.lane.b32.xlu1 %v5447_v29, %s5008_s13  ;;  %1234 = vst.msk [vmem:[#allocation3 + $0xf0] sm:$0xff] %vm1203_vm5, %v1168_v35  ;;  %v1823_v35 = vld [vmem:[#allocation2 + $0x82] sm:$0xff] }
 0x199   : > { %1542 = vrot.lane.b32.xlu0 %v5477_v17, %s5008_s13 }
 0x19a   : > { %v1166_v28 = vpop.permute.xlu1 %1165 }
 0x19b   : > { %1233 = vst.msk [vmem:[#allocation3 + $0xe8] sm:$0xff] %vm1203_vm5, %v1166_v28  ;;  %v1301_v33 = vpop.permute.xlu0 %1300 }
 0x19c   : > { %1540 = vrot.lane.b32.xlu1 %v5463_v22, %s5008_s13  ;;  %1397 = vst.msk [vmem:[#allocation3] sm:$0xff] %vm1396_vm6, %v1301_v33  ;;  %v1460_v22 = vld [vmem:[#allocation2 + $0x198] sm:$0xff]  ;;  %v1826_v33 = vld [vmem:[#allocation2 + $0xaa] sm:$0xff] }
 0x19d   : > { %1546 = vrot.lane.b32.xlu0 %v5493_v13, %s5008_s13 }
 0x19e   : > { %v1170_v21 = vpop.permute.xlu1 %1169 }
 0x19f   : > { %1235 = vst.msk [vmem:[#allocation3 + $0xf8] sm:$0xff] %vm1203_vm5, %v1170_v21  ;;  %v1305_v29 = vpop.permute.xlu0 %1304 }
 0x1a0   : > { %1544 = vrot.lane.b32.xlu1 %v5479_v18, %s5008_s13  ;;  %1399 = vst.msk [vmem:[#allocation3 + $0x10] sm:$0xff] %vm1396_vm6, %v1305_v29  ;;  %v1623_v18 = vld [vmem:[#allocation2 + $0x31] sm:$0xff]  ;;  %v1825_v29 = vld [vmem:[#allocation2 + $0x9a] sm:$0xff] }
 0x1a1   : > { %1550 = vrot.lane.b32.xlu0 %v5750_v2, %s5008_s13  ;;  %v1461_v2 = vld [vmem:[#allocation2 + $0x1a0] sm:$0xff] }
 0x1a2   : > { %v1303_v17 = vpop.permute.xlu1 %1302 }
 0x1a3   : > { %1398 = vst.msk [vmem:[#allocation3 + $0x8] sm:$0xff] %vm1396_vm6, %v1303_v17  ;;  %v1309_v41 = vpop.permute.xlu0 %1308 }
 0x1a4   : > { %1548 = vrot.lane.b32.xlu1 %v5495_v14, %s5008_s13  ;;  %1401 = vst.msk [vmem:[#allocation3 + $0x20] sm:$0xff] %vm1396_vm6, %v1309_v41  ;;  %v1625_v14 = vld [vmem:[#allocation2 + $0x49] sm:$0xff] }
 0x1a5   : > { %1554 = vrot.lane.b32.xlu0 %v1460_v22, %s5008_s13  ;;  %v1828_v22 = vld [vmem:[#allocation2 + $0xc2] sm:$0xff] }
 0x1a6   : > { %v1307_v13 = vpop.permute.xlu1 %1306 }
 0x1a7   : > { %1400 = vst.msk [vmem:[#allocation3 + $0x18] sm:$0xff] %vm1396_vm6, %v1307_v13  ;;  %v1313_v42 = vpop.permute.xlu0 %1312  ;;  %v1827_v13 = vld [vmem:[#allocation2 + $0xb2] sm:$0xff] }
 0x1a8   : > { %1552 = vrot.lane.b32.xlu1 %v5760_v3, %s5008_s13  ;;  %1403 = vst.msk [vmem:[#allocation3 + $0x30] sm:$0xff] %vm1396_vm6, %v1313_v42  ;;  %v1627_v3 = vld [vmem:[#allocation2 + $0x61] sm:$0xff]  ;;  %v1637_v42 = vld [vmem:[#allocation2 + $0xd9] sm:$0xff] }
 0x1a9   : > { %1687 = vrot.lane.b32.xlu0 %v1623_v18, %s5009_s14 }
 0x1aa   : > { %v1311_v43 = vpop.permute.xlu1 %1310 }
 0x1ab   : > { %1402 = vst.msk [vmem:[#allocation3 + $0x28] sm:$0xff] %vm1396_vm6, %v1311_v43  ;;  %v1317_v44 = vpop.permute.xlu0 %1316  ;;  %v1829_v43 = vld [vmem:[#allocation2 + $0xca] sm:$0xff] }
 0x1ac   : > { %1556 = vrot.lane.b32.xlu1 %v1461_v2, %s5008_s13  ;;  %1405 = vst.msk [vmem:[#allocation3 + $0x40] sm:$0xff] %vm1396_vm6, %v1317_v44  ;;  %v1830_v44 = vld [vmem:[#allocation2 + $0xda] sm:$0xff] }
 0x1ad   : > { %1691 = vrot.lane.b32.xlu0 %v1625_v14, %s5009_s14 }
 0x1ae   : > { %v1315_v50 = vpop.permute.xlu1 %1314 }
 0x1af   : > { %1404 = vst.msk [vmem:[#allocation3 + $0x38] sm:$0xff] %vm1396_vm6, %v1315_v50  ;;  %v1321_v53 = vpop.permute.xlu0 %1320  ;;  %v1638_v50 = vld [vmem:[#allocation2 + $0xe1] sm:$0xff] }
 0x1b0   : > { %1689 = vrot.lane.b32.xlu1 %v1624_v47, %s5009_s14  ;;  %1407 = vst.msk [vmem:[#allocation3 + $0x50] sm:$0xff] %vm1396_vm6, %v1321_v53  ;;  %v1639_v53 = vld [vmem:[#allocation2 + $0xf1] sm:$0xff] }
 0x1b1   : > { %1695 = vrot.lane.b32.xlu0 %v1627_v3, %s5009_s14 }
 0x1b2   : > { %v1319_v63 = vpop.permute.xlu1 %1318 }
 0x1b3   : > { %1406 = vst.msk [vmem:[#allocation3 + $0x48] sm:$0xff] %vm1396_vm6, %v1319_v63  ;;  %v1325_v23 = vpop.permute.xlu0 %1324  ;;  %v1831_v63 = vld [vmem:[#allocation2 + $0xe2] sm:$0xff] }
 0x1b4   : > { %1693 = vrot.lane.b32.xlu1 %v1626_v56, %s5009_s14  ;;  %1409 = vst.msk [vmem:[#allocation3 + $0x60] sm:$0xff] %vm1396_vm6, %v1325_v23  ;;  %v1832_v23 = vld [vmem:[#allocation2 + $0xf2] sm:$0xff] }
 0x1b5   : > { %1699 = vrot.lane.b32.xlu0 %v1629_v34, %s5009_s14 }
 0x1b6   : > { %v1323_v19 = vpop.permute.xlu1 %1322 }
 0x1b7   : > { %1408 = vst.msk [vmem:[#allocation3 + $0x58] sm:$0xff] %vm1396_vm6, %v1323_v19  ;;  %v1329_v15 = vpop.permute.xlu0 %1328  ;;  %v1640_v19 = vld [vmem:[#allocation2 + $0xf9] sm:$0xff] }
 0x1b8   : > { %1697 = vrot.lane.b32.xlu1 %v1628_v24, %s5009_s14  ;;  %1411 = vst.msk [vmem:[#allocation3 + $0x70] sm:$0xff] %vm1396_vm6, %v1329_v15  ;;  %v1641_v15 = vld [vmem:[#allocation2 + $0x109] sm:$0xff] }
 0x1b9   : > { %1703 = vrot.lane.b32.xlu0 %v1631_v20, %s5009_s14 }
 0x1ba   : > { %v1327_v16 = vpop.permute.xlu1 %1326 }
 0x1bb   : > { %1410 = vst.msk [vmem:[#allocation3 + $0x68] sm:$0xff] %vm1396_vm6, %v1327_v16  ;;  %v1333_v12 = vpop.permute.xlu0 %1332  ;;  %v1833_v16 = vld [vmem:[#allocation2 + $0xfa] sm:$0xff] }
 0x1bc   : > { %1701 = vrot.lane.b32.xlu1 %v1630_v10, %s5009_s14  ;;  %1413 = vst.msk [vmem:[#allocation3 + $0x80] sm:$0xff] %vm1396_vm6, %v1333_v12 }
 0x1bd   : > { %1707 = vrot.lane.b32.xlu0 %v1633_v49, %s5009_s14 }
 0x1be   : > { %v1331_v46 = vpop.permute.xlu1 %1330 }
 0x1bf   : > { %1412 = vst.msk [vmem:[#allocation3 + $0x78] sm:$0xff] %vm1396_vm6, %v1331_v46  ;;  %v1337_v32 = vpop.permute.xlu0 %1336 }
 0x1c0   : > { %1705 = vrot.lane.b32.xlu1 %v1632_v25, %s5009_s14  ;;  %1415 = vst.msk [vmem:[#allocation3 + $0x90] sm:$0xff] %vm1396_vm6, %v1337_v32  ;;  %v1642_v25 = vld [vmem:[#allocation2 + $0x111] sm:$0xff] }
 0x1c1   : > { %1711 = vrot.lane.b32.xlu0 %v1635_v30, %s5009_s14 }
 0x1c2   : > { %v1335_v39 = vpop.permute.xlu1 %1334 }
 0x1c3   : > { %1414 = vst.msk [vmem:[#allocation3 + $0x88] sm:$0xff] %vm1396_vm6, %v1335_v39  ;;  %v1341_v54 = vpop.permute.xlu0 %1340 }
 0x1c4   : > { %1709 = vrot.lane.b32.xlu1 %v1634_v4, %s5009_s14  ;;  %1417 = vst.msk [vmem:[#allocation3 + $0xa0] sm:$0xff] %vm1396_vm6, %v1341_v54  ;;  %v1836_v4 = vld [vmem:[#allocation2 + $0x122] sm:$0xff] }
 0x1c5   : > { %1880 = vrot.lane.b32.xlu0 %v1816_v51, %s5010_s28 }
 0x1c6   : > { %v1339_v57 = vpop.permute.xlu1 %1338 }
 0x1c7   : > { %1416 = vst.msk [vmem:[#allocation3 + $0x98] sm:$0xff] %vm1396_vm6, %v1339_v57  ;;  %v1345_v59 = vpop.permute.xlu0 %1344 }
 0x1c8   : > { %1713 = vrot.lane.b32.xlu1 %v1636_v52, %s5009_s14  ;;  %1419 = vst.msk [vmem:[#allocation3 + $0xb0] sm:$0xff] %vm1396_vm6, %v1345_v59  ;;  %v1837_v52 = vld [vmem:[#allocation2 + $0x12a] sm:$0xff] }
 0x1c9   : > { %1884 = vrot.lane.b32.xlu0 %v1818_v55, %s5010_s28  ;;  %v1838_v55 = vld [vmem:[#allocation2 + $0x13a] sm:$0xff] }
 0x1ca   : > { %v1343_v61 = vpop.permute.xlu1 %1342 }
 0x1cb   : > { %1418 = vst.msk [vmem:[#allocation3 + $0xa8] sm:$0xff] %vm1396_vm6, %v1343_v61  ;;  %v1349_v0 = vpop.permute.xlu0 %1348 }
 0x1cc   : > { %1882 = vrot.lane.b32.xlu1 %v1817_v58, %s5010_s28  ;;  %1421 = vst.msk [vmem:[#allocation3 + $0xc0] sm:$0xff] %vm1396_vm6, %v1349_v0  ;;  %v1646_v58 = vld [vmem:[#allocation2 + $0x141] sm:$0xff] }
 0x1cd   : > { %1888 = vrot.lane.b32.xlu0 %v1820_v60, %s5010_s28  ;;  %v1647_v60 = vld [vmem:[#allocation2 + $0x151] sm:$0xff] }
 0x1ce   : > { %v1347_v8 = vpop.permute.xlu1 %1346 }
 0x1cf   : > { %1420 = vst.msk [vmem:[#allocation3 + $0xb8] sm:$0xff] %vm1396_vm6, %v1347_v8  ;;  %v1353_v48 = vpop.permute.xlu0 %1352 }
 0x1d0   : > { %1886 = vrot.lane.b32.xlu1 %v1819_v62, %s5010_s28  ;;  %1423 = vst.msk [vmem:[#allocation3 + $0xd0] sm:$0xff] %vm1396_vm6, %v1353_v48  ;;  %v1839_v62 = vld [vmem:[#allocation2 + $0x142] sm:$0xff] }
 0x1d1   : > { %1892 = vrot.lane.b32.xlu0 %v1822_v7, %s5010_s28  ;;  %v1840_v7 = vld [vmem:[#allocation2 + $0x152] sm:$0xff] }
 0x1d2   : > { %v1351_v38 = vpop.permute.xlu1 %1350 }
 0x1d3   : > { %1422 = vst.msk [vmem:[#allocation3 + $0xc8] sm:$0xff] %vm1396_vm6, %v1351_v38  ;;  %v1357_v36 = vpop.permute.xlu0 %1356 }
 0x1d4   : > { %1890 = vrot.lane.b32.xlu1 %v1821_v45, %s5010_s28  ;;  %1425 = vst.msk [vmem:[#allocation3 + $0xe0] sm:$0xff] %vm1396_vm6, %v1357_v36  ;;  %v1648_v45 = vld [vmem:[#allocation2 + $0x159] sm:$0xff] }
 0x1d5   : > { %1896 = vrot.lane.b32.xlu0 %v1824_v37, %s5010_s28  ;;  %v1649_v37 = vld [vmem:[#allocation2 + $0x169] sm:$0xff] }
 0x1d6   : > { %v1355_v28 = vpop.permute.xlu1 %1354 }
 0x1d7   : > { %1424 = vst.msk [vmem:[#allocation3 + $0xd8] sm:$0xff] %vm1396_vm6, %v1355_v28  ;;  %v1361_v21 = vpop.permute.xlu0 %1360 }
 0x1d8   : > { %1894 = vrot.lane.b32.xlu1 %v1823_v35, %s5010_s28  ;;  %1427 = vst.msk [vmem:[#allocation3 + $0xf0] sm:$0xff] %vm1396_vm6, %v1361_v21  ;;  %v1841_v35 = vld [vmem:[#allocation2 + $0x15a] sm:$0xff] }
 0x1d9   : > { %1900 = vrot.lane.b32.xlu0 %v1826_v33, %s5010_s28  ;;  %v1842_v33 = vld [vmem:[#allocation2 + $0x16a] sm:$0xff] }
 0x1da   : > { %v1359_v17 = vpop.permute.xlu1 %1358 }
 0x1db   : > { %1426 = vst.msk [vmem:[#allocation3 + $0xe8] sm:$0xff] %vm1396_vm6, %v1359_v17  ;;  %v1495_v41 = vpop.permute.xlu0 %1494 }
 0x1dc   : > { %1898 = vrot.lane.b32.xlu1 %v1825_v29, %s5010_s28  ;;  %1591 = vst.msk [vmem:[#allocation3] sm:$0xff] %vm1590_vm8, %v1495_v41  ;;  %v1650_v29 = vld [vmem:[#allocation2 + $0x171] sm:$0xff] }
 0x1dd   : > { %1904 = vrot.lane.b32.xlu0 %v1828_v22, %s5010_s28  ;;  %v1843_v41 = vld [vmem:[#allocation2 + $0x172] sm:$0xff] }
 0x1de   : > { %v1363_v18 = vpop.permute.xlu1 %1362 }
 0x1df   : > { %1428 = vst.msk [vmem:[#allocation3 + $0xf8] sm:$0xff] %vm1396_vm6, %v1363_v18  ;;  %v1499_v2 = vpop.permute.xlu0 %1498 }
 0x1e0   : > { %1902 = vrot.lane.b32.xlu1 %v1827_v13, %s5010_s28  ;;  %1593 = vst.msk [vmem:[#allocation3 + $0x10] sm:$0xff] %vm1590_vm8, %v1499_v2  ;;  %v1653_v2 = vld [vmem:[#allocation2 + $0x199] sm:$0xff] }
 0x1e1   : > { %1715 = vrot.lane.b32.xlu0 %v1637_v42, %s5009_s14 }
 0x1e2   : > { %v1497_v14 = vpop.permute.xlu1 %1496 }
 0x1e3   : > { %1592 = vst.msk [vmem:[#allocation3 + $0x8] sm:$0xff] %vm1590_vm8, %v1497_v14  ;;  %v1503_v47 = vpop.permute.xlu0 %1502  ;;  %v1846_v14 = vld [vmem:[#allocation2 + $0x19a] sm:$0xff] }
 0x1e4   : > { %1906 = vrot.lane.b32.xlu1 %v1829_v43, %s5010_s28  ;;  %1595 = vst.msk [vmem:[#allocation3 + $0x20] sm:$0xff] %vm1590_vm8, %v1503_v47 }
 0x1e5   : > { %1908 = vrot.lane.b32.xlu0 %v1830_v44, %s5010_s28 }
 0x1e6   : > { %v1501_v3 = vpop.permute.xlu1 %1500 }
 0x1e7   : > { %1594 = vst.msk [vmem:[#allocation3 + $0x18] sm:$0xff] %vm1590_vm8, %v1501_v3  ;;  %v1507_v56 = vpop.permute.xlu0 %1506 }
 0x1e8   : > { %1717 = vrot.lane.b32.xlu1 %v1638_v50, %s5009_s14  ;;  %1597 = vst.msk [vmem:[#allocation3 + $0x30] sm:$0xff] %vm1590_vm8, %v1507_v56  ;;  %v1847_v50 = vld [vmem:[#allocation2 + $0x1a2] sm:$0xff] }
 0x1e9   : > { %1719 = vrot.lane.b32.xlu0 %v1639_v53, %s5009_s14 }
 0x1ea   : > { %v1505_v34 = vpop.permute.xlu1 %1504 }
 0x1eb   : > { %1596 = vst.msk [vmem:[#allocation3 + $0x28] sm:$0xff] %vm1590_vm8, %v1505_v34  ;;  %v1511_v24 = vpop.permute.xlu0 %1510 }
 0x1ec   : > { %1910 = vrot.lane.b32.xlu1 %v1831_v63, %s5010_s28  ;;  %1599 = vst.msk [vmem:[#allocation3 + $0x40] sm:$0xff] %vm1590_vm8, %v1511_v24 }
 0x1ed   : > { %1912 = vrot.lane.b32.xlu0 %v1832_v23, %s5010_s28 }
 0x1ee   : > { %v1509_v20 = vpop.permute.xlu1 %1508 }
 0x1ef   : > { %1598 = vst.msk [vmem:[#allocation3 + $0x38] sm:$0xff] %vm1590_vm8, %v1509_v20  ;;  %v1515_v10 = vpop.permute.xlu0 %1514 }
 0x1f0   : > { %1721 = vrot.lane.b32.xlu1 %v1640_v19, %s5009_s14  ;;  %1601 = vst.msk [vmem:[#allocation3 + $0x50] sm:$0xff] %vm1590_vm8, %v1515_v10 }
 0x1f1   : > { %1723 = vrot.lane.b32.xlu0 %v1641_v15, %s5009_s14 }
 0x1f2   : > { %v1513_v49 = vpop.permute.xlu1 %1512 }
 0x1f3   : > { %1600 = vst.msk [vmem:[#allocation3 + $0x48] sm:$0xff] %vm1590_vm8, %v1513_v49  ;;  %v1519_v12 = vpop.permute.xlu0 %1518 }
 0x1f4   : > { %1914 = vrot.lane.b32.xlu1 %v1833_v16, %s5010_s28  ;;  %1603 = vst.msk [vmem:[#allocation3 + $0x60] sm:$0xff] %vm1590_vm8, %v1519_v12 }
 0x1f5   : > { %1916 = vrot.lane.b32.xlu0 %v1834_v1, %s5010_s28 }
 0x1f6   : > { %v1517_v46 = vpop.permute.xlu1 %1516 }
 0x1f7   : > { %1602 = vst.msk [vmem:[#allocation3 + $0x58] sm:$0xff] %vm1590_vm8, %v1517_v46  ;;  %v1523_v30 = vpop.permute.xlu0 %1522 }
 0x1f8   : > { %1725 = vrot.lane.b32.xlu1 %v1642_v25, %s5009_s14  ;;  %1605 = vst.msk [vmem:[#allocation3 + $0x70] sm:$0xff] %vm1590_vm8, %v1523_v30 }
 0x1f9   : > { %1727 = vrot.lane.b32.xlu0 %v1643_v5, %s5009_s14 }
 0x1fa   : > { %v1521_v32 = vpop.permute.xlu1 %1520 }
 0x1fb   : > { %1604 = vst.msk [vmem:[#allocation3 + $0x68] sm:$0xff] %vm1590_vm8, %v1521_v32  ;;  %v1527_v39 = vpop.permute.xlu0 %1526 }
 0x1fc   : > { %1918 = vrot.lane.b32.xlu1 %v1835_v6, %s5010_s28  ;;  %1607 = vst.msk [vmem:[#allocation3 + $0x80] sm:$0xff] %vm1590_vm8, %v1527_v39 }
 0x1fd   : > { %1920 = vrot.lane.b32.xlu0 %v1836_v4, %s5010_s28 }
 0x1fe   : > { %v1525_v51 = vpop.permute.xlu1 %1524 }
 0x1ff   : > { %1606 = vst.msk [vmem:[#allocation3 + $0x78] sm:$0xff] %vm1590_vm8, %v1525_v51  ;;  %v1531_v54 = vpop.permute.xlu0 %1530 }
 0x200   : > { %1729 = vrot.lane.b32.xlu1 %v1644_v9, %s5009_s14  ;;  %1609 = vst.msk [vmem:[#allocation3 + $0x90] sm:$0xff] %vm1590_vm8, %v1531_v54 }
 0x201   : > { %1731 = vrot.lane.b32.xlu0 %v1645_v40, %s5009_s14 }
 0x202   : > { %v1529_v57 = vpop.permute.xlu1 %1528 }
 0x203   : > { %1608 = vst.msk [vmem:[#allocation3 + $0x88] sm:$0xff] %vm1590_vm8, %v1529_v57  ;;  %v1535_v59 = vpop.permute.xlu0 %1534 }
 0x204   : > { %1922 = vrot.lane.b32.xlu1 %v1837_v52, %s5010_s28  ;;  %1611 = vst.msk [vmem:[#allocation3 + $0xa0] sm:$0xff] %vm1590_vm8, %v1535_v59 }
 0x205   : > { %1924 = vrot.lane.b32.xlu0 %v1838_v55, %s5010_s28 }
 0x206   : > { %v1533_v61 = vpop.permute.xlu1 %1532 }
 0x207   : > { %1610 = vst.msk [vmem:[#allocation3 + $0x98] sm:$0xff] %vm1590_vm8, %v1533_v61  ;;  %v1539_v0 = vpop.permute.xlu0 %1538 }
 0x208   : > { %1733 = vrot.lane.b32.xlu1 %v1646_v58, %s5009_s14  ;;  %1613 = vst.msk [vmem:[#allocation3 + $0xb0] sm:$0xff] %vm1590_vm8, %v1539_v0 }
 0x209   : > { %1735 = vrot.lane.b32.xlu0 %v1647_v60, %s5009_s14 }
 0x20a   : > { %v1537_v8 = vpop.permute.xlu1 %1536 }
 0x20b   : > { %1612 = vst.msk [vmem:[#allocation3 + $0xa8] sm:$0xff] %vm1590_vm8, %v1537_v8  ;;  %v1543_v48 = vpop.permute.xlu0 %1542 }
 0x20c   : > { %1926 = vrot.lane.b32.xlu1 %v1839_v62, %s5010_s28  ;;  %1615 = vst.msk [vmem:[#allocation3 + $0xc0] sm:$0xff] %vm1590_vm8, %v1543_v48 }
 0x20d   : > { %1928 = vrot.lane.b32.xlu0 %v1840_v7, %s5010_s28 }
 0x20e   : > { %v1541_v38 = vpop.permute.xlu1 %1540 }
 0x20f   : > { %1614 = vst.msk [vmem:[#allocation3 + $0xb8] sm:$0xff] %vm1590_vm8, %v1541_v38  ;;  %v1547_v36 = vpop.permute.xlu0 %1546 }
 0x210   : > { %1737 = vrot.lane.b32.xlu1 %v1648_v45, %s5009_s14  ;;  %1617 = vst.msk [vmem:[#allocation3 + $0xd0] sm:$0xff] %vm1590_vm8, %v1547_v36 }
 0x211   : > { %1739 = vrot.lane.b32.xlu0 %v1649_v37, %s5009_s14 }
 0x212   : > { %v1545_v28 = vpop.permute.xlu1 %1544 }
 0x213   : > { %1616 = vst.msk [vmem:[#allocation3 + $0xc8] sm:$0xff] %vm1590_vm8, %v1545_v28  ;;  %v1551_v21 = vpop.permute.xlu0 %1550 }
 0x214   : > { %1930 = vrot.lane.b32.xlu1 %v1841_v35, %s5010_s28  ;;  %1619 = vst.msk [vmem:[#allocation3 + $0xe0] sm:$0xff] %vm1590_vm8, %v1551_v21 }
 0x215   : > { %1932 = vrot.lane.b32.xlu0 %v1842_v33, %s5010_s28 }
 0x216   : > { %v1549_v17 = vpop.permute.xlu1 %1548 }
 0x217   : > { %1618 = vst.msk [vmem:[#allocation3 + $0xd8] sm:$0xff] %vm1590_vm8, %v1549_v17  ;;  %v1555_v22 = vpop.permute.xlu0 %1554 }
 0x218   : > { %1741 = vrot.lane.b32.xlu1 %v1650_v29, %s5009_s14  ;;  %1621 = vst.msk [vmem:[#allocation3 + $0xf0] sm:$0xff] %vm1590_vm8, %v1555_v22 }
 0x219   : > { %1743 = vrot.lane.b32.xlu0 %v5850_v11, %s5009_s14 }
 0x21a   : > { %v1553_v13 = vpop.permute.xlu1 %1552 }
 0x21b   : > { %1620 = vst.msk [vmem:[#allocation3 + $0xe8] sm:$0xff] %vm1590_vm8, %v1553_v13  ;;  %v1688_v18 = vpop.permute.xlu0 %1687 }
 0x21c   : > { %1934 = vrot.lane.b32.xlu1 %v1843_v41, %s5010_s28  ;;  %1784 = vst.msk [vmem:[#allocation3] sm:$0xff] %vm1783_vm9, %v1688_v18 }
 0x21d   : > { %1936 = vrot.lane.b32.xlu0 %v5950_v26, %s5010_s28  ;;  %v1654_v26 = vld [vmem:[#allocation2 + $0x1a1] sm:$0xff] }
 0x21e   : > { %v1557_v42 = vpop.permute.xlu1 %1556 }
 0x21f   : > { %1622 = vst.msk [vmem:[#allocation3 + $0xf8] sm:$0xff] %vm1590_vm8, %v1557_v42  ;;  %v1692_v43 = vpop.permute.xlu0 %1691 }
 0x220   : > { %1745 = vrot.lane.b32.xlu1 %v5860_v27, %s5009_s14  ;;  %1786 = vst.msk [vmem:[#allocation3 + $0x10] sm:$0xff] %vm1783_vm9, %v1692_v43 }
 0x221   : > { %1747 = vrot.lane.b32.xlu0 %v1653_v2, %s5009_s14 }
 0x222   : > { %v1690_v11 = vpop.permute.xlu1 %1689 }
 0x223   : > { %1785 = vst.msk [vmem:[#allocation3 + $0x8] sm:$0xff] %vm1783_vm9, %v1690_v11  ;;  %v1696_v44 = vpop.permute.xlu0 %1695 }
 0x224   : > { %1938 = vrot.lane.b32.xlu1 %v5960_v31, %s5010_s28  ;;  %1788 = vst.msk [vmem:[#allocation3 + $0x20] sm:$0xff] %vm1783_vm9, %v1696_v44 }
 0x225   : > { %1940 = vrot.lane.b32.xlu0 %v1846_v14, %s5010_s28 }
 0x226   : > { %v1694_v47 = vpop.permute.xlu1 %1693 }
 0x227   : > { %1787 = vst.msk [vmem:[#allocation3 + $0x18] sm:$0xff] %vm1783_vm9, %v1694_v47  ;;  %v1700_v27 = vpop.permute.xlu0 %1699 }
 0x228   : > { %1749 = vrot.lane.b32.xlu1 %v1654_v26, %s5009_s14  ;;  %1790 = vst.msk [vmem:[#allocation3 + $0x30] sm:$0xff] %vm1783_vm9, %v1700_v27 }
 0x22a   : > { %v1698_v3 = vpop.permute.xlu1 %1697 }
 0x22b   : > { %1789 = vst.msk [vmem:[#allocation3 + $0x28] sm:$0xff] %vm1783_vm9, %v1698_v3  ;;  %v1704_v53 = vpop.permute.xlu0 %1703 }
 0x22c   : > { %1942 = vrot.lane.b32.xlu1 %v1847_v50, %s5010_s28  ;;  %1792 = vst.msk [vmem:[#allocation3 + $0x40] sm:$0xff] %vm1783_vm9, %v1704_v53 }
 0x22e   : > { %v1702_v31 = vpop.permute.xlu1 %1701 }
 0x22f   : > { %1791 = vst.msk [vmem:[#allocation3 + $0x38] sm:$0xff] %vm1783_vm9, %v1702_v31  ;;  %v1708_v56 = vpop.permute.xlu0 %1707 }
 0x230   : > { %1794 = vst.msk [vmem:[#allocation3 + $0x50] sm:$0xff] %vm1783_vm9, %v1708_v56 }
 0x232   : > { %v1706_v63 = vpop.permute.xlu1 %1705 }
 0x233   : > { %1793 = vst.msk [vmem:[#allocation3 + $0x48] sm:$0xff] %vm1783_vm9, %v1706_v63  ;;  %v1712_v34 = vpop.permute.xlu0 %1711 }
 0x234   : > { %1796 = vst.msk [vmem:[#allocation3 + $0x60] sm:$0xff] %vm1783_vm9, %v1712_v34 }
 0x236   : > { %v1710_v23 = vpop.permute.xlu1 %1709 }
 0x237   : > { %1795 = vst.msk [vmem:[#allocation3 + $0x58] sm:$0xff] %vm1783_vm9, %v1710_v23  ;;  %v1881_v24 = vpop.permute.xlu0 %1880 }
 0x238   : > { %1977 = vst.msk [vmem:[#allocation3] sm:$0xff] %vm1976_vm10, %v1881_v24 }
 0x23a   : > { %v1714_v19 = vpop.permute.xlu1 %1713 }
 0x23b   : > { %1797 = vst.msk [vmem:[#allocation3 + $0x68] sm:$0xff] %vm1783_vm9, %v1714_v19  ;;  %v1885_v20 = vpop.permute.xlu0 %1884 }
 0x23c   : > { %1979 = vst.msk [vmem:[#allocation3 + $0x10] sm:$0xff] %vm1976_vm10, %v1885_v20 }
 0x23e   : > { %v1883_v15 = vpop.permute.xlu1 %1882 }
 0x23f   : > { %1978 = vst.msk [vmem:[#allocation3 + $0x8] sm:$0xff] %vm1976_vm10, %v1883_v15  ;;  %v1889_v10 = vpop.permute.xlu0 %1888  ;;  %v2009_v16 = vld [vmem:[#allocation3] sm:$0xff] }
 0x240   : > { %1981 = vst.msk [vmem:[#allocation3 + $0x20] sm:$0xff] %vm1976_vm10, %v1889_v10  ;;  %4871 = vmatprep.mubr.msk.f32.mxu0 %vm2046_vm11, %v2009_v16 }
 0x242   : > { %v1887_v49 = vpop.permute.xlu1 %1886 }
 0x243   : > { %1980 = vst.msk [vmem:[#allocation3 + $0x18] sm:$0xff] %vm1976_vm10, %v1887_v49  ;;  %v1893_v1 = vpop.permute.xlu0 %1892  ;;  %v2011_v12 = vld [vmem:[#allocation3 + $0x10] sm:$0xff] }
 0x244   : > { %1983 = vst.msk [vmem:[#allocation3 + $0x30] sm:$0xff] %vm1976_vm10, %v1893_v1 }
 0x246   : > { %v1891_v25 = vpop.permute.xlu1 %1890  ;;  %v2010_v46 = vld [vmem:[#allocation3 + $0x8] sm:$0xff] }
 0x247   : > { %1982 = vst.msk [vmem:[#allocation3 + $0x28] sm:$0xff] %vm1976_vm10, %v1891_v25  ;;  %4872 = vmatmul.mubr.msk.f32.vlgmr.msra.gmra.mxu0 %vm2046_vm11, %v2010_v46  ;;  %v1897_v5 = vpop.permute.xlu0 %1896  ;;  %v2013_v30 = vld [vmem:[#allocation3 + $0x20] sm:$0xff]  ;;  %v2578_v46 = vld [vmem:[#allocation2 + $0x1] sm:$0xff] }
 0x248   : > { %4874 = vmatprep.mubr.msk.f32.mxu0 %vm2046_vm11, %v2011_v12  ;;  %1985 = vst.msk [vmem:[#allocation3 + $0x40] sm:$0xff] %vm1976_vm10, %v1897_v5  ;;  %v2579_v12 = vld [vmem:[#allocation2 + $0x9] sm:$0xff]  ;;  %2642 = vrot.lane.b32.xlu0 %v2578_v46, %s5003_s8 }
 0x249   : > { %2644 = vrot.lane.b32.xlu1 %v2579_v12, %s5003_s8 }
 0x24a   : > { %v1895_v6 = vpop.permute.xlu1 %1894  ;;  %v2012_v32 = vld [vmem:[#allocation3 + $0x18] sm:$0xff] }
 0x24b   : > { %1984 = vst.msk [vmem:[#allocation3 + $0x38] sm:$0xff] %vm1976_vm10, %v1895_v6  ;;  %4875 = vmatmul.mubr.msk.f32.gmra.mxu0 %vm2046_vm11, %v2012_v32  ;;  %v1901_v4 = vpop.permute.xlu0 %1900  ;;  %v2015_v39 = vld [vmem:[#allocation3 + $0x30] sm:$0xff] }
 0x24c   : > { %4877 = vmatprep.mubr.msk.f32.mxu0 %vm2046_vm11, %v2013_v30  ;;  %1987 = vst.msk [vmem:[#allocation3 + $0x50] sm:$0xff] %vm1976_vm10, %v1901_v4 }
 0x24e   : > { %v1899_v9 = vpop.permute.xlu1 %1898  ;;  %v2014_v51 = vld [vmem:[#allocation3 + $0x28] sm:$0xff] }
 0x24f   : > { %1986 = vst.msk [vmem:[#allocation3 + $0x48] sm:$0xff] %vm1976_vm10, %v1899_v9  ;;  %4878 = vmatmul.mubr.msk.f32.gmra.mxu0 %vm2046_vm11, %v2014_v51  ;;  %v1905_v40 = vpop.permute.xlu0 %1904  ;;  %v2017_v54 = vld [vmem:[#allocation3 + $0x40] sm:$0xff] }
 0x250   : > { %4880 = vmatprep.mubr.msk.f32.mxu0 %vm2046_vm11, %v2015_v39  ;;  %1989 = vst.msk [vmem:[#allocation3 + $0x60] sm:$0xff] %vm1976_vm10, %v1905_v40 }
 0x252   : > { %v1903_v52 = vpop.permute.xlu1 %1902  ;;  %v2016_v57 = vld [vmem:[#allocation3 + $0x38] sm:$0xff] }
 0x253   : > { %1988 = vst.msk [vmem:[#allocation3 + $0x58] sm:$0xff] %vm1976_vm10, %v1903_v52  ;;  %4881 = vmatmul.mubr.msk.f32.gmra.mxu0 %vm2046_vm11, %v2016_v57  ;;  %v1716_v55 = vpop.permute.xlu0 %1715  ;;  %v2019_v59 = vld [vmem:[#allocation3 + $0x50] sm:$0xff]  ;;  %v2515_v52 = vld [vmem:[#allocation2 + $0x8] sm:$0xff] }
 0x254   : > { %4883 = vmatprep.mubr.msk.f32.mxu0 %vm2046_vm11, %v2017_v54  ;;  %1798 = vst.msk [vmem:[#allocation3 + $0x70] sm:$0xff] %vm1783_vm9, %v1716_v55  ;;  %v2514_v55 = vld [vmem:[#allocation2] sm:$0xff] }
 0x255   : > { %2547 = vst.msk [vmem:[#allocation3 + $0x8] sm:$0xff] %vm311_vm0, %v2515_v52  ;;  %2546 = vst.msk [vmem:[#allocation3] sm:$0xff] %vm311_vm0, %v2514_v55 }
 0x256   : > { %v1907_v58 = vpop.permute.xlu1 %1906  ;;  %v2018_v61 = vld [vmem:[#allocation3 + $0x48] sm:$0xff] }
 0x257   : > { %1990 = vst.msk [vmem:[#allocation3 + $0x68] sm:$0xff] %vm1976_vm10, %v1907_v58  ;;  %4884 = vmatmul.mubr.msk.f32.gmra.mxu0 %vm2046_vm11, %v2018_v61  ;;  %v1909_v60 = vpop.permute.xlu0 %1908  ;;  %v2021_v0 = vld [vmem:[#allocation3 + $0x60] sm:$0xff] }
 0x258   : > { %4886 = vmatprep.mubr.msk.f32.mxu0 %vm2046_vm11, %v2019_v59  ;;  %1991 = vst.msk [vmem:[#allocation3 + $0x70] sm:$0xff] %vm1976_vm10, %v1909_v60  ;;  %v6304_v59 = vld [vmem:[%s7420_s2] ss:$0 sm:$0xff] }
 0x259   : > { %v6311_v60 = vld [vmem:[%s7421_s3] ss:$0 sm:$0xff] }
 0x25a   : > { %v1718_v62 = vpop.permute.xlu1 %1717  ;;  %v2020_v8 = vld [vmem:[#allocation3 + $0x58] sm:$0xff] }
 0x25b   : > { %1799 = vst.msk [vmem:[#allocation3 + $0x78] sm:$0xff] %vm1783_vm9, %v1718_v62  ;;  %4887 = vmatmul.mubr.msk.f32.gmra.mxu0 %vm2046_vm11, %v2020_v8  ;;  %v1720_v7 = vpop.permute.xlu0 %1719 }
 0x25c   : > { %4889 = vmatprep.mubr.msk.f32.mxu0 %vm2046_vm11, %v2021_v0  ;;  %1800 = vst.msk [vmem:[#allocation3 + $0x80] sm:$0xff] %vm1783_vm9, %v1720_v7 }
 0x25e   : > { %v1911_v48 = vpop.permute.xlu1 %1910  ;;  %v2022_v45 = vld [vmem:[#allocation3 + $0x68] sm:$0xff] }
 0x25f   : > { %1992 = vst.msk [vmem:[#allocation3 + $0x78] sm:$0xff] %vm1976_vm10, %v1911_v48  ;;  %4890 = vmatmul.mubr.msk.f32.gmra.mxu0 %vm2046_vm11, %v2022_v45  ;;  %v1913_v38 = vpop.permute.xlu0 %1912  ;;  %v2023_v37 = vld [vmem:[#allocation3 + $0x70] sm:$0xff] }
 0x260   : > { %1993 = vst.msk [vmem:[#allocation3 + $0x80] sm:$0xff] %vm1976_vm10, %v1913_v38  ;;  %4892 = vmatprep.mubr.msk.f32.mxu0 %vm2046_vm11, %v2023_v37 }
 0x262   : > { %v1722_v36 = vpop.permute.xlu1 %1721 }
 0x263   : > { %1801 = vst.msk [vmem:[#allocation3 + $0x88] sm:$0xff] %vm1783_vm9, %v1722_v36  ;;  %v1724_v35 = vpop.permute.xlu0 %1723 }
 0x264   : > { %1802 = vst.msk [vmem:[#allocation3 + $0x90] sm:$0xff] %vm1783_vm9, %v1724_v35 }
 0x266   : > { %v1915_v28 = vpop.permute.xlu1 %1914  ;;  %v2024_v33 = vld [vmem:[#allocation3 + $0x78] sm:$0xff] }
 0x267   : > { %1994 = vst.msk [vmem:[#allocation3 + $0x88] sm:$0xff] %vm1976_vm10, %v1915_v28  ;;  %4893 = vmatmul.mubr.msk.f32.gmra.mxu0 %vm2046_vm11, %v2024_v33  ;;  %v1917_v21 = vpop.permute.xlu0 %1916  ;;  %v2025_v29 = vld [vmem:[#allocation3 + $0x80] sm:$0xff] }
 0x268   : > { %1995 = vst.msk [vmem:[#allocation3 + $0x90] sm:$0xff] %vm1976_vm10, %v1917_v21  ;;  %4895 = vmatprep.mubr.msk.f32.mxu0 %vm2046_vm11, %v2025_v29 }
 0x26a   : > { %v1726_v17 = vpop.permute.xlu1 %1725 }
 0x26b   : > { %1803 = vst.msk [vmem:[#allocation3 + $0x98] sm:$0xff] %vm1783_vm9, %v1726_v17  ;;  %v1728_v22 = vpop.permute.xlu0 %1727 }
 0x26c   : > { %1804 = vst.msk [vmem:[#allocation3 + $0xa0] sm:$0xff] %vm1783_vm9, %v1728_v22 }
 0x26e   : > { %v1919_v41 = vpop.permute.xlu1 %1918  ;;  %v2026_v13 = vld [vmem:[#allocation3 + $0x88] sm:$0xff] }
 0x26f   : > { %1996 = vst.msk [vmem:[#allocation3 + $0x98] sm:$0xff] %vm1976_vm10, %v1919_v41  ;;  %4896 = vmatmul.mubr.msk.f32.gmra.mxu0 %vm2046_vm11, %v2026_v13  ;;  %v1921_v18 = vpop.permute.xlu0 %1920  ;;  %v2027_v42 = vld [vmem:[#allocation3 + $0x90] sm:$0xff] }
 0x270   : > { %1997 = vst.msk [vmem:[#allocation3 + $0xa0] sm:$0xff] %vm1976_vm10, %v1921_v18  ;;  %4898 = vmatprep.mubr.msk.f32.mxu0 %vm2046_vm11, %v2027_v42 }
 0x272   : > { %v1730_v2 = vpop.permute.xlu1 %1729 }
 0x273   : > { %1805 = vst.msk [vmem:[#allocation3 + $0xa8] sm:$0xff] %vm1783_vm9, %v1730_v2  ;;  %v1732_v43 = vpop.permute.xlu0 %1731 }
 0x274   : > { %1806 = vst.msk [vmem:[#allocation3 + $0xb0] sm:$0xff] %vm1783_vm9, %v1732_v43 }
 0x276   : > { %v1923_v11 = vpop.permute.xlu1 %1922  ;;  %v2028_v14 = vld [vmem:[#allocation3 + $0x98] sm:$0xff] }
 0x277   : > { %1998 = vst.msk [vmem:[#allocation3 + $0xa8] sm:$0xff] %vm1976_vm10, %v1923_v11  ;;  %4899 = vmatmul.mubr.msk.f32.gmra.mxu0 %vm2046_vm11, %v2028_v14  ;;  %v1925_v44 = vpop.permute.xlu0 %1924  ;;  %v2029_v26 = vld [vmem:[#allocation3 + $0xa0] sm:$0xff] }
 0x278   : > { %1999 = vst.msk [vmem:[#allocation3 + $0xb0] sm:$0xff] %vm1976_vm10, %v1925_v44  ;;  %4901 = vmatprep.mubr.msk.f32.mxu0 %vm2046_vm11, %v2029_v26 }
 0x27a   : > { %v1734_v47 = vpop.permute.xlu1 %1733 }
 0x27b   : > { %1807 = vst.msk [vmem:[#allocation3 + $0xb8] sm:$0xff] %vm1783_vm9, %v1734_v47  ;;  %v1736_v27 = vpop.permute.xlu0 %1735 }
 0x27c   : > { %1808 = vst.msk [vmem:[#allocation3 + $0xc0] sm:$0xff] %vm1783_vm9, %v1736_v27 }
 0x27e   : > { %v1927_v50 = vpop.permute.xlu1 %1926  ;;  %v2030_v3 = vld [vmem:[#allocation3 + $0xa8] sm:$0xff] }
 0x27f   : > { %2000 = vst.msk [vmem:[#allocation3 + $0xb8] sm:$0xff] %vm1976_vm10, %v1927_v50  ;;  %4902 = vmatmul.mubr.msk.f32.gmra.mxu0 %vm2046_vm11, %v2030_v3  ;;  %v1929_v53 = vpop.permute.xlu0 %1928  ;;  %v2031_v31 = vld [vmem:[#allocation3 + $0xb0] sm:$0xff] }
 0x280   : > { %2001 = vst.msk [vmem:[#allocation3 + $0xc0] sm:$0xff] %vm1976_vm10, %v1929_v53  ;;  %4904 = vmatprep.mubr.msk.f32.mxu0 %vm2046_vm11, %v2031_v31 }
 0x282   : > { %v1738_v56 = vpop.permute.xlu1 %1737 }
 0x283   : > { %1809 = vst.msk [vmem:[#allocation3 + $0xc8] sm:$0xff] %vm1783_vm9, %v1738_v56  ;;  %v1740_v63 = vpop.permute.xlu0 %1739 }
 0x284   : > { %1810 = vst.msk [vmem:[#allocation3 + $0xd0] sm:$0xff] %vm1783_vm9, %v1740_v63 }
 0x286   : > { %v1931_v34 = vpop.permute.xlu1 %1930  ;;  %v2032_v23 = vld [vmem:[#allocation3 + $0xb8] sm:$0xff] }
 0x287   : > { %2002 = vst.msk [vmem:[#allocation3 + $0xc8] sm:$0xff] %vm1976_vm10, %v1931_v34  ;;  %4905 = vmatmul.mubr.msk.f32.gmra.mxu0 %vm2046_vm11, %v2032_v23  ;;  %v1933_v24 = vpop.permute.xlu0 %1932  ;;  %v2033_v19 = vld [vmem:[#allocation3 + $0xc0] sm:$0xff] }
 0x288   : > { %2003 = vst.msk [vmem:[#allocation3 + $0xd0] sm:$0xff] %vm1976_vm10, %v1933_v24  ;;  %4907 = vmatprep.mubr.msk.f32.mxu0 %vm2046_vm11, %v2033_v19 }
 0x28a   : > { %v1742_v20 = vpop.permute.xlu1 %1741 }
 0x28b   : > { %1811 = vst.msk [vmem:[#allocation3 + $0xd8] sm:$0xff] %vm1783_vm9, %v1742_v20  ;;  %v1744_v15 = vpop.permute.xlu0 %1743 }
 0x28c   : > { %1812 = vst.msk [vmem:[#allocation3 + $0xe0] sm:$0xff] %vm1783_vm9, %v1744_v15 }
 0x28e   : > { %v1935_v10 = vpop.permute.xlu1 %1934  ;;  %v2034_v16 = vld [vmem:[#allocation3 + $0xc8] sm:$0xff] }
 0x28f   : > { %2004 = vst.msk [vmem:[#allocation3 + $0xd8] sm:$0xff] %vm1976_vm10, %v1935_v10  ;;  %4908 = vmatmul.mubr.msk.f32.gmra.mxu0 %vm2046_vm11, %v2034_v16  ;;  %v1937_v49 = vpop.permute.xlu0 %1936  ;;  %v2035_v1 = vld [vmem:[#allocation3 + $0xd0] sm:$0xff] }
 0x290   : > { %2005 = vst.msk [vmem:[#allocation3 + $0xe0] sm:$0xff] %vm1976_vm10, %v1937_v49  ;;  %4910 = vmatprep.mubr.msk.f32.mxu0 %vm2046_vm11, %v2035_v1 }
 0x292   : > { %v1746_v25 = vpop.permute.xlu1 %1745 }
 0x293   : > { %1813 = vst.msk [vmem:[#allocation3 + $0xe8] sm:$0xff] %vm1783_vm9, %v1746_v25  ;;  %v1748_v4 = vpop.permute.xlu0 %1747 }
 0x294   : > { %1814 = vst.msk [vmem:[#allocation3 + $0xf0] sm:$0xff] %vm1783_vm9, %v1748_v4 }
 0x296   : > { %v1939_v5 = vpop.permute.xlu1 %1938  ;;  %v2036_v30 = vld [vmem:[#allocation3 + $0xd8] sm:$0xff] }
 0x297   : > { %2006 = vst.msk [vmem:[#allocation3 + $0xe8] sm:$0xff] %vm1976_vm10, %v1939_v5  ;;  %4911 = vmatmul.mubr.msk.f32.gmra.mxu0 %vm2046_vm11, %v2036_v30  ;;  %v2037_v6 = vld [vmem:[#allocation3 + $0xe0] sm:$0xff]  ;;  %v1941_v9 = vpop.permute.xlu0 %1940 }
 0x298   : > { %4913 = vmatprep.mubr.msk.f32.mxu0 %vm2046_vm11, %v2037_v6  ;;  %2007 = vst.msk [vmem:[#allocation3 + $0xf0] sm:$0xff] %vm1976_vm10, %v1941_v9 }
 0x29a   : > { %v1750_v39 = vpop.permute.xlu1 %1749 }
 0x29b   : > { %1815 = vst.msk [vmem:[#allocation3 + $0xf8] sm:$0xff] %vm1783_vm9, %v1750_v39 }
 0x29e   : > { %v2038_v32 = vld [vmem:[#allocation3 + $0xe8] sm:$0xff]  ;;  %v1943_v51 = vpop.permute.xlu1 %1942 }
 0x29f   : > { %4914 = vmatmul.mubr.msk.f32.gmra.mxu0 %vm2046_vm11, %v2038_v32  ;;  %2008 = vst.msk [vmem:[#allocation3 + $0xf8] sm:$0xff] %vm1976_vm10, %v1943_v51  ;;  %v2039_v40 = vld [vmem:[#allocation3 + $0xf0] sm:$0xff] }
 0x2a0   : > { %4916 = vmatprep.mubr.msk.f32.mxu0 %vm2046_vm11, %v2039_v40 }
 0x2a6   : > { %v2040_v54 = vld [vmem:[#allocation3 + $0xf8] sm:$0xff] }
 0x2a7   : > { %4917 = vmatmul.mubr.msk.f32.gmra.mxu0 %vm2046_vm11, %v2040_v54 }
 0x2ba   : > { %v2643_v58 = vpop.permute.xlu0 %2642 }
 0x2bb   : > { %v2645_v57 = vpop.permute.xlu1 %2644  ;;  %2738 = vst.msk [vmem:[#allocation3] sm:$0xff] %vm624_vm2, %v2643_v58 }
 0x2bc   : > { %2739 = vst.msk [vmem:[#allocation3 + $0x8] sm:$0xff] %vm624_vm2, %v2645_v57 }
 0x307   : > { %v4873_v61 = vpop.f32.mrf.mxu0 }
 0x308   : > { %v2380_v0 = vmul.f32 %v4873_v61, %v6304_v59 }
 0x309   : > { %v2213_v62 = vpop.f32.mrf.mxu0 }
 0x30a   : > { %v2419_v8 = vadd.f32 %v6311_v60, %v2380_v0  ;;  %v2379_v7 = vmul.f32 %v6304_v59, %v2213_v62 }
 0x30b   : > { %v4876_v48 = vpop.f32.mrf.mxu0 }
 0x30c   : > { %v2451_v45 = vmax.f32 %v2419_v8, 0.0  ;;  %v2418_v38 = vadd.f32 %v6311_v60, %v2379_v7  ;;  %v2382_v37 = vmul.f32 %v4876_v48, %v6304_v59 }
 0x30d   : > { %v2223_v36 = vpop.f32.mrf.mxu0 }
 0x30e   : > { %2483 = vst.msk [vmem:[#allocation2 + $0x21] sm:$0xff] %vm311_vm0, %v2451_v45  ;;  %v2450_v35 = vmax.f32 %v2418_v38, 0.0  ;;  %v2421_v28 = vadd.f32 %v6311_v60, %v2382_v37  ;;  %v2381_v33 = vmul.f32 %v6304_v59, %v2223_v36 }
 0x30f   : > { %v4879_v21 = vpop.f32.mrf.mxu0 }
 0x310   : > { %2482 = vst.msk [vmem:[#allocation2 + $0x19] sm:$0xff] %vm311_vm0, %v2450_v35  ;;  %v2453_v29 = vmax.f32 %v2421_v28, 0.0  ;;  %v2420_v17 = vadd.f32 %v6311_v60, %v2381_v33  ;;  %v2384_v22 = vmul.f32 %v4879_v21, %v6304_v59 }
 0x311   : > { %v2233_v41 = vpop.f32.mrf.mxu0 }
 0x312   : > { %2485 = vst.msk [vmem:[#allocation2 + $0x39] sm:$0xff] %vm311_vm0, %v2453_v29  ;;  %v2452_v13 = vmax.f32 %v2420_v17, 0.0  ;;  %v2423_v18 = vadd.f32 %v6311_v60, %v2384_v22  ;;  %v2383_v42 = vmul.f32 %v6304_v59, %v2233_v41 }
 0x313   : > { %v4882_v2 = vpop.f32.mrf.mxu0 }
 0x314   : > { %2484 = vst.msk [vmem:[#allocation2 + $0x31] sm:$0xff] %vm311_vm0, %v2452_v13  ;;  %v2455_v43 = vmax.f32 %v2423_v18, 0.0  ;;  %v2422_v11 = vadd.f32 %v6311_v60, %v2383_v42  ;;  %v2386_v14 = vmul.f32 %v4882_v2, %v6304_v59 }
 0x315   : > { %v2243_v44 = vpop.f32.mrf.mxu0  ;;  %v6331_v26 = vld [vmem:[#allocation2 + $0x21] sm:$0xff] }
 0x316   : > { %2487 = vst.msk [vmem:[#allocation2 + $0x51] sm:$0xff] %vm311_vm0, %v2455_v43  ;;  %v2454_v47 = vmax.f32 %v2422_v11, 0.0  ;;  %v2425_v27 = vadd.f32 %v6311_v60, %v2386_v14  ;;  %v2385_v50 = vmul.f32 %v6304_v59, %v2243_v44  ;;  %2648 = vrot.lane.b32.xlu1 %v6331_v26, %s5003_s8 }
 0x317   : > { %v4885_v3 = vpop.f32.mrf.mxu0  ;;  %v6338_v53 = vld [vmem:[#allocation2 + $0x19] sm:$0xff] }
 0x318   : > { %v6340_v31 = vld [vmem:[#allocation2 + $0x20] sm:$0xff]  ;;  %2486 = vst.msk [vmem:[#allocation2 + $0x49] sm:$0xff] %vm311_vm0, %v2454_v47  ;;  %v2457_v56 = vmax.f32 %v2425_v27, 0.0  ;;  %v2424_v63 = vadd.f32 %v6311_v60, %v2385_v50  ;;  %v2388_v34 = vmul.f32 %v4885_v3, %v6304_v59  ;;  %2646 = vrot.lane.b32.xlu0 %v6338_v53, %s5003_s8  ;;  %v6349_v23 = vld [vmem:[#allocation2 + $0x18] sm:$0xff] }
 0x319   : > { %2549 = vst.msk [vmem:[#allocation3 + $0x18] sm:$0xff] %vm311_vm0, %v6340_v31  ;;  %v2253_v24 = vpop.f32.mrf.mxu0  ;;  %v6351_v19 = vld [vmem:[#allocation2 + $0x39] sm:$0xff]  ;;  %2548 = vst.msk [vmem:[#allocation3 + $0x10] sm:$0xff] %vm311_vm0, %v6349_v23 }
 0x31a   : > { %2489 = vst.msk [vmem:[#allocation2 + $0x69] sm:$0xff] %vm311_vm0, %v2457_v56  ;;  %v2456_v20 = vmax.f32 %v2424_v63, 0.0  ;;  %v2427_v15 = vadd.f32 %v6311_v60, %v2388_v34  ;;  %v2387_v10 = vmul.f32 %v6304_v59, %v2253_v24  ;;  %2652 = vrot.lane.b32.xlu1 %v6351_v19, %s5003_s8 }
 0x31b   : > { %v4888_v16 = vpop.f32.mrf.mxu0  ;;  %v6360_v49 = vld [vmem:[#allocation2 + $0x31] sm:$0xff] }
 0x31c   : > { %v6362_v1 = vld [vmem:[#allocation2 + $0x38] sm:$0xff]  ;;  %2488 = vst.msk [vmem:[#allocation2 + $0x61] sm:$0xff] %vm311_vm0, %v2456_v20  ;;  %v2459_v12 = vmax.f32 %v2427_v15, 0.0  ;;  %v2426_v25 = vadd.f32 %v6311_v60, %v2387_v10  ;;  %v2390_v46 = vmul.f32 %v4888_v16, %v6304_v59  ;;  %2650 = vrot.lane.b32.xlu0 %v6360_v49, %s5003_s8  ;;  %v6371_v5 = vld [vmem:[#allocation2 + $0x30] sm:$0xff] }
 0x31d   : > { %2551 = vst.msk [vmem:[#allocation3 + $0x28] sm:$0xff] %vm311_vm0, %v6362_v1  ;;  %v2263_v30 = vpop.f32.mrf.mxu0  ;;  %v6373_v6 = vld [vmem:[#allocation2 + $0x51] sm:$0xff]  ;;  %2550 = vst.msk [vmem:[#allocation3 + $0x20] sm:$0xff] %vm311_vm0, %v6371_v5 }
 0x31e   : > { %2491 = vst.msk [vmem:[#allocation2 + $0x81] sm:$0xff] %vm311_vm0, %v2459_v12  ;;  %v2458_v32 = vmax.f32 %v2426_v25, 0.0  ;;  %v2429_v4 = vadd.f32 %v6311_v60, %v2390_v46  ;;  %v2389_v39 = vmul.f32 %v6304_v59, %v2263_v30  ;;  %2656 = vrot.lane.b32.xlu1 %v6373_v6, %s5003_s8 }
 0x31f   : > { %v4891_v9 = vpop.f32.mrf.mxu0  ;;  %v6382_v51 = vld [vmem:[#allocation2 + $0x49] sm:$0xff] }
 0x320   : > { %v6384_v40 = vld [vmem:[#allocation2 + $0x50] sm:$0xff]  ;;  %2490 = vst.msk [vmem:[#allocation2 + $0x79] sm:$0xff] %vm311_vm0, %v2458_v32  ;;  %v2461_v54 = vmax.f32 %v2429_v4, 0.0  ;;  %v2428_v52 = vadd.f32 %v6311_v60, %v2389_v39  ;;  %v2392_v57 = vmul.f32 %v4891_v9, %v6304_v59  ;;  %2654 = vrot.lane.b32.xlu0 %v6382_v51, %s5003_s8  ;;  %v6393_v55 = vld [vmem:[#allocation2 + $0x48] sm:$0xff] }
 0x321   : > { %2553 = vst.msk [vmem:[#allocation3 + $0x38] sm:$0xff] %vm311_vm0, %v6384_v40  ;;  %v2273_v58 = vpop.f32.mrf.mxu0  ;;  %v6395_v61 = vld [vmem:[#allocation2 + $0x69] sm:$0xff]  ;;  %2552 = vst.msk [vmem:[#allocation3 + $0x30] sm:$0xff] %vm311_vm0, %v6393_v55 }
 0x322   : > { %2493 = vst.msk [vmem:[#allocation2 + $0x99] sm:$0xff] %vm311_vm0, %v2461_v54  ;;  %v2460_v0 = vmax.f32 %v2428_v52, 0.0  ;;  %v2431_v62 = vadd.f32 %v6311_v60, %v2392_v57  ;;  %v2391_v8 = vmul.f32 %v6304_v59, %v2273_v58  ;;  %2660 = vrot.lane.b32.xlu1 %v6395_v61, %s5003_s8 }
 0x323   : > { %v6404_v7 = vld [vmem:[#allocation2 + $0x61] sm:$0xff] }
 0x324   : > { %v6406_v48 = vld [vmem:[#allocation2 + $0x68] sm:$0xff]  ;;  %2492 = vst.msk [vmem:[#allocation2 + $0x91] sm:$0xff] %vm311_vm0, %v2460_v0  ;;  %v2463_v45 = vmax.f32 %v2431_v62, 0.0  ;;  %v2430_v38 = vadd.f32 %v6311_v60, %v2391_v8  ;;  %2658 = vrot.lane.b32.xlu0 %v6404_v7, %s5003_s8  ;;  %v6414_v37 = vld [vmem:[#allocation2 + $0x60] sm:$0xff] }
 0x325   : > { %2555 = vst.msk [vmem:[#allocation3 + $0x48] sm:$0xff] %vm311_vm0, %v6406_v48  ;;  %v2589_v36 = vld [vmem:[#allocation2 + $0x81] sm:$0xff]  ;;  %2554 = vst.msk [vmem:[#allocation3 + $0x40] sm:$0xff] %vm311_vm0, %v6414_v37 }
 0x326   : > { %2495 = vst.msk [vmem:[#allocation2 + $0xb1] sm:$0xff] %vm311_vm0, %v2463_v45  ;;  %v2462_v35 = vmax.f32 %v2430_v38, 0.0  ;;  %2664 = vrot.lane.b32.xlu1 %v2589_v36, %s5003_s8 }
 0x327   : > { %v4894_v28 = vpop.f32.mrf.mxu0  ;;  %v6420_v33 = vld [vmem:[#allocation2 + $0x79] sm:$0xff] }
 0x328   : > { %v6422_v21 = vld [vmem:[#allocation2 + $0x80] sm:$0xff]  ;;  %2494 = vst.msk [vmem:[#allocation2 + $0xa9] sm:$0xff] %vm311_vm0, %v2462_v35  ;;  %v2394_v29 = vmul.f32 %v4894_v28, %v6304_v59  ;;  %2662 = vrot.lane.b32.xlu0 %v6420_v33, %s5003_s8  ;;  %v6430_v17 = vld [vmem:[#allocation2 + $0x78] sm:$0xff] }
 0x329   : > { %2557 = vst.msk [vmem:[#allocation3 + $0x58] sm:$0xff] %vm311_vm0, %v6422_v21  ;;  %v2283_v22 = vpop.f32.mrf.mxu0  ;;  %v2591_v41 = vld [vmem:[#allocation2 + $0x99] sm:$0xff]  ;;  %2556 = vst.msk [vmem:[#allocation3 + $0x50] sm:$0xff] %vm311_vm0, %v6430_v17 }
 0x32a   : > { %v2433_v13 = vadd.f32 %v6311_v60, %v2394_v29  ;;  %v2393_v18 = vmul.f32 %v6304_v59, %v2283_v22  ;;  %2668 = vrot.lane.b32.xlu1 %v2591_v41, %s5003_s8 }
 0x32b   : > { %v2590_v42 = vld [vmem:[#allocation2 + $0x91] sm:$0xff] }
 0x32c   : > { %v6437_v2 = vld [vmem:[#allocation2 + $0x98] sm:$0xff]  ;;  %v2465_v43 = vmax.f32 %v2433_v13, 0.0  ;;  %v2432_v11 = vadd.f32 %v6311_v60, %v2393_v18  ;;  %2666 = vrot.lane.b32.xlu0 %v2590_v42, %s5003_s8  ;;  %v6443_v14 = vld [vmem:[#allocation2 + $0x90] sm:$0xff] }
 0x32d   : > { %2559 = vst.msk [vmem:[#allocation3 + $0x68] sm:$0xff] %vm311_vm0, %v6437_v2  ;;  %v2593_v44 = vld [vmem:[#allocation2 + $0xb1] sm:$0xff]  ;;  %2558 = vst.msk [vmem:[#allocation3 + $0x60] sm:$0xff] %vm311_vm0, %v6443_v14 }
 0x32e   : > { %2497 = vst.msk [vmem:[#allocation2 + $0xc9] sm:$0xff] %vm311_vm0, %v2465_v43  ;;  %v2464_v47 = vmax.f32 %v2432_v11, 0.0  ;;  %2672 = vrot.lane.b32.xlu1 %v2593_v44, %s5003_s8 }
 0x32f   : > { %v4897_v27 = vpop.f32.mrf.mxu0  ;;  %v2592_v50 = vld [vmem:[#allocation2 + $0xa9] sm:$0xff] }
 0x330   : > { %v6449_v3 = vld [vmem:[#allocation2 + $0xb0] sm:$0xff]  ;;  %2496 = vst.msk [vmem:[#allocation2 + $0xc1] sm:$0xff] %vm311_vm0, %v2464_v47  ;;  %v2396_v56 = vmul.f32 %v4897_v27, %v6304_v59  ;;  %2670 = vrot.lane.b32.xlu0 %v2592_v50, %s5003_s8  ;;  %v6456_v63 = vld [vmem:[#allocation2 + $0xa8] sm:$0xff] }
 0x331   : > { %2561 = vst.msk [vmem:[#allocation3 + $0x78] sm:$0xff] %vm311_vm0, %v6449_v3  ;;  %v2293_v34 = vpop.f32.mrf.mxu0  ;;  %2560 = vst.msk [vmem:[#allocation3 + $0x70] sm:$0xff] %vm311_vm0, %v6456_v63 }
 0x332   : > { %v2435_v24 = vadd.f32 %v6311_v60, %v2396_v56  ;;  %v2395_v20 = vmul.f32 %v6304_v59, %v2293_v34 }
 0x334   : > { %v2467_v15 = vmax.f32 %v2435_v24, 0.0  ;;  %v2434_v10 = vadd.f32 %v6311_v60, %v2395_v20 }
 0x335   : > { %v2595_v16 = vld [vmem:[#allocation2 + $0xc9] sm:$0xff] }
 0x336   : > { %2499 = vst.msk [vmem:[#allocation2 + $0xe1] sm:$0xff] %vm311_vm0, %v2467_v15  ;;  %v2466_v12 = vmax.f32 %v2434_v10, 0.0  ;;  %2676 = vrot.lane.b32.xlu1 %v2595_v16, %s5003_s8 }
 0x337   : > { %v4900_v25 = vpop.f32.mrf.mxu0  ;;  %v2594_v46 = vld [vmem:[#allocation2 + $0xc1] sm:$0xff] }
 0x338   : > { %v6465_v30 = vld [vmem:[#allocation2 + $0xc8] sm:$0xff]  ;;  %2498 = vst.msk [vmem:[#allocation2 + $0xd9] sm:$0xff] %vm311_vm0, %v2466_v12  ;;  %v2398_v32 = vmul.f32 %v4900_v25, %v6304_v59  ;;  %2674 = vrot.lane.b32.xlu0 %v2594_v46, %s5003_s8  ;;  %v6472_v4 = vld [vmem:[#allocation2 + $0xc0] sm:$0xff] }
 0x339   : > { %2563 = vst.msk [vmem:[#allocation3 + $0x88] sm:$0xff] %vm311_vm0, %v6465_v30  ;;  %v2303_v39 = vpop.f32.mrf.mxu0  ;;  %2562 = vst.msk [vmem:[#allocation3 + $0x80] sm:$0xff] %vm311_vm0, %v6472_v4 }
 0x33a   : > { %v2437_v9 = vadd.f32 %v6311_v60, %v2398_v32  ;;  %v2397_v54 = vmul.f32 %v6304_v59, %v2303_v39 }
 0x33c   : > { %v2469_v52 = vmax.f32 %v2437_v9, 0.0  ;;  %v2436_v57 = vadd.f32 %v6311_v60, %v2397_v54 }
 0x33d   : > { %v2597_v58 = vld [vmem:[#allocation2 + $0xe1] sm:$0xff] }
 0x33e   : > { %2501 = vst.msk [vmem:[#allocation2 + $0xf9] sm:$0xff] %vm311_vm0, %v2469_v52  ;;  %v2468_v0 = vmax.f32 %v2436_v57, 0.0  ;;  %2680 = vrot.lane.b32.xlu1 %v2597_v58, %s5003_s8 }
 0x33f   : > { %v4903_v62 = vpop.f32.mrf.mxu0  ;;  %v2596_v8 = vld [vmem:[#allocation2 + $0xd9] sm:$0xff] }
 0x340   : > { %v6481_v45 = vld [vmem:[#allocation2 + $0xe0] sm:$0xff]  ;;  %2500 = vst.msk [vmem:[#allocation2 + $0xf1] sm:$0xff] %vm311_vm0, %v2468_v0  ;;  %v2400_v38 = vmul.f32 %v4903_v62, %v6304_v59  ;;  %2678 = vrot.lane.b32.xlu0 %v2596_v8, %s5003_s8  ;;  %v6488_v36 = vld [vmem:[#allocation2 + $0xd8] sm:$0xff] }
 0x341   : > { %2565 = vst.msk [vmem:[#allocation3 + $0x98] sm:$0xff] %vm311_vm0, %v6481_v45  ;;  %v2313_v35 = vpop.f32.mrf.mxu0  ;;  %2564 = vst.msk [vmem:[#allocation3 + $0x90] sm:$0xff] %vm311_vm0, %v6488_v36 }
 0x342   : > { %v2439_v28 = vadd.f32 %v6311_v60, %v2400_v38  ;;  %v2399_v29 = vmul.f32 %v6304_v59, %v2313_v35 }
 0x344   : > { %v2471_v22 = vmax.f32 %v2439_v28, 0.0  ;;  %v2438_v41 = vadd.f32 %v6311_v60, %v2399_v29 }
 0x345   : > { %v2599_v13 = vld [vmem:[#allocation2 + $0xf9] sm:$0xff] }
 0x346   : > { %2503 = vst.msk [vmem:[#allocation2 + $0x111] sm:$0xff] %vm311_vm0, %v2471_v22  ;;  %v2470_v18 = vmax.f32 %v2438_v41, 0.0  ;;  %2684 = vrot.lane.b32.xlu1 %v2599_v13, %s5003_s8 }
 0x347   : > { %v4906_v42 = vpop.f32.mrf.mxu0  ;;  %v2598_v43 = vld [vmem:[#allocation2 + $0xf1] sm:$0xff] }
 0x348   : > { %v6497_v11 = vld [vmem:[#allocation2 + $0xf8] sm:$0xff]  ;;  %2502 = vst.msk [vmem:[#allocation2 + $0x109] sm:$0xff] %vm311_vm0, %v2470_v18  ;;  %v2402_v44 = vmul.f32 %v4906_v42, %v6304_v59  ;;  %2682 = vrot.lane.b32.xlu0 %v2598_v43, %s5003_s8  ;;  %v6504_v47 = vld [vmem:[#allocation2 + $0xf0] sm:$0xff] }
 0x349   : > { %2567 = vst.msk [vmem:[#allocation3 + $0xa8] sm:$0xff] %vm311_vm0, %v6497_v11  ;;  %v2323_v27 = vpop.f32.mrf.mxu0  ;;  %2566 = vst.msk [vmem:[#allocation3 + $0xa0] sm:$0xff] %vm311_vm0, %v6504_v47 }
 0x34a   : > { %v2441_v50 = vadd.f32 %v6311_v60, %v2402_v44  ;;  %v2401_v56 = vmul.f32 %v6304_v59, %v2323_v27 }
 0x34c   : > { %v2473_v34 = vmax.f32 %v2441_v50, 0.0  ;;  %v2440_v24 = vadd.f32 %v6311_v60, %v2401_v56 }
 0x34d   : > { %v2601_v20 = vld [vmem:[#allocation2 + $0x111] sm:$0xff] }
 0x34e   : > { %2505 = vst.msk [vmem:[#allocation2 + $0x129] sm:$0xff] %vm311_vm0, %v2473_v34  ;;  %v2472_v15 = vmax.f32 %v2440_v24, 0.0  ;;  %2688 = vrot.lane.b32.xlu1 %v2601_v20, %s5003_s8 }
 0x34f   : > { %v4909_v10 = vpop.f32.mrf.mxu0  ;;  %v2600_v16 = vld [vmem:[#allocation2 + $0x109] sm:$0xff] }
 0x350   : > { %v6513_v12 = vld [vmem:[#allocation2 + $0x110] sm:$0xff]  ;;  %2504 = vst.msk [vmem:[#allocation2 + $0x121] sm:$0xff] %vm311_vm0, %v2472_v15  ;;  %v2404_v25 = vmul.f32 %v4909_v10, %v6304_v59  ;;  %2686 = vrot.lane.b32.xlu0 %v2600_v16, %s5003_s8  ;;  %v6520_v46 = vld [vmem:[#allocation2 + $0x108] sm:$0xff] }
 0x351   : > { %2569 = vst.msk [vmem:[#allocation3 + $0xb8] sm:$0xff] %vm311_vm0, %v6513_v12  ;;  %v2333_v32 = vpop.f32.mrf.mxu0  ;;  %2568 = vst.msk [vmem:[#allocation3 + $0xb0] sm:$0xff] %vm311_vm0, %v6520_v46 }
 0x352   : > { %v2443_v39 = vadd.f32 %v6311_v60, %v2404_v25  ;;  %v2403_v9 = vmul.f32 %v6304_v59, %v2333_v32 }
 0x354   : > { %v2475_v54 = vmax.f32 %v2443_v39, 0.0  ;;  %v2442_v52 = vadd.f32 %v6311_v60, %v2403_v9 }
 0x355   : > { %v2603_v57 = vld [vmem:[#allocation2 + $0x129] sm:$0xff] }
 0x356   : > { %2507 = vst.msk [vmem:[#allocation2 + $0x141] sm:$0xff] %vm311_vm0, %v2475_v54  ;;  %v2474_v58 = vmax.f32 %v2442_v52, 0.0  ;;  %2692 = vrot.lane.b32.xlu1 %v2603_v57, %s5003_s8  ;;  %v2771_v57 = vld [vmem:[#allocation2 + $0xa] sm:$0xff] }
 0x357   : > { %v4912_v0 = vpop.f32.mrf.mxu0  ;;  %v2602_v62 = vld [vmem:[#allocation2 + $0x121] sm:$0xff] }
 0x358   : > { %v6529_v8 = vld [vmem:[#allocation2 + $0x128] sm:$0xff]  ;;  %2506 = vst.msk [vmem:[#allocation2 + $0x139] sm:$0xff] %vm311_vm0, %v2474_v58  ;;  %v2406_v38 = vmul.f32 %v4912_v0, %v6304_v59  ;;  %2690 = vrot.lane.b32.xlu0 %v2602_v62, %s5003_s8  ;;  %v6536_v35 = vld [vmem:[#allocation2 + $0x120] sm:$0xff] }
 0x359   : > { %2571 = vst.msk [vmem:[#allocation3 + $0xc8] sm:$0xff] %vm311_vm0, %v6529_v8  ;;  %v2343_v28 = vpop.f32.mrf.mxu0  ;;  %2570 = vst.msk [vmem:[#allocation3 + $0xc0] sm:$0xff] %vm311_vm0, %v6536_v35  ;;  %v2770_v62 = vld [vmem:[#allocation2 + $0x2] sm:$0xff] }
 0x35a   : > { %v2445_v29 = vadd.f32 %v6311_v60, %v2406_v38  ;;  %v2405_v22 = vmul.f32 %v6304_v59, %v2343_v28  ;;  %v6568_v38 = vld [vmem:[#allocation2 + $0x22] sm:$0xff]  ;;  %v6572_v28 = vld [vmem:[#allocation2 + $0x1a] sm:$0xff] }
 0x35c   : > { %v2477_v41 = vmax.f32 %v2445_v29, 0.0  ;;  %v2444_v13 = vadd.f32 %v6311_v60, %v2405_v22  ;;  %v6576_v29 = vld [vmem:[#allocation2 + $0x3a] sm:$0xff]  ;;  %v6580_v22 = vld [vmem:[#allocation2 + $0x32] sm:$0xff] }
 0x35d   : > { %v2605_v18 = vld [vmem:[#allocation2 + $0x141] sm:$0xff] }
 0x35e   : > { %2509 = vst.msk [vmem:[#allocation2 + $0x159] sm:$0xff] %vm311_vm0, %v2477_v41  ;;  %v2476_v42 = vmax.f32 %v2444_v13, 0.0  ;;  %2696 = vrot.lane.b32.xlu1 %v2605_v18, %s5003_s8  ;;  %v6584_v41 = vld [vmem:[#allocation2 + $0x52] sm:$0xff]  ;;  %v6588_v13 = vld [vmem:[#allocation2 + $0x4a] sm:$0xff] }
 0x35f   : > { %v4915_v43 = vpop.f32.mrf.mxu0  ;;  %v2604_v44 = vld [vmem:[#allocation2 + $0x139] sm:$0xff]  ;;  %v6592_v18 = vld [vmem:[#allocation2 + $0x6a] sm:$0xff] }
 0x360   : > { %v2541_v27 = vld [vmem:[#allocation2 + $0x140] sm:$0xff]  ;;  %2508 = vst.msk [vmem:[#allocation2 + $0x151] sm:$0xff] %vm311_vm0, %v2476_v42  ;;  %v2408_v50 = vmul.f32 %v4915_v43, %v6304_v59  ;;  %2694 = vrot.lane.b32.xlu0 %v2604_v44, %s5003_s8  ;;  %v6549_v56 = vld [vmem:[#allocation2 + $0x138] sm:$0xff] }
 0x361   : > { %2573 = vst.msk [vmem:[#allocation3 + $0xd8] sm:$0xff] %vm311_vm0, %v2541_v27  ;;  %v2353_v34 = vpop.f32.mrf.mxu0  ;;  %2572 = vst.msk [vmem:[#allocation3 + $0xd0] sm:$0xff] %vm311_vm0, %v6549_v56  ;;  %v6596_v42 = vld [vmem:[#allocation2 + $0x62] sm:$0xff]  ;;  %v6604_v44 = vld [vmem:[#allocation2 + $0x7a] sm:$0xff] }
 0x362   : > { %v2447_v24 = vadd.f32 %v6311_v60, %v2408_v50  ;;  %v2407_v20 = vmul.f32 %v6304_v59, %v2353_v34  ;;  %v6600_v43 = vld [vmem:[#allocation2 + $0x82] sm:$0xff]  ;;  %v6609_v50 = vld [vmem:[#allocation2 + $0x9a] sm:$0xff] }
 0x364   : > { %v2479_v15 = vmax.f32 %v2447_v24, 0.0  ;;  %v2446_v10 = vadd.f32 %v6311_v60, %v2407_v20  ;;  %v6614_v24 = vld [vmem:[#allocation2 + $0x92] sm:$0xff] }
 0x365   : > { %v2607_v16 = vld [vmem:[#allocation2 + $0x159] sm:$0xff] }
 0x366   : > { %2511 = vst.msk [vmem:[#allocation2 + $0x171] sm:$0xff] %vm311_vm0, %v2479_v15  ;;  %v2478_v25 = vmax.f32 %v2446_v10, 0.0  ;;  %2700 = vrot.lane.b32.xlu1 %v2607_v16, %s5003_s8  ;;  %v6619_v15 = vld [vmem:[#allocation2 + $0xb2] sm:$0xff]  ;;  %v6624_v16 = vld [vmem:[#allocation2 + $0xaa] sm:$0xff] }
 0x367   : > { %v2606_v32 = vld [vmem:[#allocation2 + $0x151] sm:$0xff] }
 0x368   : > { %v2543_v39 = vld [vmem:[#allocation2 + $0x158] sm:$0xff]  ;;  %2510 = vst.msk [vmem:[#allocation2 + $0x169] sm:$0xff] %vm311_vm0, %v2478_v25  ;;  %2698 = vrot.lane.b32.xlu0 %v2606_v32, %s5003_s8  ;;  %v2542_v9 = vld [vmem:[#allocation2 + $0x150] sm:$0xff] }
 0x369   : > { %2575 = vst.msk [vmem:[#allocation3 + $0xe8] sm:$0xff] %vm311_vm0, %v2543_v39  ;;  %2574 = vst.msk [vmem:[#allocation3 + $0xe0] sm:$0xff] %vm311_vm0, %v2542_v9  ;;  %v6629_v32 = vld [vmem:[#allocation2 + $0xca] sm:$0xff]  ;;  %v6634_v9 = vld [vmem:[#allocation2 + $0xc2] sm:$0xff] }
 0x36d   : > { %v2609_v54 = vld [vmem:[#allocation2 + $0x171] sm:$0xff] }
 0x36e   : > { %2704 = vrot.lane.b32.xlu1 %v2609_v54, %s5003_s8 }
 0x36f   : > { %v2608_v52 = vld [vmem:[#allocation2 + $0x169] sm:$0xff] }
 0x370   : > { %v2545_v58 = vld [vmem:[#allocation2 + $0x170] sm:$0xff]  ;;  %2702 = vrot.lane.b32.xlu0 %v2608_v52, %s5003_s8  ;;  %v2544_v0 = vld [vmem:[#allocation2 + $0x168] sm:$0xff] }
 0x371   : > { %2577 = vst.msk [vmem:[#allocation3 + $0xf8] sm:$0xff] %vm311_vm0, %v2545_v58  ;;  %2576 = vst.msk [vmem:[#allocation3 + $0xf0] sm:$0xff] %vm311_vm0, %v2544_v0  ;;  %v2789_v52 = vld [vmem:[#allocation2 + $0xe2] sm:$0xff]  ;;  %v2788_v58 = vld [vmem:[#allocation2 + $0xda] sm:$0xff] }
 0x372   : > { %2836 = vrot.lane.b32.xlu1 %v2771_v57, %s5004_s9 }
 0x374   : > { %2834 = vrot.lane.b32.xlu0 %v2770_v62, %s5004_s9  ;;  %v2791_v62 = vld [vmem:[#allocation2 + $0xfa] sm:$0xff] }
 0x376   : > { %2840 = vrot.lane.b32.xlu1 %v6568_v38, %s5004_s9 }
 0x378   : > { %2838 = vrot.lane.b32.xlu0 %v6572_v28, %s5004_s9 }
 0x37a   : > { %2844 = vrot.lane.b32.xlu1 %v6576_v29, %s5004_s9 }
 0x37c   : > { %2842 = vrot.lane.b32.xlu0 %v6580_v22, %s5004_s9 }
 0x37e   : > { %2848 = vrot.lane.b32.xlu1 %v6584_v41, %s5004_s9 }
 0x380   : > { %2846 = vrot.lane.b32.xlu0 %v6588_v13, %s5004_s9 }
 0x382   : > { %2852 = vrot.lane.b32.xlu1 %v6592_v18, %s5004_s9 }
 0x384   : > { %2850 = vrot.lane.b32.xlu0 %v6596_v42, %s5004_s9 }
 0x386   : > { %2856 = vrot.lane.b32.xlu1 %v6600_v43, %s5004_s9 }
 0x388   : > { %v2649_v27 = vpop.permute.xlu1 %2648  ;;  %2854 = vrot.lane.b32.xlu0 %v6604_v44, %s5004_s9 }
 0x389   : > { %2741 = vst.msk [vmem:[#allocation3 + $0x18] sm:$0xff] %vm624_vm2, %v2649_v27 }
 0x38a   : > { %v2647_v34 = vpop.permute.xlu0 %2646  ;;  %2860 = vrot.lane.b32.xlu1 %v6609_v50, %s5004_s9 }
 0x38b   : > { %2740 = vst.msk [vmem:[#allocation3 + $0x10] sm:$0xff] %vm624_vm2, %v2647_v34  ;;  %v2790_v34 = vld [vmem:[#allocation2 + $0xf2] sm:$0xff] }
 0x38c   : > { %v2653_v20 = vpop.permute.xlu1 %2652  ;;  %2858 = vrot.lane.b32.xlu0 %v6614_v24, %s5004_s9 }
 0x38d   : > { %2743 = vst.msk [vmem:[#allocation3 + $0x28] sm:$0xff] %vm624_vm2, %v2653_v20 }
 0x38e   : > { %v2651_v10 = vpop.permute.xlu0 %2650  ;;  %2864 = vrot.lane.b32.xlu1 %v6619_v15, %s5004_s9 }
 0x38f   : > { %2742 = vst.msk [vmem:[#allocation3 + $0x20] sm:$0xff] %vm624_vm2, %v2651_v10  ;;  %v2793_v10 = vld [vmem:[#allocation2 + $0x112] sm:$0xff] }
 0x390   : > { %v2657_v25 = vpop.permute.xlu1 %2656  ;;  %2862 = vrot.lane.b32.xlu0 %v6624_v16, %s5004_s9 }
 0x391   : > { %2745 = vst.msk [vmem:[#allocation3 + $0x38] sm:$0xff] %vm624_vm2, %v2657_v25 }
 0x392   : > { %v2655_v39 = vpop.permute.xlu0 %2654  ;;  %2868 = vrot.lane.b32.xlu1 %v6629_v32, %s5004_s9 }
 0x393   : > { %2744 = vst.msk [vmem:[#allocation3 + $0x30] sm:$0xff] %vm624_vm2, %v2655_v39  ;;  %v2792_v39 = vld [vmem:[#allocation2 + $0x10a] sm:$0xff] }
 0x394   : > { %v2661_v54 = vpop.permute.xlu1 %2660  ;;  %2866 = vrot.lane.b32.xlu0 %v6634_v9, %s5004_s9 }
 0x395   : > { %2747 = vst.msk [vmem:[#allocation3 + $0x48] sm:$0xff] %vm624_vm2, %v2661_v54 }
 0x396   : > { %v2659_v57 = vpop.permute.xlu0 %2658  ;;  %2872 = vrot.lane.b32.xlu1 %v2789_v52, %s5004_s9  ;;  %v2795_v52 = vld [vmem:[#allocation2 + $0x12a] sm:$0xff] }
 0x397   : > { %2746 = vst.msk [vmem:[#allocation3 + $0x40] sm:$0xff] %vm624_vm2, %v2659_v57 }
 0x398   : > { %v2665_v0 = vpop.permute.xlu1 %2664  ;;  %2870 = vrot.lane.b32.xlu0 %v2788_v58, %s5004_s9  ;;  %v2794_v58 = vld [vmem:[#allocation2 + $0x122] sm:$0xff] }
 0x399   : > { %2749 = vst.msk [vmem:[#allocation3 + $0x58] sm:$0xff] %vm624_vm2, %v2665_v0  ;;  %v2797_v0 = vld [vmem:[#allocation2 + $0x142] sm:$0xff] }
 0x39a   : > { %v2663_v27 = vpop.permute.xlu0 %2662  ;;  %2876 = vrot.lane.b32.xlu1 %v2791_v62, %s5004_s9  ;;  %v2796_v62 = vld [vmem:[#allocation2 + $0x13a] sm:$0xff] }
 0x39b   : > { %2748 = vst.msk [vmem:[#allocation3 + $0x50] sm:$0xff] %vm624_vm2, %v2663_v27 }
 0x39c   : > { %v2669_v20 = vpop.permute.xlu1 %2668  ;;  %2874 = vrot.lane.b32.xlu0 %v2790_v34, %s5004_s9  ;;  %v2799_v34 = vld [vmem:[#allocation2 + $0x15a] sm:$0xff] }
 0x39d   : > { %2751 = vst.msk [vmem:[#allocation3 + $0x68] sm:$0xff] %vm624_vm2, %v2669_v20 }
 0x39e   : > { %v2667_v25 = vpop.permute.xlu0 %2666  ;;  %2880 = vrot.lane.b32.xlu1 %v2793_v10, %s5004_s9  ;;  %v2798_v10 = vld [vmem:[#allocation2 + $0x152] sm:$0xff] }
 0x39f   : > { %2750 = vst.msk [vmem:[#allocation3 + $0x60] sm:$0xff] %vm624_vm2, %v2667_v25  ;;  %v2801_v25 = vld [vmem:[#allocation2 + $0x172] sm:$0xff] }
 0x3a0   : > { %v2673_v54 = vpop.permute.xlu1 %2672  ;;  %2878 = vrot.lane.b32.xlu0 %v2792_v39, %s5004_s9  ;;  %v2800_v39 = vld [vmem:[#allocation2 + $0x16a] sm:$0xff] }
 0x3a1   : > { %2753 = vst.msk [vmem:[#allocation3 + $0x78] sm:$0xff] %vm624_vm2, %v2673_v54 }
 0x3a2   : > { %v2671_v57 = vpop.permute.xlu0 %2670  ;;  %2884 = vrot.lane.b32.xlu1 %v2795_v52, %s5004_s9 }
 0x3a3   : > { %2752 = vst.msk [vmem:[#allocation3 + $0x70] sm:$0xff] %vm624_vm2, %v2671_v57 }
 0x3a4   : > { %2882 = vrot.lane.b32.xlu0 %v2794_v58, %s5004_s9 }
 0x3a6   : > { %2888 = vrot.lane.b32.xlu1 %v2797_v0, %s5004_s9 }
 0x3a8   : > { %v2677_v27 = vpop.permute.xlu1 %2676  ;;  %2886 = vrot.lane.b32.xlu0 %v2796_v62, %s5004_s9 }
 0x3a9   : > { %2755 = vst.msk [vmem:[#allocation3 + $0x88] sm:$0xff] %vm624_vm2, %v2677_v27 }
 0x3aa   : > { %v2675_v20 = vpop.permute.xlu0 %2674  ;;  %2892 = vrot.lane.b32.xlu1 %v2799_v34, %s5004_s9 }
 0x3ab   : > { %2754 = vst.msk [vmem:[#allocation3 + $0x80] sm:$0xff] %vm624_vm2, %v2675_v20 }
 0x3ac   : > { %2890 = vrot.lane.b32.xlu0 %v2798_v10, %s5004_s9 }
 0x3ae   : > { %2896 = vrot.lane.b32.xlu1 %v2801_v25, %s5004_s9 }
 0x3b0   : > { %v2681_v54 = vpop.permute.xlu1 %2680  ;;  %2894 = vrot.lane.b32.xlu0 %v2800_v39, %s5004_s9 }
 0x3b1   : > { %2757 = vst.msk [vmem:[#allocation3 + $0x98] sm:$0xff] %vm624_vm2, %v2681_v54 }
 0x3b2   : > { %v2679_v52 = vpop.permute.xlu0 %2678  ;;  %3028 = vrot.lane.b32.xlu1 %v6340_v31, %s5005_s10 }
 0x3b3   : > { %2756 = vst.msk [vmem:[#allocation3 + $0x90] sm:$0xff] %vm624_vm2, %v2679_v52 }
 0x3b4   : > { %3026 = vrot.lane.b32.xlu0 %v6349_v23, %s5005_s10 }
 0x3b6   : > { %3032 = vrot.lane.b32.xlu1 %v6362_v1, %s5005_s10 }
 0x3b8   : > { %v2685_v57 = vpop.permute.xlu1 %2684  ;;  %3030 = vrot.lane.b32.xlu0 %v6371_v5, %s5005_s10 }
 0x3b9   : > { %2759 = vst.msk [vmem:[#allocation3 + $0xa8] sm:$0xff] %vm624_vm2, %v2685_v57 }
 0x3ba   : > { %v2683_v58 = vpop.permute.xlu0 %2682  ;;  %3036 = vrot.lane.b32.xlu1 %v6384_v40, %s5005_s10 }
 0x3bb   : > { %2758 = vst.msk [vmem:[#allocation3 + $0xa0] sm:$0xff] %vm624_vm2, %v2683_v58 }
 0x3bc   : > { %3034 = vrot.lane.b32.xlu0 %v6393_v55, %s5005_s10 }
 0x3be   : > { %3040 = vrot.lane.b32.xlu1 %v6406_v48, %s5005_s10 }
 0x3c0   : > { %v2689_v31 = vpop.permute.xlu1 %2688  ;;  %3038 = vrot.lane.b32.xlu0 %v6414_v37, %s5005_s10 }
 0x3c1   : > { %2761 = vst.msk [vmem:[#allocation3 + $0xb8] sm:$0xff] %vm624_vm2, %v2689_v31 }
 0x3c2   : > { %v2687_v23 = vpop.permute.xlu0 %2686  ;;  %3044 = vrot.lane.b32.xlu1 %v6422_v21, %s5005_s10 }
 0x3c3   : > { %2760 = vst.msk [vmem:[#allocation3 + $0xb0] sm:$0xff] %vm624_vm2, %v2687_v23 }
 0x3c4   : > { %3042 = vrot.lane.b32.xlu0 %v6430_v17, %s5005_s10 }
 0x3c6   : > { %3048 = vrot.lane.b32.xlu1 %v6437_v2, %s5005_s10 }
 0x3c8   : > { %v2693_v0 = vpop.permute.xlu1 %2692  ;;  %3046 = vrot.lane.b32.xlu0 %v6443_v14, %s5005_s10 }
 0x3c9   : > { %2763 = vst.msk [vmem:[#allocation3 + $0xc8] sm:$0xff] %vm624_vm2, %v2693_v0  ;;  %v4148_v0 = vld [vmem:[%s7422_s4 + $0x10] sm:$0xff] }
 0x3ca   : > { %v2691_v62 = vpop.permute.xlu0 %2690  ;;  %3052 = vrot.lane.b32.xlu1 %v6449_v3, %s5005_s10 }
 0x3cb   : > { %2762 = vst.msk [vmem:[#allocation3 + $0xc0] sm:$0xff] %vm624_vm2, %v2691_v62 }
 0x3cc   : > { %3050 = vrot.lane.b32.xlu0 %v6456_v63, %s5005_s10 }
 0x3ce   : > { %3056 = vrot.lane.b32.xlu1 %v6465_v30, %s5005_s10 }
 0x3d0   : > { %v2697_v27 = vpop.permute.xlu1 %2696  ;;  %3054 = vrot.lane.b32.xlu0 %v6472_v4, %s5005_s10 }
 0x3d1   : > { %2765 = vst.msk [vmem:[#allocation3 + $0xd8] sm:$0xff] %vm624_vm2, %v2697_v27 }
 0x3d2   : > { %v2695_v34 = vpop.permute.xlu0 %2694  ;;  %3060 = vrot.lane.b32.xlu1 %v6481_v45, %s5005_s10 }
 0x3d3   : > { %2764 = vst.msk [vmem:[#allocation3 + $0xd0] sm:$0xff] %vm624_vm2, %v2695_v34 }
 0x3d4   : > { %3058 = vrot.lane.b32.xlu0 %v6488_v36, %s5005_s10 }
 0x3d6   : > { %3064 = vrot.lane.b32.xlu1 %v6497_v11, %s5005_s10 }
 0x3d8   : > { %v2701_v20 = vpop.permute.xlu1 %2700  ;;  %3062 = vrot.lane.b32.xlu0 %v6504_v47, %s5005_s10 }
 0x3d9   : > { %2767 = vst.msk [vmem:[#allocation3 + $0xe8] sm:$0xff] %vm624_vm2, %v2701_v20 }
 0x3da   : > { %v2699_v10 = vpop.permute.xlu0 %2698  ;;  %3068 = vrot.lane.b32.xlu1 %v6513_v12, %s5005_s10 }
 0x3db   : > { %2766 = vst.msk [vmem:[#allocation3 + $0xe0] sm:$0xff] %vm624_vm2, %v2699_v10 }
 0x3dc   : > { %3066 = vrot.lane.b32.xlu0 %v6520_v46, %s5005_s10 }
 0x3de   : > { %3072 = vrot.lane.b32.xlu1 %v6529_v8, %s5005_s10 }
 0x3e0   : > { %v2705_v25 = vpop.permute.xlu1 %2704  ;;  %3070 = vrot.lane.b32.xlu0 %v6536_v35, %s5005_s10 }
 0x3e1   : > { %2769 = vst.msk [vmem:[#allocation3 + $0xf8] sm:$0xff] %vm624_vm2, %v2705_v25 }
 0x3e2   : > { %3218 = vrot.lane.b32.xlu1 %v6338_v53, %s5006_s11  ;;  %v2703_v39 = vpop.permute.xlu0 %2702 }
 0x3e3   : > { %2768 = vst.msk [vmem:[#allocation3 + $0xf0] sm:$0xff] %vm624_vm2, %v2703_v39 }
 0x3e4   : > { %v2837_v54 = vpop.permute.xlu1 %2836  ;;  %3074 = vrot.lane.b32.xlu0 %v6549_v56, %s5005_s10  ;;  %v4918_v56 = vpop.f32.mrf.mxu0 }
 0x3e5   : > { %2931 = vst.msk [vmem:[#allocation3 + $0x8] sm:$0xff] %vm817_vm3, %v2837_v54  ;;  %v2410_v58 = vmul.f32 %v4918_v56, %v6304_v59 }
 0x3e6   : > { %3410 = vrot.lane.b32.xlu1 %v6572_v28, %s5007_s12  ;;  %v2835_v8 = vpop.permute.xlu0 %2834  ;;  %v4150_v28 = vld [vmem:[%s7422_s4 + $0x20] sm:$0xf] }
 0x3e7   : > { %2930 = vst.msk [vmem:[#allocation3] sm:$0xff] %vm817_vm3, %v2835_v8  ;;  %4919 = vmatprep.subr.msk.mxu1 %vm2143_vm7, %v4150_v28  ;;  %v2449_v23 = vadd.f32 %v6311_v60, %v2410_v58 }
 0x3e8   : > { %v2841_v52 = vpop.permute.xlu1 %2840  ;;  %3220 = vrot.lane.b32.xlu0 %v6331_v26, %s5006_s11  ;;  %4920 = vmatpush3.msk.msra.mxu1 %vm2143_vm7, %v4150_v28  ;;  %v2363_v26 = vpop.f32.mrf.mxu0 }
 0x3e9   : > { %2933 = vst.msk [vmem:[#allocation3 + $0x18] sm:$0xff] %vm817_vm3, %v2841_v52  ;;  %v2481_v27 = vmax.f32 %v2449_v23, 0.0 }
 0x3ea   : > { %3602 = vrot.lane.b32.xlu1 %v6371_v5, %s5008_s13  ;;  %v2839_v53 = vpop.permute.xlu0 %2838  ;;  %v4149_v5 = vld [vmem:[%s7422_s4 + $0x18] sm:$0xff] }
 0x3eb   : > { %2932 = vst.msk [vmem:[#allocation3 + $0x10] sm:$0xff] %vm817_vm3, %v2839_v53  ;;  %4921 = vmatprep.subr.mxu1 %v4149_v5 }
 0x3ec   : > { %v2845_v57 = vpop.permute.xlu1 %2844  ;;  %3412 = vrot.lane.b32.xlu0 %v6568_v38, %s5007_s12  ;;  %v2409_v38 = vmul.f32 %v6304_v59, %v2363_v26  ;;  %4922 = vmatpush3.msra.mxu1 %v4149_v5  ;;  %v4147_v59 = vld [vmem:[%s7422_s4 + $0x8] sm:$0xff]  ;;  %2513 = vst.msk [vmem:[#allocation2 + $0x189] sm:$0xff] %vm311_vm0, %v2481_v27 }
 0x3ed   : > { %2935 = vst.msk [vmem:[#allocation3 + $0x28] sm:$0xff] %vm817_vm3, %v2845_v57  ;;  %4923 = vmatprep.subr.mxu1 %v4148_v0 }
 0x3ee   : > { %3794 = vrot.lane.b32.xlu1 %v6360_v49, %s5009_s14  ;;  %v2843_v31 = vpop.permute.xlu0 %2842  ;;  %v2448_v34 = vadd.f32 %v6311_v60, %v2409_v38  ;;  %4924 = vmatpush3.msra.mxu1 %v4148_v0  ;;  %v4146_v60 = vld [vmem:[%s7422_s4] sm:$0xff] }
 0x3ef   : > { %2934 = vst.msk [vmem:[#allocation3 + $0x20] sm:$0xff] %vm817_vm3, %v2843_v31  ;;  %4925 = vmatprep.subr.mxu1 %v4147_v59 }
 0x3f0   : > { %v2849_v62 = vpop.permute.xlu1 %2848  ;;  %3604 = vrot.lane.b32.xlu0 %v6362_v1, %s5008_s13  ;;  %v2480_v10 = vmax.f32 %v2448_v34, 0.0  ;;  %4926 = vmatpush3.msra.mxu1 %v4147_v59  ;;  %v3738_v59 = vld [vmem:[#allocation2 + $0x91] sm:$0xff] }
 0x3f1   : > { %2937 = vst.msk [vmem:[#allocation3 + $0x38] sm:$0xff] %vm817_vm3, %v2849_v62  ;;  %4927 = vmatprep.subr.mxu1 %v4146_v60 }
 0x3f2   : > { %3796 = vrot.lane.b32.xlu1 %v6351_v19, %s5009_s14  ;;  %v2847_v20 = vpop.permute.xlu0 %2846  ;;  %2512 = vst.msk [vmem:[#allocation2 + $0x181] sm:$0xff] %vm311_vm0, %v2480_v10  ;;  %4928 = vmatpush3.msra.mxu1 %v4146_v60 }
 0x3f3   : > { %2936 = vst.msk [vmem:[#allocation3 + $0x30] sm:$0xff] %vm817_vm3, %v2847_v20 }
 0x3f4   : > { %v2853_v1 = vpop.permute.xlu1 %2852  ;;  %3222 = vrot.lane.b32.xlu0 %v6360_v49, %s5006_s11 }
 0x3f5   : > { %2939 = vst.msk [vmem:[#allocation3 + $0x48] sm:$0xff] %vm817_vm3, %v2853_v1 }
 0x3f6   : > { %3224 = vrot.lane.b32.xlu1 %v6351_v19, %s5006_s11  ;;  %v2851_v25 = vpop.permute.xlu0 %2850 }
 0x3f7   : > { %2938 = vst.msk [vmem:[#allocation3 + $0x40] sm:$0xff] %vm817_vm3, %v2851_v25 }
 0x3f8   : > { %v2857_v39 = vpop.permute.xlu1 %2856  ;;  %3986 = vrot.lane.b32.xlu0 %v6580_v22, %s5010_s28 }
 0x3f9   : > { %2941 = vst.msk [vmem:[#allocation3 + $0x58] sm:$0xff] %vm817_vm3, %v2857_v39 }
 0x3fa   : > { %3988 = vrot.lane.b32.xlu1 %v6576_v29, %s5010_s28  ;;  %v2855_v49 = vpop.permute.xlu0 %2854 }
 0x3fb   : > { %2940 = vst.msk [vmem:[#allocation3 + $0x50] sm:$0xff] %vm817_vm3, %v2855_v49 }
 0x3fc   : > { %v2861_v54 = vpop.permute.xlu1 %2860  ;;  %3414 = vrot.lane.b32.xlu0 %v6580_v22, %s5007_s12 }
 0x3fd   : > { %2943 = vst.msk [vmem:[#allocation3 + $0x68] sm:$0xff] %vm817_vm3, %v2861_v54  ;;  %v3740_v54 = vld [vmem:[#allocation2 + $0xa9] sm:$0xff] }
 0x3fe   : > { %3606 = vrot.lane.b32.xlu1 %v6393_v55, %s5008_s13  ;;  %v2859_v19 = vpop.permute.xlu0 %2858 }
 0x3ff   : > { %2942 = vst.msk [vmem:[#allocation3 + $0x60] sm:$0xff] %vm817_vm3, %v2859_v19 }
 0x400   : > { %v2865_v8 = vpop.permute.xlu1 %2864  ;;  %3416 = vrot.lane.b32.xlu0 %v6576_v29, %s5007_s12 }
 0x401   : > { %2945 = vst.msk [vmem:[#allocation3 + $0x78] sm:$0xff] %vm817_vm3, %v2865_v8 }
 0x402   : > { %3798 = vrot.lane.b32.xlu1 %v6382_v51, %s5009_s14  ;;  %v2863_v52 = vpop.permute.xlu0 %2862 }
 0x403   : > { %2944 = vst.msk [vmem:[#allocation3 + $0x70] sm:$0xff] %vm817_vm3, %v2863_v52 }
 0x404   : > { %v2869_v22 = vpop.permute.xlu1 %2868  ;;  %3608 = vrot.lane.b32.xlu0 %v6384_v40, %s5008_s13 }
 0x405   : > { %2947 = vst.msk [vmem:[#allocation3 + $0x88] sm:$0xff] %vm817_vm3, %v2869_v22 }
 0x406   : > { %3800 = vrot.lane.b32.xlu1 %v6373_v6, %s5009_s14  ;;  %v2867_v55 = vpop.permute.xlu0 %2866 }
 0x407   : > { %2946 = vst.msk [vmem:[#allocation3 + $0x80] sm:$0xff] %vm817_vm3, %v2867_v55 }
 0x408   : > { %v2873_v29 = vpop.permute.xlu1 %2872  ;;  %3226 = vrot.lane.b32.xlu0 %v6382_v51, %s5006_s11 }
 0x409   : > { %2949 = vst.msk [vmem:[#allocation3 + $0x98] sm:$0xff] %vm817_vm3, %v2873_v29 }
 0x40a   : > { %3228 = vrot.lane.b32.xlu1 %v6373_v6, %s5006_s11  ;;  %v2871_v53 = vpop.permute.xlu0 %2870 }
 0x40b   : > { %2948 = vst.msk [vmem:[#allocation3 + $0x90] sm:$0xff] %vm817_vm3, %v2871_v53 }
 0x40c   : > { %v2877_v40 = vpop.permute.xlu1 %2876  ;;  %3990 = vrot.lane.b32.xlu0 %v6588_v13, %s5010_s28 }
 0x40d   : > { %2951 = vst.msk [vmem:[#allocation3 + $0xa8] sm:$0xff] %vm817_vm3, %v2877_v40  ;;  %v3742_v40 = vld [vmem:[#allocation2 + $0xc1] sm:$0xff] }
 0x40e   : > { %3992 = vrot.lane.b32.xlu1 %v6584_v41, %s5010_s28  ;;  %v2875_v56 = vpop.permute.xlu0 %2874 }
 0x40f   : > { %2950 = vst.msk [vmem:[#allocation3 + $0xa0] sm:$0xff] %vm817_vm3, %v2875_v56 }
 0x410   : > { %v2881_v51 = vpop.permute.xlu1 %2880  ;;  %3418 = vrot.lane.b32.xlu0 %v6588_v13, %s5007_s12 }
 0x411   : > { %2953 = vst.msk [vmem:[#allocation3 + $0xb8] sm:$0xff] %vm817_vm3, %v2881_v51 }
 0x412   : > { %3610 = vrot.lane.b32.xlu1 %v6414_v37, %s5008_s13  ;;  %v2879_v6 = vpop.permute.xlu0 %2878 }
 0x413   : > { %2952 = vst.msk [vmem:[#allocation3 + $0xb0] sm:$0xff] %vm817_vm3, %v2879_v6 }
 0x414   : > { %v2885_v28 = vpop.permute.xlu1 %2884  ;;  %3420 = vrot.lane.b32.xlu0 %v6584_v41, %s5007_s12 }
 0x415   : > { %2955 = vst.msk [vmem:[#allocation3 + $0xc8] sm:$0xff] %vm817_vm3, %v2885_v28 }
 0x416   : > { %3802 = vrot.lane.b32.xlu1 %v6404_v7, %s5009_s14  ;;  %v2883_v57 = vpop.permute.xlu0 %2882 }
 0x417   : > { %2954 = vst.msk [vmem:[#allocation3 + $0xc0] sm:$0xff] %vm817_vm3, %v2883_v57 }
 0x418   : > { %v2889_v13 = vpop.permute.xlu1 %2888  ;;  %3612 = vrot.lane.b32.xlu0 %v6406_v48, %s5008_s13 }
 0x419   : > { %2957 = vst.msk [vmem:[#allocation3 + $0xd8] sm:$0xff] %vm817_vm3, %v2889_v13 }
 0x41a   : > { %3804 = vrot.lane.b32.xlu1 %v6395_v61, %s5009_s14  ;;  %v2887_v37 = vpop.permute.xlu0 %2886 }
 0x41b   : > { %2956 = vst.msk [vmem:[#allocation3 + $0xd0] sm:$0xff] %vm817_vm3, %v2887_v37 }
 0x41c   : > { %v2893_v41 = vpop.permute.xlu1 %2892  ;;  %3230 = vrot.lane.b32.xlu0 %v6404_v7, %s5006_s11 }
 0x41d   : > { %2959 = vst.msk [vmem:[#allocation3 + $0xe8] sm:$0xff] %vm817_vm3, %v2893_v41 }
 0x41e   : > { %3232 = vrot.lane.b32.xlu1 %v6395_v61, %s5006_s11  ;;  %v2891_v58 = vpop.permute.xlu0 %2890 }
 0x41f   : > { %2958 = vst.msk [vmem:[#allocation3 + $0xe0] sm:$0xff] %vm817_vm3, %v2891_v58 }
 0x420   : > { %v2897_v48 = vpop.permute.xlu1 %2896  ;;  %3994 = vrot.lane.b32.xlu0 %v6596_v42, %s5010_s28 }
 0x421   : > { %2961 = vst.msk [vmem:[#allocation3 + $0xf8] sm:$0xff] %vm817_vm3, %v2897_v48  ;;  %v3744_v48 = vld [vmem:[#allocation2 + $0xd9] sm:$0xff] }
 0x422   : > { %3996 = vrot.lane.b32.xlu1 %v6592_v18, %s5010_s28  ;;  %v2895_v26 = vpop.permute.xlu0 %2894 }
 0x423   : > { %2960 = vst.msk [vmem:[#allocation3 + $0xf0] sm:$0xff] %vm817_vm3, %v2895_v26 }
 0x424   : > { %v3029_v7 = vpop.permute.xlu1 %3028  ;;  %3422 = vrot.lane.b32.xlu0 %v6596_v42, %s5007_s12 }
 0x425   : > { %3123 = vst.msk [vmem:[#allocation3 + $0x8] sm:$0xff] %vm1010_vm4, %v3029_v7 }
 0x426   : > { %3614 = vrot.lane.b32.xlu1 %v6430_v17, %s5008_s13  ;;  %v3027_v61 = vpop.permute.xlu0 %3026  ;;  %v3737_v17 = vld [vmem:[#allocation2 + $0x81] sm:$0xff] }
 0x427   : > { %3122 = vst.msk [vmem:[#allocation3] sm:$0xff] %vm1010_vm4, %v3027_v61 }
 0x428   : > { %v3033_v5 = vpop.permute.xlu1 %3032  ;;  %3424 = vrot.lane.b32.xlu0 %v6592_v18, %s5007_s12  ;;  %v3162_v18 = vld [vmem:[#allocation2 + $0x79] sm:$0xff] }
 0x429   : > { %3125 = vst.msk [vmem:[#allocation3 + $0x18] sm:$0xff] %vm1010_vm4, %v3033_v5  ;;  %v3936_v5 = vld [vmem:[#allocation2 + $0xda] sm:$0xff] }
 0x42a   : > { %3806 = vrot.lane.b32.xlu1 %v6420_v33, %s5009_s14  ;;  %v3031_v31 = vpop.permute.xlu0 %3030 }
 0x42b   : > { %3124 = vst.msk [vmem:[#allocation3 + $0x10] sm:$0xff] %vm1010_vm4, %v3031_v31  ;;  %v3937_v31 = vld [vmem:[#allocation2 + $0xe2] sm:$0xff] }
 0x42c   : > { %v3037_v42 = vpop.permute.xlu1 %3036  ;;  %3616 = vrot.lane.b32.xlu0 %v6422_v21, %s5008_s13 }
 0x42d   : > { %3127 = vst.msk [vmem:[#allocation3 + $0x28] sm:$0xff] %vm1010_vm4, %v3037_v42 }
 0x42e   : > { %3808 = vrot.lane.b32.xlu1 %v3737_v17, %s5009_s14  ;;  %v3035_v23 = vpop.permute.xlu0 %3034 }
 0x42f   : > { %3126 = vst.msk [vmem:[#allocation3 + $0x20] sm:$0xff] %vm1010_vm4, %v3035_v23 }
 0x430   : > { %v3041_v38 = vpop.permute.xlu1 %3040  ;;  %3234 = vrot.lane.b32.xlu0 %v3162_v18, %s5006_s11 }
 0x431   : > { %3129 = vst.msk [vmem:[#allocation3 + $0x38] sm:$0xff] %vm1010_vm4, %v3041_v38 }
 0x432   : > { %3236 = vrot.lane.b32.xlu1 %v3737_v17, %s5006_s11  ;;  %v3039_v33 = vpop.permute.xlu0 %3038 }
 0x433   : > { %3128 = vst.msk [vmem:[#allocation3 + $0x30] sm:$0xff] %vm1010_vm4, %v3039_v33 }
 0x434   : > { %v3045_v21 = vpop.permute.xlu1 %3044  ;;  %3998 = vrot.lane.b32.xlu0 %v6604_v44, %s5010_s28 }
 0x435   : > { %3131 = vst.msk [vmem:[#allocation3 + $0x48] sm:$0xff] %vm1010_vm4, %v3045_v21  ;;  %v3746_v21 = vld [vmem:[#allocation2 + $0xf1] sm:$0xff] }
 0x436   : > { %4000 = vrot.lane.b32.xlu1 %v6600_v43, %s5010_s28  ;;  %v3043_v0 = vpop.permute.xlu0 %3042 }
 0x437   : > { %3130 = vst.msk [vmem:[#allocation3 + $0x40] sm:$0xff] %vm1010_vm4, %v3043_v0 }
 0x438   : > { %v3049_v62 = vpop.permute.xlu1 %3048  ;;  %3426 = vrot.lane.b32.xlu0 %v6604_v44, %s5007_s12 }
 0x439   : > { %3133 = vst.msk [vmem:[#allocation3 + $0x58] sm:$0xff] %vm1010_vm4, %v3049_v62 }
 0x43a   : > { %3618 = vrot.lane.b32.xlu1 %v6443_v14, %s5008_s13  ;;  %v3047_v27 = vpop.permute.xlu0 %3046  ;;  %v3739_v14 = vld [vmem:[#allocation2 + $0x99] sm:$0xff] }
 0x43b   : > { %3132 = vst.msk [vmem:[#allocation3 + $0x50] sm:$0xff] %vm1010_vm4, %v3047_v27 }
 0x43c   : > { %v3053_v34 = vpop.permute.xlu1 %3052  ;;  %3428 = vrot.lane.b32.xlu0 %v6600_v43, %s5007_s12 }
 0x43d   : > { %3135 = vst.msk [vmem:[#allocation3 + $0x68] sm:$0xff] %vm1010_vm4, %v3053_v34 }
 0x43e   : > { %3810 = vrot.lane.b32.xlu1 %v3738_v59, %s5009_s14  ;;  %v3051_v20 = vpop.permute.xlu0 %3050 }
 0x43f   : > { %3134 = vst.msk [vmem:[#allocation3 + $0x60] sm:$0xff] %vm1010_vm4, %v3051_v20  ;;  %v3938_v20 = vld [vmem:[#allocation2 + $0xf2] sm:$0xff] }
 0x440   : > { %v3057_v44 = vpop.permute.xlu1 %3056  ;;  %3620 = vrot.lane.b32.xlu0 %v6437_v2, %s5008_s13 }
 0x441   : > { %3137 = vst.msk [vmem:[#allocation3 + $0x78] sm:$0xff] %vm1010_vm4, %v3057_v44  ;;  %v3939_v44 = vld [vmem:[#allocation2 + $0xfa] sm:$0xff] }
 0x442   : > { %3812 = vrot.lane.b32.xlu1 %v3739_v14, %s5009_s14  ;;  %v3055_v10 = vpop.permute.xlu0 %3054 }
 0x443   : > { %3136 = vst.msk [vmem:[#allocation3 + $0x70] sm:$0xff] %vm1010_vm4, %v3055_v10 }
 0x444   : > { %v3061_v43 = vpop.permute.xlu1 %3060  ;;  %3238 = vrot.lane.b32.xlu0 %v3738_v59, %s5006_s11 }
 0x445   : > { %3139 = vst.msk [vmem:[#allocation3 + $0x88] sm:$0xff] %vm1010_vm4, %v3061_v43 }
 0x446   : > { %3240 = vrot.lane.b32.xlu1 %v3739_v14, %s5006_s11  ;;  %v3059_v60 = vpop.permute.xlu0 %3058 }
 0x447   : > { %3138 = vst.msk [vmem:[#allocation3 + $0x80] sm:$0xff] %vm1010_vm4, %v3059_v60 }
 0x448   : > { %v3065_v1 = vpop.permute.xlu1 %3064  ;;  %4002 = vrot.lane.b32.xlu0 %v6614_v24, %s5010_s28 }
 0x449   : > { %3141 = vst.msk [vmem:[#allocation3 + $0x98] sm:$0xff] %vm1010_vm4, %v3065_v1 }
 0x44a   : > { %4004 = vrot.lane.b32.xlu1 %v6609_v50, %s5010_s28  ;;  %v3063_v2 = vpop.permute.xlu0 %3062 }
 0x44b   : > { %3140 = vst.msk [vmem:[#allocation3 + $0x90] sm:$0xff] %vm1010_vm4, %v3063_v2 }
 0x44c   : > { %v3069_v25 = vpop.permute.xlu1 %3068  ;;  %3430 = vrot.lane.b32.xlu0 %v6614_v24, %s5007_s12 }
 0x44d   : > { %3143 = vst.msk [vmem:[#allocation3 + $0xa8] sm:$0xff] %vm1010_vm4, %v3069_v25  ;;  %v3748_v25 = vld [vmem:[#allocation2 + $0x109] sm:$0xff] }
 0x44e   : > { %3622 = vrot.lane.b32.xlu1 %v6456_v63, %s5008_s13  ;;  %v3067_v39 = vpop.permute.xlu0 %3066  ;;  %v3741_v63 = vld [vmem:[#allocation2 + $0xb1] sm:$0xff] }
 0x44f   : > { %3142 = vst.msk [vmem:[#allocation3 + $0xa0] sm:$0xff] %vm1010_vm4, %v3067_v39 }
 0x450   : > { %v3073_v49 = vpop.permute.xlu1 %3072  ;;  %3432 = vrot.lane.b32.xlu0 %v6609_v50, %s5007_s12 }
 0x451   : > { %3145 = vst.msk [vmem:[#allocation3 + $0xb8] sm:$0xff] %vm1010_vm4, %v3073_v49 }
 0x452   : > { %3814 = vrot.lane.b32.xlu1 %v3740_v54, %s5009_s14  ;;  %v3071_v19 = vpop.permute.xlu0 %3070 }
 0x453   : > { %3144 = vst.msk [vmem:[#allocation3 + $0xb0] sm:$0xff] %vm1010_vm4, %v3071_v19 }
 0x454   : > { %v3219_v24 = vpop.permute.xlu1 %3218  ;;  %3624 = vrot.lane.b32.xlu0 %v6449_v3, %s5008_s13 }
 0x455   : > { %3314 = vst.msk [vmem:[#allocation3] sm:$0xff] %vm1203_vm5, %v3219_v24 }
 0x456   : > { %3816 = vrot.lane.b32.xlu1 %v3741_v63, %s5009_s14  ;;  %v3075_v8 = vpop.permute.xlu0 %3074 }
 0x457   : > { %3146 = vst.msk [vmem:[#allocation3 + $0xc0] sm:$0xff] %vm1010_vm4, %v3075_v8  ;;  %v3941_v8 = vld [vmem:[#allocation2 + $0x112] sm:$0xff] }
 0x458   : > { %v3411_v50 = vpop.permute.xlu1 %3410  ;;  %3242 = vrot.lane.b32.xlu0 %v3740_v54, %s5006_s11 }
 0x459   : > { %3506 = vst.msk [vmem:[#allocation3] sm:$0xff] %vm1396_vm6, %v3411_v50 }
 0x45a   : > { %3244 = vrot.lane.b32.xlu1 %v3741_v63, %s5006_s11  ;;  %v3221_v52 = vpop.permute.xlu0 %3220  ;;  %v3940_v63 = vld [vmem:[#allocation2 + $0x10a] sm:$0xff] }
 0x45b   : > { %3315 = vst.msk [vmem:[#allocation3 + $0x8] sm:$0xff] %vm1203_vm5, %v3221_v52 }
 0x45c   : > { %v3603_v22 = vpop.permute.xlu1 %3602  ;;  %4006 = vrot.lane.b32.xlu0 %v6624_v16, %s5010_s28 }
 0x45d   : > { %3698 = vst.msk [vmem:[#allocation3] sm:$0xff] %vm1590_vm8, %v3603_v22 }
 0x45e   : > { %4008 = vrot.lane.b32.xlu1 %v6619_v15, %s5010_s28  ;;  %v3413_v3 = vpop.permute.xlu0 %3412 }
 0x45f   : > { %3507 = vst.msk [vmem:[#allocation3 + $0x8] sm:$0xff] %vm1396_vm6, %v3413_v3 }
 0x460   : > { %v3795_v55 = vpop.permute.xlu1 %3794  ;;  %3434 = vrot.lane.b32.xlu0 %v6624_v16, %s5007_s12 }
 0x461   : > { %3890 = vst.msk [vmem:[#allocation3] sm:$0xff] %vm1783_vm9, %v3795_v55 }
 0x462   : > { %3626 = vrot.lane.b32.xlu1 %v6472_v4, %s5008_s13  ;;  %v3605_v29 = vpop.permute.xlu0 %3604  ;;  %v3743_v4 = vld [vmem:[#allocation2 + $0xc9] sm:$0xff] }
 0x463   : > { %3699 = vst.msk [vmem:[#allocation3 + $0x8] sm:$0xff] %vm1590_vm8, %v3605_v29 }
 0x464   : > { %v3797_v53 = vpop.permute.xlu1 %3796  ;;  %3436 = vrot.lane.b32.xlu0 %v6619_v15, %s5007_s12 }
 0x465   : > { %3891 = vst.msk [vmem:[#allocation3 + $0x8] sm:$0xff] %vm1783_vm9, %v3797_v53  ;;  %v3750_v53 = vld [vmem:[#allocation2 + $0x121] sm:$0xff] }
 0x466   : > { %3818 = vrot.lane.b32.xlu1 %v3742_v40, %s5009_s14  ;;  %v3223_v56 = vpop.permute.xlu0 %3222 }
 0x467   : > { %3316 = vst.msk [vmem:[#allocation3 + $0x10] sm:$0xff] %vm1203_vm5, %v3223_v56  ;;  %v3559_v56 = vld [vmem:[#allocation2 + $0x128] sm:$0xff] }
 0x468   : > { %v3225_v16 = vpop.permute.xlu1 %3224  ;;  %3628 = vrot.lane.b32.xlu0 %v6465_v30, %s5008_s13 }
 0x469   : > { %3317 = vst.msk [vmem:[#allocation3 + $0x18] sm:$0xff] %vm1203_vm5, %v3225_v16 }
 0x46a   : > { %3820 = vrot.lane.b32.xlu1 %v3743_v4, %s5009_s14  ;;  %v3987_v51 = vpop.permute.xlu0 %3986 }
 0x46b   : > { %4082 = vst.msk [vmem:[#allocation3] sm:$0xff] %vm1976_vm10, %v3987_v51 }
 0x46c   : > { %v3989_v15 = vpop.permute.xlu1 %3988  ;;  %3246 = vrot.lane.b32.xlu0 %v3742_v40, %s5006_s11 }
 0x46d   : > { %4083 = vst.msk [vmem:[#allocation3 + $0x8] sm:$0xff] %vm1976_vm10, %v3989_v15 }
 0x46e   : > { %3248 = vrot.lane.b32.xlu1 %v3743_v4, %s5006_s11  ;;  %v3415_v6 = vpop.permute.xlu0 %3414 }
 0x46f   : > { %3508 = vst.msk [vmem:[#allocation3 + $0x10] sm:$0xff] %vm1396_vm6, %v3415_v6  ;;  %v3942_v6 = vld [vmem:[#allocation2 + $0x122] sm:$0xff] }
 0x470   : > { %v3607_v28 = vpop.permute.xlu1 %3606  ;;  %4010 = vrot.lane.b32.xlu0 %v6634_v9, %s5010_s28 }
 0x471   : > { %3700 = vst.msk [vmem:[#allocation3 + $0x10] sm:$0xff] %vm1590_vm8, %v3607_v28 }
 0x472   : > { %4012 = vrot.lane.b32.xlu1 %v6629_v32, %s5010_s28  ;;  %v3417_v30 = vpop.permute.xlu0 %3416  ;;  %v4114_v57 = vld [vmem:[#allocation3] sm:$0xff] }
 0x473   : > { %3509 = vst.msk [vmem:[#allocation3 + $0x18] sm:$0xff] %vm1396_vm6, %v3417_v30  ;;  %4929 = vmatprep.mubr.msk.f32.mxu1 %vm2046_vm11, %v4114_v57  ;;  %v3943_v30 = vld [vmem:[#allocation2 + $0x12a] sm:$0xff] }
 0x474   : > { %v3799_v13 = vpop.permute.xlu1 %3798  ;;  %3438 = vrot.lane.b32.xlu0 %v6634_v9, %s5007_s12  ;;  %v4115_v37 = vld [vmem:[#allocation3 + $0x8] sm:$0xff] }
 0x475   : > { %3892 = vst.msk [vmem:[#allocation3 + $0x10] sm:$0xff] %vm1783_vm9, %v3799_v13  ;;  %4930 = vmatmul.mubr.msk.f32.vlgmr.msra.gmra.mxu1 %vm2046_vm11, %v4115_v37 }
 0x476   : > { %3630 = vrot.lane.b32.xlu1 %v6488_v36, %s5008_s13  ;;  %v3609_v41 = vpop.permute.xlu0 %3608  ;;  %v3745_v36 = vld [vmem:[#allocation2 + $0xe1] sm:$0xff] }
 0x477   : > { %3701 = vst.msk [vmem:[#allocation3 + $0x18] sm:$0xff] %vm1590_vm8, %v3609_v41 }
 0x478   : > { %v3801_v58 = vpop.permute.xlu1 %3800  ;;  %3440 = vrot.lane.b32.xlu0 %v6629_v32, %s5007_s12 }
 0x479   : > { %3893 = vst.msk [vmem:[#allocation3 + $0x18] sm:$0xff] %vm1783_vm9, %v3801_v58  ;;  %v3560_v58 = vld [vmem:[#allocation2 + $0x138] sm:$0xff] }
 0x47a   : > { %3822 = vrot.lane.b32.xlu1 %v3744_v48, %s5009_s14  ;;  %v3227_v9 = vpop.permute.xlu0 %3226 }
 0x47b   : > { %3318 = vst.msk [vmem:[#allocation3 + $0x20] sm:$0xff] %vm1203_vm5, %v3227_v9 }
 0x47c   : > { %v3229_v26 = vpop.permute.xlu1 %3228  ;;  %3632 = vrot.lane.b32.xlu0 %v6481_v45, %s5008_s13 }
 0x47d   : > { %3319 = vst.msk [vmem:[#allocation3 + $0x28] sm:$0xff] %vm1203_vm5, %v3229_v26  ;;  %v3752_v26 = vld [vmem:[#allocation2 + $0x139] sm:$0xff] }
 0x47e   : > { %3824 = vrot.lane.b32.xlu1 %v3745_v36, %s5009_s14  ;;  %v3991_v7 = vpop.permute.xlu0 %3990 }
 0x47f   : > { %4084 = vst.msk [vmem:[#allocation3 + $0x10] sm:$0xff] %vm1976_vm10, %v3991_v7  ;;  %v3561_v7 = vld [vmem:[#allocation2 + $0x140] sm:$0xff] }
 0x480   : > { %v3993_v32 = vpop.permute.xlu1 %3992  ;;  %3250 = vrot.lane.b32.xlu0 %v3744_v48, %s5006_s11 }
 0x481   : > { %4085 = vst.msk [vmem:[#allocation3 + $0x18] sm:$0xff] %vm1976_vm10, %v3993_v32 }
 0x482   : > { %3252 = vrot.lane.b32.xlu1 %v3745_v36, %s5006_s11  ;;  %v3419_v61 = vpop.permute.xlu0 %3418 }
 0x483   : > { %3510 = vst.msk [vmem:[#allocation3 + $0x20] sm:$0xff] %vm1396_vm6, %v3419_v61 }
 0x484   : > { %v3611_v45 = vpop.permute.xlu1 %3610  ;;  %4014 = vrot.lane.b32.xlu0 %v3936_v5, %s5010_s28 }
 0x485   : > { %3702 = vst.msk [vmem:[#allocation3 + $0x20] sm:$0xff] %vm1590_vm8, %v3611_v45  ;;  %v3944_v45 = vld [vmem:[#allocation2 + $0x13a] sm:$0xff] }
 0x486   : > { %4016 = vrot.lane.b32.xlu1 %v3937_v31, %s5010_s28  ;;  %v3421_v42 = vpop.permute.xlu0 %3420  ;;  %v4116_v17 = vld [vmem:[#allocation3 + $0x10] sm:$0xff] }
 0x487   : > { %3511 = vst.msk [vmem:[#allocation3 + $0x28] sm:$0xff] %vm1396_vm6, %v3421_v42  ;;  %4932 = vmatprep.mubr.msk.f32.mxu1 %vm2046_vm11, %v4116_v17  ;;  %v3753_v42 = vld [vmem:[#allocation2 + $0x141] sm:$0xff] }
 0x488   : > { %v3803_v23 = vpop.permute.xlu1 %3802  ;;  %3442 = vrot.lane.b32.xlu0 %v3936_v5, %s5007_s12  ;;  %v4117_v18 = vld [vmem:[#allocation3 + $0x18] sm:$0xff] }
 0x489   : > { %3894 = vst.msk [vmem:[#allocation3 + $0x20] sm:$0xff] %vm1783_vm9, %v3803_v23  ;;  %4933 = vmatmul.mubr.msk.f32.gmra.mxu1 %vm2046_vm11, %v4117_v18 }
 0x48a   : > { %3634 = vrot.lane.b32.xlu1 %v6504_v47, %s5008_s13  ;;  %v3613_v38 = vpop.permute.xlu0 %3612  ;;  %v3747_v47 = vld [vmem:[#allocation2 + $0xf9] sm:$0xff] }
 0x48b   : > { %3703 = vst.msk [vmem:[#allocation3 + $0x28] sm:$0xff] %vm1590_vm8, %v3613_v38 }
 0x48c   : > { %v3805_v33 = vpop.permute.xlu1 %3804  ;;  %3444 = vrot.lane.b32.xlu0 %v3937_v31, %s5007_s12 }
 0x48d   : > { %3895 = vst.msk [vmem:[#allocation3 + $0x28] sm:$0xff] %vm1783_vm9, %v3805_v33 }
 0x48e   : > { %3826 = vrot.lane.b32.xlu1 %v3746_v21, %s5009_s14  ;;  %v3231_v0 = vpop.permute.xlu0 %3230 }
 0x48f   : > { %3320 = vst.msk [vmem:[#allocation3 + $0x30] sm:$0xff] %vm1203_vm5, %v3231_v0 }
 0x490   : > { %v3233_v62 = vpop.permute.xlu1 %3232  ;;  %3636 = vrot.lane.b32.xlu0 %v6497_v11, %s5008_s13 }
 0x491   : > { %3321 = vst.msk [vmem:[#allocation3 + $0x38] sm:$0xff] %vm1203_vm5, %v3233_v62 }
 0x492   : > { %3828 = vrot.lane.b32.xlu1 %v3747_v47, %s5009_s14  ;;  %v3995_v27 = vpop.permute.xlu0 %3994 }
 0x493   : > { %4086 = vst.msk [vmem:[#allocation3 + $0x20] sm:$0xff] %vm1976_vm10, %v3995_v27 }
 0x494   : > { %v3997_v34 = vpop.permute.xlu1 %3996  ;;  %3254 = vrot.lane.b32.xlu0 %v3746_v21, %s5006_s11  ;;  %v3371_v21 = vld [vmem:[#allocation2 + $0x142] sm:$0xff] }
 0x495   : > { %4087 = vst.msk [vmem:[#allocation3 + $0x28] sm:$0xff] %vm1976_vm10, %v3997_v34 }
 0x496   : > { %3256 = vrot.lane.b32.xlu1 %v3747_v47, %s5006_s11  ;;  %v3423_v59 = vpop.permute.xlu0 %3422  ;;  %v2988_v47 = vld [vmem:[#allocation2 + $0x150] sm:$0xff] }
 0x497   : > { %3512 = vst.msk [vmem:[#allocation3 + $0x30] sm:$0xff] %vm1396_vm6, %v3423_v59  ;;  %v3754_v59 = vld [vmem:[#allocation2 + $0x151] sm:$0xff] }
 0x498   : > { %v3615_v11 = vpop.permute.xlu1 %3614  ;;  %4018 = vrot.lane.b32.xlu0 %v3938_v20, %s5010_s28 }
 0x499   : > { %3704 = vst.msk [vmem:[#allocation3 + $0x30] sm:$0xff] %vm1590_vm8, %v3615_v11  ;;  %v3563_v11 = vld [vmem:[#allocation2 + $0x158] sm:$0xff] }
 0x49a   : > { %4020 = vrot.lane.b32.xlu1 %v3939_v44, %s5010_s28  ;;  %v3425_v14 = vpop.permute.xlu0 %3424  ;;  %v4118_v10 = vld [vmem:[#allocation3 + $0x20] sm:$0xff] }
 0x49b   : > { %3513 = vst.msk [vmem:[#allocation3 + $0x38] sm:$0xff] %vm1396_vm6, %v3425_v14  ;;  %4935 = vmatprep.mubr.msk.f32.mxu1 %vm2046_vm11, %v4118_v10 }
 0x49c   : > { %v3807_v43 = vpop.permute.xlu1 %3806  ;;  %3446 = vrot.lane.b32.xlu0 %v3938_v20, %s5007_s12  ;;  %v4119_v60 = vld [vmem:[#allocation3 + $0x28] sm:$0xff] }
 0x49d   : > { %3896 = vst.msk [vmem:[#allocation3 + $0x30] sm:$0xff] %vm1783_vm9, %v3807_v43  ;;  %4936 = vmatmul.mubr.msk.f32.gmra.mxu1 %vm2046_vm11, %v4119_v60  ;;  %v3946_v43 = vld [vmem:[#allocation2 + $0x152] sm:$0xff] }
 0x49e   : > { %3638 = vrot.lane.b32.xlu1 %v6520_v46, %s5008_s13  ;;  %v3617_v1 = vpop.permute.xlu0 %3616  ;;  %v3749_v46 = vld [vmem:[#allocation2 + $0x111] sm:$0xff] }
 0x49f   : > { %3705 = vst.msk [vmem:[#allocation3 + $0x38] sm:$0xff] %vm1590_vm8, %v3617_v1 }
 0x4a0   : > { %v3809_v2 = vpop.permute.xlu1 %3808  ;;  %3448 = vrot.lane.b32.xlu0 %v3939_v44, %s5007_s12 }
 0x4a1   : > { %3897 = vst.msk [vmem:[#allocation3 + $0x38] sm:$0xff] %vm1783_vm9, %v3809_v2  ;;  %v3755_v2 = vld [vmem:[#allocation2 + $0x159] sm:$0xff] }
 0x4a2   : > { %3830 = vrot.lane.b32.xlu1 %v3748_v25, %s5009_s14  ;;  %v3235_v39 = vpop.permute.xlu0 %3234 }
 0x4a3   : > { %3322 = vst.msk [vmem:[#allocation3 + $0x40] sm:$0xff] %vm1203_vm5, %v3235_v39 }
 0x4a4   : > { %v3237_v49 = vpop.permute.xlu1 %3236  ;;  %3640 = vrot.lane.b32.xlu0 %v6513_v12, %s5008_s13 }
 0x4a5   : > { %3323 = vst.msk [vmem:[#allocation3 + $0x48] sm:$0xff] %vm1203_vm5, %v3237_v49 }
 0x4a6   : > { %3832 = vrot.lane.b32.xlu1 %v3749_v46, %s5009_s14  ;;  %v3999_v54 = vpop.permute.xlu0 %3998 }
 0x4a7   : > { %4088 = vst.msk [vmem:[#allocation3 + $0x30] sm:$0xff] %vm1976_vm10, %v3999_v54  ;;  %v3373_v54 = vld [vmem:[#allocation2 + $0x15a] sm:$0xff] }
 0x4a8   : > { %v4001_v19 = vpop.permute.xlu1 %4000  ;;  %3258 = vrot.lane.b32.xlu0 %v3748_v25, %s5006_s11 }
 0x4a9   : > { %4089 = vst.msk [vmem:[#allocation3 + $0x38] sm:$0xff] %vm1976_vm10, %v4001_v19 }
 0x4aa   : > { %3260 = vrot.lane.b32.xlu1 %v3749_v46, %s5006_s11  ;;  %v3427_v24 = vpop.permute.xlu0 %3426 }
 0x4ab   : > { %3514 = vst.msk [vmem:[#allocation3 + $0x40] sm:$0xff] %vm1396_vm6, %v3427_v24 }
 0x4ac   : > { %v3619_v12 = vpop.permute.xlu1 %3618  ;;  %4022 = vrot.lane.b32.xlu0 %v3940_v63, %s5010_s28 }
 0x4ad   : > { %3706 = vst.msk [vmem:[#allocation3 + $0x40] sm:$0xff] %vm1590_vm8, %v3619_v12 }
 0x4ae   : > { %4024 = vrot.lane.b32.xlu1 %v3941_v8, %s5010_s28  ;;  %v3429_v50 = vpop.permute.xlu0 %3428  ;;  %v4120_v52 = vld [vmem:[#allocation3 + $0x30] sm:$0xff] }
 0x4af   : > { %3515 = vst.msk [vmem:[#allocation3 + $0x48] sm:$0xff] %vm1396_vm6, %v3429_v50  ;;  %4938 = vmatprep.mubr.msk.f32.mxu1 %vm2046_vm11, %v4120_v52  ;;  %v3756_v50 = vld [vmem:[#allocation2 + $0x169] sm:$0xff] }
 0x4b0   : > { %v3811_v22 = vpop.permute.xlu1 %3810  ;;  %3450 = vrot.lane.b32.xlu0 %v3940_v63, %s5007_s12  ;;  %v4121_v3 = vld [vmem:[#allocation3 + $0x38] sm:$0xff] }
 0x4b1   : > { %3898 = vst.msk [vmem:[#allocation3 + $0x40] sm:$0xff] %vm1783_vm9, %v3811_v22  ;;  %4939 = vmatmul.mubr.msk.f32.gmra.mxu1 %vm2046_vm11, %v4121_v3  ;;  %v2990_v63 = vld [vmem:[#allocation2 + $0x168] sm:$0xff]  ;;  %v3565_v22 = vld [vmem:[#allocation2 + $0x170] sm:$0xff] }
 0x4b2   : > { %3642 = vrot.lane.b32.xlu1 %v6536_v35, %s5008_s13  ;;  %v3621_v55 = vpop.permute.xlu0 %3620  ;;  %v3751_v35 = vld [vmem:[#allocation2 + $0x129] sm:$0xff] }
 0x4b3   : > { %3707 = vst.msk [vmem:[#allocation3 + $0x48] sm:$0xff] %vm1590_vm8, %v3621_v55 }
 0x4b4   : > { %v3813_v29 = vpop.permute.xlu1 %3812  ;;  %3452 = vrot.lane.b32.xlu0 %v3941_v8, %s5007_s12 }
 0x4b5   : > { %3899 = vst.msk [vmem:[#allocation3 + $0x48] sm:$0xff] %vm1783_vm9, %v3813_v29 }
 0x4b6   : > { %3834 = vrot.lane.b32.xlu1 %v3750_v53, %s5009_s14  ;;  %v3239_v40 = vpop.permute.xlu0 %3238 }
 0x4b7   : > { %3324 = vst.msk [vmem:[#allocation3 + $0x50] sm:$0xff] %vm1203_vm5, %v3239_v40 }
 0x4b8   : > { %v3241_v16 = vpop.permute.xlu1 %3240  ;;  %3644 = vrot.lane.b32.xlu0 %v3559_v56, %s5008_s13  ;;  %v3948_v56 = vld [vmem:[#allocation2 + $0x16a] sm:$0xff] }
 0x4b9   : > { %3325 = vst.msk [vmem:[#allocation3 + $0x58] sm:$0xff] %vm1203_vm5, %v3241_v16 }
 0x4ba   : > { %3836 = vrot.lane.b32.xlu1 %v3751_v35, %s5009_s14  ;;  %v4003_v4 = vpop.permute.xlu0 %4002 }
 0x4bb   : > { %4090 = vst.msk [vmem:[#allocation3 + $0x40] sm:$0xff] %vm1976_vm10, %v4003_v4 }
 0x4bc   : > { %v4005_v51 = vpop.permute.xlu1 %4004  ;;  %3262 = vrot.lane.b32.xlu0 %v3750_v53, %s5006_s11 }
 0x4bd   : > { %4091 = vst.msk [vmem:[#allocation3 + $0x48] sm:$0xff] %vm1976_vm10, %v4005_v51 }
 0x4be   : > { %3264 = vrot.lane.b32.xlu1 %v3751_v35, %s5006_s11  ;;  %v3431_v15 = vpop.permute.xlu0 %3430  ;;  %v3757_v35 = vld [vmem:[#allocation2 + $0x171] sm:$0xff] }
 0x4bf   : > { %3516 = vst.msk [vmem:[#allocation3 + $0x50] sm:$0xff] %vm1396_vm6, %v3431_v15 }
 0x4c0   : > { %v3623_v28 = vpop.permute.xlu1 %3622  ;;  %4026 = vrot.lane.b32.xlu0 %v3942_v6, %s5010_s28 }
 0x4c1   : > { %3708 = vst.msk [vmem:[#allocation3 + $0x50] sm:$0xff] %vm1590_vm8, %v3623_v28 }
 0x4c2   : > { %4028 = vrot.lane.b32.xlu1 %v3943_v30, %s5010_s28  ;;  %v3433_v57 = vpop.permute.xlu0 %3432  ;;  %v4122_v13 = vld [vmem:[#allocation3 + $0x40] sm:$0xff] }
 0x4c3   : > { %3517 = vst.msk [vmem:[#allocation3 + $0x58] sm:$0xff] %vm1396_vm6, %v3433_v57  ;;  %4941 = vmatprep.mubr.msk.f32.mxu1 %vm2046_vm11, %v4122_v13  ;;  %v2992_v57 = vld [vmem:[#allocation2 + $0x180] sm:$0xff] }
 0x4c4   : > { %v3815_v37 = vpop.permute.xlu1 %3814  ;;  %3454 = vrot.lane.b32.xlu0 %v3942_v6, %s5007_s12  ;;  %v4123_v41 = vld [vmem:[#allocation3 + $0x48] sm:$0xff] }
 0x4c5   : > { %3900 = vst.msk [vmem:[#allocation3 + $0x50] sm:$0xff] %vm1783_vm9, %v3815_v37  ;;  %4942 = vmatmul.mubr.msk.f32.gmra.mxu1 %vm2046_vm11, %v4123_v41  ;;  %v3375_v6 = vld [vmem:[#allocation2 + $0x172] sm:$0xff]  ;;  %v3758_v41 = vld [vmem:[#allocation2 + $0x181] sm:$0xff] }
 0x4c6   : > { %3646 = vrot.lane.b32.xlu1 %v3560_v58, %s5008_s13  ;;  %v3625_v48 = vpop.permute.xlu0 %3624 }
 0x4c7   : > { %3709 = vst.msk [vmem:[#allocation3 + $0x58] sm:$0xff] %vm1590_vm8, %v3625_v48 }
 0x4c8   : > { %v3817_v9 = vpop.permute.xlu1 %3816  ;;  %3456 = vrot.lane.b32.xlu0 %v3943_v30, %s5007_s12 }
 0x4c9   : > { %3901 = vst.msk [vmem:[#allocation3 + $0x58] sm:$0xff] %vm1783_vm9, %v3817_v9  ;;  %v3567_v9 = vld [vmem:[#allocation2 + $0x188] sm:$0xff] }
 0x4ca   : > { %3838 = vrot.lane.b32.xlu1 %v3752_v26, %s5009_s14  ;;  %v3243_v36 = vpop.permute.xlu0 %3242 }
 0x4cb   : > { %3326 = vst.msk [vmem:[#allocation3 + $0x60] sm:$0xff] %vm1203_vm5, %v3243_v36 }
 0x4cc   : > { %v3245_v32 = vpop.permute.xlu1 %3244  ;;  %3648 = vrot.lane.b32.xlu0 %v3561_v7, %s5008_s13 }
 0x4cd   : > { %3327 = vst.msk [vmem:[#allocation3 + $0x68] sm:$0xff] %vm1203_vm5, %v3245_v32 }
 0x4ce   : > { %3266 = vrot.lane.b32.xlu1 %v3752_v26, %s5006_s11  ;;  %v4007_v61 = vpop.permute.xlu0 %4006 }
 0x4cf   : > { %4092 = vst.msk [vmem:[#allocation3 + $0x50] sm:$0xff] %vm1976_vm10, %v4007_v61  ;;  %v3950_v61 = vld [vmem:[#allocation2 + $0x182] sm:$0xff] }
 0x4d0   : > { %v4009_v5 = vpop.permute.xlu1 %4008  ;;  %3076 = vrot.lane.b32.xlu0 %v3561_v7, %s5005_s10 }
 0x4d1   : > { %4093 = vst.msk [vmem:[#allocation3 + $0x58] sm:$0xff] %vm1976_vm10, %v4009_v5 }
 0x4d2   : > { %4030 = vrot.lane.b32.xlu1 %v3944_v45, %s5010_s28  ;;  %v3435_v31 = vpop.permute.xlu0 %3434 }
 0x4d3   : > { %3518 = vst.msk [vmem:[#allocation3 + $0x60] sm:$0xff] %vm1396_vm6, %v3435_v31 }
 0x4d4   : > { %v3627_v17 = vpop.permute.xlu1 %3626  ;;  %3840 = vrot.lane.b32.xlu0 %v3753_v42, %s5009_s14 }
 0x4d5   : > { %3710 = vst.msk [vmem:[#allocation3 + $0x60] sm:$0xff] %vm1590_vm8, %v3627_v17 }
 0x4d6   : > { %3458 = vrot.lane.b32.xlu1 %v3944_v45, %s5007_s12  ;;  %v3437_v23 = vpop.permute.xlu0 %3436  ;;  %v4124_v18 = vld [vmem:[#allocation3 + $0x50] sm:$0xff]  ;;  %v3759_v45 = vld [vmem:[#allocation2 + $0x189] sm:$0xff] }
 0x4d7   : > { %3519 = vst.msk [vmem:[#allocation3 + $0x68] sm:$0xff] %vm1396_vm6, %v3437_v23  ;;  %4944 = vmatprep.mubr.msk.f32.mxu1 %vm2046_vm11, %v4124_v18  ;;  %v3377_v23 = vld [vmem:[#allocation2 + $0x18a] sm:$0xff] }
 0x4d8   : > { %v3819_v38 = vpop.permute.xlu1 %3818  ;;  %3268 = vrot.lane.b32.xlu0 %v3753_v42, %s5006_s11  ;;  %v4125_v33 = vld [vmem:[#allocation3 + $0x58] sm:$0xff] }
 0x4d9   : > { %3902 = vst.msk [vmem:[#allocation3 + $0x60] sm:$0xff] %vm1783_vm9, %v3819_v38  ;;  %4945 = vmatmul.mubr.msk.f32.gmra.mxu1 %vm2046_vm11, %v4125_v33  ;;  %v3569_v38 = vld [vmem:[#allocation2 + $0x1a0] sm:$0xff] }
 0x4da   : > { %3460 = vrot.lane.b32.xlu1 %v3371_v21, %s5007_s12  ;;  %v3629_v0 = vpop.permute.xlu0 %3628 }
 0x4db   : > { %3711 = vst.msk [vmem:[#allocation3 + $0x68] sm:$0xff] %vm1590_vm8, %v3629_v0 }
 0x4dc   : > { %v3821_v62 = vpop.permute.xlu1 %3820  ;;  %4032 = vrot.lane.b32.xlu0 %v3371_v21, %s5010_s28  ;;  %v3568_v21 = vld [vmem:[#allocation2 + $0x198] sm:$0xff] }
 0x4dd   : > { %3903 = vst.msk [vmem:[#allocation3 + $0x68] sm:$0xff] %vm1783_vm9, %v3821_v62 }
 0x4de   : > { %3078 = vrot.lane.b32.xlu1 %v2988_v47, %s5005_s10  ;;  %v3247_v27 = vpop.permute.xlu0 %3246 }
 0x4df   : > { %3328 = vst.msk [vmem:[#allocation3 + $0x70] sm:$0xff] %vm1203_vm5, %v3247_v27 }
 0x4e0   : > { %v3249_v34 = vpop.permute.xlu1 %3248  ;;  %3650 = vrot.lane.b32.xlu0 %v2988_v47, %s5008_s13  ;;  %v3761_v47 = vld [vmem:[#allocation2 + $0x1a1] sm:$0xff] }
 0x4e1   : > { %3329 = vst.msk [vmem:[#allocation3 + $0x78] sm:$0xff] %vm1203_vm5, %v3249_v34 }
 0x4e2   : > { %3842 = vrot.lane.b32.xlu1 %v3754_v59, %s5009_s14  ;;  %v4011_v20 = vpop.permute.xlu0 %4010 }
 0x4e3   : > { %4094 = vst.msk [vmem:[#allocation3 + $0x60] sm:$0xff] %vm1976_vm10, %v4011_v20 }
 0x4e4   : > { %v4013_v44 = vpop.permute.xlu1 %4012  ;;  %3652 = vrot.lane.b32.xlu0 %v3563_v11, %s5008_s13 }
 0x4e5   : > { %4095 = vst.msk [vmem:[#allocation3 + $0x68] sm:$0xff] %vm1976_vm10, %v4013_v44 }
 0x4e6   : > { %3270 = vrot.lane.b32.xlu1 %v3754_v59, %s5006_s11  ;;  %v3439_v14 = vpop.permute.xlu0 %3438  ;;  %v3760_v59 = vld [vmem:[#allocation2 + $0x199] sm:$0xff] }
 0x4e7   : > { %3520 = vst.msk [vmem:[#allocation3 + $0x70] sm:$0xff] %vm1396_vm6, %v3439_v14  ;;  %v3952_v14 = vld [vmem:[#allocation2 + $0x19a] sm:$0xff] }
 0x4e8   : > { %v3631_v10 = vpop.permute.xlu1 %3630  ;;  %3080 = vrot.lane.b32.xlu0 %v3563_v11, %s5005_s10  ;;  %v3953_v11 = vld [vmem:[#allocation2 + $0x1a2] sm:$0xff] }
 0x4e9   : > { %3712 = vst.msk [vmem:[#allocation3 + $0x70] sm:$0xff] %vm1590_vm8, %v3631_v10 }
 0x4ea   : > { %4034 = vrot.lane.b32.xlu1 %v3946_v43, %s5010_s28  ;;  %v3441_v60 = vpop.permute.xlu0 %3440  ;;  %v4126_v1 = vld [vmem:[#allocation3 + $0x60] sm:$0xff] }
 0x4eb   : > { %3521 = vst.msk [vmem:[#allocation3 + $0x78] sm:$0xff] %vm1396_vm6, %v3441_v60  ;;  %4947 = vmatprep.mubr.msk.f32.mxu1 %vm2046_vm11, %v4126_v1  ;;  %v7173_v1 = vld [vmem:[%s7423_s5] ss:$0 sm:$0xff] }
 0x4ec   : > { %v3823_v25 = vpop.permute.xlu1 %3822  ;;  %3844 = vrot.lane.b32.xlu0 %v3755_v2, %s5009_s14  ;;  %v4127_v39 = vld [vmem:[#allocation3 + $0x68] sm:$0xff] }
 0x4ed   : > { %3904 = vst.msk [vmem:[#allocation3 + $0x70] sm:$0xff] %vm1783_vm9, %v3823_v25  ;;  %4948 = vmatmul.mubr.msk.f32.gmra.mxu1 %vm2046_vm11, %v4127_v39  ;;  %v7179_v39 = vld [vmem:[%s7424_s6] ss:$0 sm:$0xff] }
 0x4ee   : > { %3462 = vrot.lane.b32.xlu1 %v3946_v43, %s5007_s12  ;;  %v3633_v49 = vpop.permute.xlu0 %3632 }
 0x4ef   : > { %3713 = vst.msk [vmem:[#allocation3 + $0x78] sm:$0xff] %vm1590_vm8, %v3633_v49 }
 0x4f0   : > { %v3825_v46 = vpop.permute.xlu1 %3824  ;;  %3272 = vrot.lane.b32.xlu0 %v3755_v2, %s5006_s11 }
 0x4f1   : > { %3905 = vst.msk [vmem:[#allocation3 + $0x78] sm:$0xff] %vm1783_vm9, %v3825_v46 }
 0x4f2   : > { %3464 = vrot.lane.b32.xlu1 %v3373_v54, %s5007_s12  ;;  %v3251_v19 = vpop.permute.xlu0 %3250 }
 0x4f3   : > { %3330 = vst.msk [vmem:[#allocation3 + $0x80] sm:$0xff] %vm1203_vm5, %v3251_v19 }
 0x4f4   : > { %v3253_v24 = vpop.permute.xlu1 %3252  ;;  %4036 = vrot.lane.b32.xlu0 %v3373_v54, %s5010_s28 }
 0x4f5   : > { %3331 = vst.msk [vmem:[#allocation3 + $0x88] sm:$0xff] %vm1203_vm5, %v3253_v24 }
 0x4f6   : > { %3082 = vrot.lane.b32.xlu1 %v2990_v63, %s5005_s10  ;;  %v4015_v12 = vpop.permute.xlu0 %4014 }
 0x4f7   : > { %4096 = vst.msk [vmem:[#allocation3 + $0x70] sm:$0xff] %vm1976_vm10, %v4015_v12  ;;  %v7581_v12 = vld [vmem:[#allocation5_spill] sm:$0xff] }
 0x4f8   : > { %v4017_v8 = vpop.permute.xlu1 %4016  ;;  %3654 = vrot.lane.b32.xlu0 %v2990_v63, %s5008_s13 }
 0x4f9   : > { %4097 = vst.msk [vmem:[#allocation3 + $0x78] sm:$0xff] %vm1976_vm10, %v4017_v8 }
 0x4fa   : > { %3846 = vrot.lane.b32.xlu1 %v3756_v50, %s5009_s14  ;;  %v3443_v52 = vpop.permute.xlu0 %3442 }
 0x4fb   : > { %3522 = vst.msk [vmem:[#allocation3 + $0x80] sm:$0xff] %vm1396_vm6, %v3443_v52 }
 0x4fc   : > { %v3635_v3 = vpop.permute.xlu1 %3634  ;;  %3656 = vrot.lane.b32.xlu0 %v3565_v22, %s5008_s13 }
 0x4fd   : > { %3714 = vst.msk [vmem:[#allocation3 + $0x80] sm:$0xff] %vm1590_vm8, %v3635_v3 }
 0x4fe   : > { %3274 = vrot.lane.b32.xlu1 %v3756_v50, %s5006_s11  ;;  %v3445_v55 = vpop.permute.xlu0 %3444  ;;  %v4128_v29 = vld [vmem:[#allocation3 + $0x70] sm:$0xff] }
 0x4ff   : > { %3523 = vst.msk [vmem:[#allocation3 + $0x88] sm:$0xff] %vm1396_vm6, %v3445_v55  ;;  %4950 = vmatprep.mubr.msk.f32.mxu1 %vm2046_vm11, %v4128_v29  ;;  %v7582_v55 = vld [vmem:[#allocation4_spill] sm:$0xff] }
 0x500   : > { %v3827_v53 = vpop.permute.xlu1 %3826  ;;  %3084 = vrot.lane.b32.xlu0 %v3565_v22, %s5005_s10  ;;  %v4129_v40 = vld [vmem:[#allocation3 + $0x78] sm:$0xff] }
 0x501   : > { %3906 = vst.msk [vmem:[#allocation3 + $0x80] sm:$0xff] %vm1783_vm9, %v3827_v53  ;;  %4951 = vmatmul.mubr.msk.f32.gmra.mxu1 %vm2046_vm11, %v4129_v40 }
 0x502   : > { %4038 = vrot.lane.b32.xlu1 %v3948_v56, %s5010_s28  ;;  %v3637_v16 = vpop.permute.xlu0 %3636 }
 0x503   : > { %3715 = vst.msk [vmem:[#allocation3 + $0x88] sm:$0xff] %vm1590_vm8, %v3637_v16 }
 0x504   : > { %v3829_v4 = vpop.permute.xlu1 %3828  ;;  %3848 = vrot.lane.b32.xlu0 %v3757_v35, %s5009_s14 }
 0x505   : > { %3907 = vst.msk [vmem:[#allocation3 + $0x88] sm:$0xff] %vm1783_vm9, %v3829_v4 }
 0x506   : > { %3466 = vrot.lane.b32.xlu1 %v3948_v56, %s5007_s12  ;;  %v3255_v51 = vpop.permute.xlu0 %3254 }
 0x507   : > { %3332 = vst.msk [vmem:[#allocation3 + $0x90] sm:$0xff] %vm1203_vm5, %v3255_v51 }
 0x508   : > { %v3257_v15 = vpop.permute.xlu1 %3256  ;;  %3276 = vrot.lane.b32.xlu0 %v3757_v35, %s5006_s11 }
 0x509   : > { %3333 = vst.msk [vmem:[#allocation3 + $0x98] sm:$0xff] %vm1203_vm5, %v3257_v15 }
 0x50a   : > { %3468 = vrot.lane.b32.xlu1 %v3375_v6, %s5007_s12  ;;  %v4019_v28 = vpop.permute.xlu0 %4018 }
 0x50b   : > { %4098 = vst.msk [vmem:[#allocation3 + $0x80] sm:$0xff] %vm1976_vm10, %v4019_v28 }
 0x50c   : > { %v4021_v30 = vpop.permute.xlu1 %4020  ;;  %4040 = vrot.lane.b32.xlu0 %v3375_v6, %s5010_s28 }
 0x50d   : > { %4099 = vst.msk [vmem:[#allocation3 + $0x88] sm:$0xff] %vm1976_vm10, %v4021_v30 }
 0x50e   : > { %v3447_v13 = vpop.permute.xlu0 %3446  ;;  %3086 = vrot.lane.b32.xlu1 %v2992_v57, %s5005_s10 }
 0x50f   : > { %3524 = vst.msk [vmem:[#allocation3 + $0x90] sm:$0xff] %vm1396_vm6, %v3447_v13 }
 0x510   : > { %v3639_v37 = vpop.permute.xlu1 %3638  ;;  %3658 = vrot.lane.b32.xlu0 %v2992_v57, %s5008_s13 }
 0x511   : > { %3716 = vst.msk [vmem:[#allocation3 + $0x90] sm:$0xff] %vm1590_vm8, %v3639_v37 }
 0x512   : > { %v3449_v58 = vpop.permute.xlu0 %3448  ;;  %3850 = vrot.lane.b32.xlu1 %v3758_v41, %s5009_s14  ;;  %v4130_v48 = vld [vmem:[#allocation3 + $0x80] sm:$0xff] }
 0x513   : > { %3525 = vst.msk [vmem:[#allocation3 + $0x98] sm:$0xff] %vm1396_vm6, %v3449_v58  ;;  %4953 = vmatprep.mubr.msk.f32.mxu1 %vm2046_vm11, %v4130_v48 }
 0x514   : > { %v3831_v26 = vpop.permute.xlu1 %3830  ;;  %3660 = vrot.lane.b32.xlu0 %v3567_v9, %s5008_s13  ;;  %v4131_v36 = vld [vmem:[#allocation3 + $0x88] sm:$0xff] }
 0x515   : > { %3908 = vst.msk [vmem:[#allocation3 + $0x90] sm:$0xff] %vm1783_vm9, %v3831_v26  ;;  %4954 = vmatmul.mubr.msk.f32.gmra.mxu1 %vm2046_vm11, %v4131_v36 }
 0x516   : > { %v3641_v7 = vpop.permute.xlu0 %3640  ;;  %3278 = vrot.lane.b32.xlu1 %v3758_v41, %s5006_s11 }
 0x517   : > { %3717 = vst.msk [vmem:[#allocation3 + $0x98] sm:$0xff] %vm1590_vm8, %v3641_v7 }
 0x518   : > { %v3833_v32 = vpop.permute.xlu1 %3832  ;;  %3088 = vrot.lane.b32.xlu0 %v3567_v9, %s5005_s10  ;;  %v7583_v9 = vld [vmem:[#allocation7_spill] sm:$0xff] }
 0x519   : > { %3909 = vst.msk [vmem:[#allocation3 + $0x98] sm:$0xff] %vm1783_vm9, %v3833_v32 }
 0x51a   : > { %v3259_v5 = vpop.permute.xlu0 %3258  ;;  %4042 = vrot.lane.b32.xlu1 %v3950_v61, %s5010_s28 }
 0x51b   : > { %3334 = vst.msk [vmem:[#allocation3 + $0xa0] sm:$0xff] %vm1203_vm5, %v3259_v5 }
 0x51c   : > { %v3261_v31 = vpop.permute.xlu1 %3260  ;;  %3852 = vrot.lane.b32.xlu0 %v3759_v45, %s5009_s14 }
 0x51d   : > { %3335 = vst.msk [vmem:[#allocation3 + $0xa8] sm:$0xff] %vm1203_vm5, %v3261_v31 }
 0x51e   : > { %v4023_v42 = vpop.permute.xlu0 %4022  ;;  %3470 = vrot.lane.b32.xlu1 %v3950_v61, %s5007_s12  ;;  %v7584_v61 = vld [vmem:[#allocation6_spill] sm:$0xff] }
 0x51f   : > { %4100 = vst.msk [vmem:[#allocation3 + $0x90] sm:$0xff] %vm1976_vm10, %v4023_v42 }
 0x520   : > { %v4025_v17 = vpop.permute.xlu1 %4024  ;;  %3280 = vrot.lane.b32.xlu0 %v3759_v45, %s5006_s11 }
 0x521   : > { %4101 = vst.msk [vmem:[#allocation3 + $0x98] sm:$0xff] %vm1976_vm10, %v4025_v17 }
 0x522   : > { %v3451_v18 = vpop.permute.xlu0 %3450  ;;  %3472 = vrot.lane.b32.xlu1 %v3377_v23, %s5007_s12 }
 0x523   : > { %3526 = vst.msk [vmem:[#allocation3 + $0xa0] sm:$0xff] %vm1396_vm6, %v3451_v18 }
 0x524   : > { %v3643_v33 = vpop.permute.xlu1 %3642  ;;  %4044 = vrot.lane.b32.xlu0 %v3377_v23, %s5010_s28 }
 0x525   : > { %3718 = vst.msk [vmem:[#allocation3 + $0xa0] sm:$0xff] %vm1590_vm8, %v3643_v33 }
 0x526   : > { %v3453_v0 = vpop.permute.xlu0 %3452  ;;  %v4132_v62 = vld [vmem:[#allocation3 + $0x90] sm:$0xff]  ;;  %3664 = vrot.lane.b32.xlu1 %v3569_v38, %s5008_s13 }
 0x527   : > { %3527 = vst.msk [vmem:[#allocation3 + $0xa8] sm:$0xff] %vm1396_vm6, %v3453_v0  ;;  %4956 = vmatprep.mubr.msk.f32.mxu1 %vm2046_vm11, %v4132_v62 }
 0x528   : > { %v3835_v27 = vpop.permute.xlu1 %3834  ;;  %3662 = vrot.lane.b32.xlu0 %v3568_v21, %s5008_s13  ;;  %v4133_v34 = vld [vmem:[#allocation3 + $0x98] sm:$0xff] }
 0x529   : > { %3910 = vst.msk [vmem:[#allocation3 + $0xa0] sm:$0xff] %vm1783_vm9, %v3835_v27  ;;  %4957 = vmatmul.mubr.msk.f32.gmra.mxu1 %vm2046_vm11, %v4133_v34 }
 0x52a   : > { %v3645_v20 = vpop.permute.xlu0 %3644  ;;  %3856 = vrot.lane.b32.xlu1 %v3761_v47, %s5009_s14 }
 0x52b   : > { %3719 = vst.msk [vmem:[#allocation3 + $0xa8] sm:$0xff] %vm1590_vm8, %v3645_v20 }
 0x52c   : > { %v3837_v44 = vpop.permute.xlu1 %3836  ;;  %3854 = vrot.lane.b32.xlu0 %v3760_v59, %s5009_s14 }
 0x52d   : > { %3911 = vst.msk [vmem:[#allocation3 + $0xa8] sm:$0xff] %vm1783_vm9, %v3837_v44 }
 0x52e   : > { %v3263_v10 = vpop.permute.xlu0 %3262  ;;  %4048 = vrot.lane.b32.xlu1 %v3953_v11, %s5010_s28  ;;  %v7585_v11 = vld [vmem:[#allocation9_spill] sm:$0xff] }
 0x52f   : > { %3336 = vst.msk [vmem:[#allocation3 + $0xb0] sm:$0xff] %vm1203_vm5, %v3263_v10 }
 0x530   : > { %v3265_v43 = vpop.permute.xlu1 %3264  ;;  %4046 = vrot.lane.b32.xlu0 %v3952_v14, %s5010_s28 }
 0x531   : > { %3337 = vst.msk [vmem:[#allocation3 + $0xb8] sm:$0xff] %vm1203_vm5, %v3265_v43 }
 0x532   : > { %v4027_v60 = vpop.permute.xlu0 %4026 }
 0x533   : > { %4102 = vst.msk [vmem:[#allocation3 + $0xa0] sm:$0xff] %vm1976_vm10, %v4027_v60  ;;  %v7586_v60 = vld [vmem:[#allocation8_spill] sm:$0xff] }
 0x534   : > { %v4029_v2 = vpop.permute.xlu1 %4028 }
 0x535   : > { %4103 = vst.msk [vmem:[#allocation3 + $0xa8] sm:$0xff] %vm1976_vm10, %v4029_v2  ;;  %v4931_v25 = vpop.f32.mrf.mxu1 }
 0x536   : > { %v4483_v49 = vmul.f32 %v4931_v25, %v7173_v1  ;;  %v3455_v46 = vpop.permute.xlu0 %3454 }
 0x537   : > { %3528 = vst.msk [vmem:[#allocation3 + $0xb0] sm:$0xff] %vm1396_vm6, %v3455_v46  ;;  %v4316_v54 = vpop.f32.mrf.mxu1 }
 0x538   : > { %v4522_v19 = vadd.f32 %v7179_v39, %v4483_v49  ;;  %v4482_v24 = vmul.f32 %v7173_v1, %v4316_v54  ;;  %v3647_v63 = vpop.permute.xlu1 %3646 }
 0x539   : > { %3720 = vst.msk [vmem:[#allocation3 + $0xb0] sm:$0xff] %vm1590_vm8, %v3647_v63 }
 0x53a   : > { %v4554_v8 = vadd.f32 %v4522_v19, %v7581_v12  ;;  %v4521_v50 = vadd.f32 %v7179_v39, %v4482_v24  ;;  %v3457_v52 = vpop.permute.xlu0 %3456  ;;  %v4134_v22 = vld [vmem:[#allocation3 + $0xa0] sm:$0xff] }
 0x53b   : > { %3529 = vst.msk [vmem:[#allocation3 + $0xb8] sm:$0xff] %vm1396_vm6, %v3457_v52  ;;  %4959 = vmatprep.mubr.msk.f32.mxu1 %vm2046_vm11, %v4134_v22 }
 0x53c   : > { %v4586_v3 = vmax.f32 %v4554_v8, 0.0  ;;  %v4553_v29 = vadd.f32 %v4521_v50, %v7582_v55  ;;  %v3839_v53 = vpop.permute.xlu1 %3838  ;;  %v4135_v40 = vld [vmem:[#allocation3 + $0xa8] sm:$0xff] }
 0x53d   : > { %3912 = vst.msk [vmem:[#allocation3 + $0xb0] sm:$0xff] %vm1783_vm9, %v3839_v53  ;;  %4960 = vmatmul.mubr.msk.f32.gmra.mxu1 %vm2046_vm11, %v4135_v40 }
 0x53e   : > { %4618 = vst.msk [vmem:[%s7193_s29 + $0x8] sm:$0xff] %vm311_vm0, %v4586_v3  ;;  %v4585_v56 = vmax.f32 %v4553_v29, 0.0  ;;  %v3649_v16 = vpop.permute.xlu0 %3648 }
 0x53f   : > { %3721 = vst.msk [vmem:[#allocation3 + $0xb8] sm:$0xff] %vm1590_vm8, %v3649_v16 }
 0x540   : > { %4617 = vst.msk [vmem:[%s7193_s29] sm:$0xff] %vm311_vm0, %v4585_v56  ;;  %v3267_v35 = vpop.permute.xlu1 %3266  ;;  %v7587_v56 = vld [vmem:[#allocation11_spill] sm:$0xff] }
 0x541   : > { %3338 = vst.msk [vmem:[#allocation3 + $0xc0] sm:$0xff] %vm1203_vm5, %v3267_v35 }
 0x542   : > { %v3077_v4 = vpop.permute.xlu0 %3076 }
 0x543   : > { %3147 = vst.msk [vmem:[#allocation3 + $0xc8] sm:$0xff] %vm1010_vm4, %v3077_v4 }
 0x544   : > { %v4031_v51 = vpop.permute.xlu1 %4030 }
 0x545   : > { %4104 = vst.msk [vmem:[#allocation3 + $0xb0] sm:$0xff] %vm1976_vm10, %v4031_v51 }
 0x546   : > { %v3841_v15 = vpop.permute.xlu0 %3840 }
 0x547   : > { %3913 = vst.msk [vmem:[#allocation3 + $0xb8] sm:$0xff] %vm1783_vm9, %v3841_v15  ;;  %v7588_v15 = vld [vmem:[#allocation10_spill] sm:$0xff] }
 0x548   : > { %v3459_v6 = vpop.permute.xlu1 %3458 }
 0x549   : > { %3530 = vst.msk [vmem:[#allocation3 + $0xc0] sm:$0xff] %vm1396_vm6, %v3459_v6  ;;  %v4934_v28 = vpop.f32.mrf.mxu1 }
 0x54a   : > { %v4485_v30 = vmul.f32 %v4934_v28, %v7173_v1  ;;  %v3269_v57 = vpop.permute.xlu0 %3268 }
 0x54b   : > { %3339 = vst.msk [vmem:[#allocation3 + $0xc8] sm:$0xff] %vm1203_vm5, %v3269_v57  ;;  %v4326_v13 = vpop.f32.mrf.mxu1 }
 0x54c   : > { %v4524_v37 = vadd.f32 %v7179_v39, %v4485_v30  ;;  %v4484_v41 = vmul.f32 %v7173_v1, %v4326_v13  ;;  %v3461_v58 = vpop.permute.xlu1 %3460  ;;  %v4136_v48 = vld [vmem:[#allocation3 + $0xb0] sm:$0xff] }
 0x54d   : > { %3531 = vst.msk [vmem:[#allocation3 + $0xc8] sm:$0xff] %vm1396_vm6, %v3461_v58  ;;  %4962 = vmatprep.mubr.msk.f32.mxu1 %vm2046_vm11, %v4136_v48 }
 0x54e   : > { %v4556_v26 = vadd.f32 %v4524_v37, %v7583_v9  ;;  %v4523_v36 = vadd.f32 %v7179_v39, %v4484_v41  ;;  %v4033_v7 = vpop.permute.xlu0 %4032 }
 0x54f   : > { %4105 = vst.msk [vmem:[#allocation3 + $0xb8] sm:$0xff] %vm1976_vm10, %v4033_v7 }
 0x550   : > { %v4588_v32 = vmax.f32 %v4556_v26, 0.0  ;;  %v4555_v5 = vadd.f32 %v4523_v36, %v7584_v61  ;;  %v3079_v45 = vpop.permute.xlu1 %3078 }
 0x551   : > { %3148 = vst.msk [vmem:[#allocation3 + $0xd0] sm:$0xff] %vm1010_vm4, %v3079_v45 }
 0x552   : > { %4620 = vst.msk [vmem:[%s7193_s29 + $0x18] sm:$0xff] %vm311_vm0, %v4588_v32  ;;  %v4587_v31 = vmax.f32 %v4555_v5, 0.0  ;;  %v3651_v42 = vpop.permute.xlu0 %3650 }
 0x553   : > { %3722 = vst.msk [vmem:[#allocation3 + $0xc0] sm:$0xff] %vm1590_vm8, %v3651_v42  ;;  %v7589_v42 = vld [vmem:[#allocation13_spill] sm:$0xff] }
 0x554   : > { %4619 = vst.msk [vmem:[%s7193_s29 + $0x10] sm:$0xff] %vm311_vm0, %v4587_v31  ;;  %v3843_v17 = vpop.permute.xlu1 %3842 }
 0x555   : > { %3914 = vst.msk [vmem:[#allocation3 + $0xc0] sm:$0xff] %vm1783_vm9, %v3843_v17 }
 0x556   : > { %v3653_v23 = vpop.permute.xlu0 %3652  ;;  %v4137_v18 = vld [vmem:[#allocation3 + $0xb8] sm:$0xff] }
 0x557   : > { %3723 = vst.msk [vmem:[#allocation3 + $0xc8] sm:$0xff] %vm1590_vm8, %v3653_v23  ;;  %4963 = vmatmul.mubr.msk.f32.gmra.mxu1 %vm2046_vm11, %v4137_v18 }
 0x558   : > { %v3271_v38 = vpop.permute.xlu1 %3270 }
 0x559   : > { %3340 = vst.msk [vmem:[#allocation3 + $0xd0] sm:$0xff] %vm1203_vm5, %v3271_v38 }
 0x55a   : > { %v3081_v33 = vpop.permute.xlu0 %3080 }
 0x55b   : > { %3149 = vst.msk [vmem:[#allocation3 + $0xd8] sm:$0xff] %vm1010_vm4, %v3081_v33  ;;  %v7590_v33 = vld [vmem:[#allocation12_spill] sm:$0xff] }
 0x55c   : > { %v4035_v21 = vpop.permute.xlu1 %4034 }
 0x55d   : > { %4106 = vst.msk [vmem:[#allocation3 + $0xc0] sm:$0xff] %vm1976_vm10, %v4035_v21  ;;  %v4937_v0 = vpop.f32.mrf.mxu1 }
 0x55e   : > { %v4487_v62 = vmul.f32 %v4937_v0, %v7173_v1  ;;  %v3845_v47 = vpop.permute.xlu0 %3844 }
 0x55f   : > { %3915 = vst.msk [vmem:[#allocation3 + $0xc8] sm:$0xff] %vm1783_vm9, %v3845_v47  ;;  %v4336_v27 = vpop.f32.mrf.mxu1 }
 0x560   : > { %v4526_v34 = vadd.f32 %v7179_v39, %v4487_v62  ;;  %v4486_v59 = vmul.f32 %v7173_v1, %v4336_v27  ;;  %v3463_v20 = vpop.permute.xlu1 %3462 }
 0x561   : > { %3532 = vst.msk [vmem:[#allocation3 + $0xd0] sm:$0xff] %vm1396_vm6, %v3463_v20 }
 0x562   : > { %v4558_v44 = vadd.f32 %v4526_v34, %v7585_v11  ;;  %v4525_v14 = vadd.f32 %v7179_v39, %v4486_v59  ;;  %v3273_v10 = vpop.permute.xlu0 %3272 }
 0x563   : > { %3341 = vst.msk [vmem:[#allocation3 + $0xd8] sm:$0xff] %vm1203_vm5, %v3273_v10 }
 0x564   : > { %v4590_v43 = vmax.f32 %v4558_v44, 0.0  ;;  %v4557_v2 = vadd.f32 %v4525_v14, %v7586_v60  ;;  %v3465_v25 = vpop.permute.xlu1 %3464  ;;  %v4138_v49 = vld [vmem:[#allocation3 + $0xc0] sm:$0xff] }
 0x565   : > { %3533 = vst.msk [vmem:[#allocation3 + $0xd8] sm:$0xff] %vm1396_vm6, %v3465_v25  ;;  %4965 = vmatprep.mubr.msk.f32.mxu1 %vm2046_vm11, %v4138_v49 }
 0x566   : > { %4622 = vst.msk [vmem:[%s7193_s29 + $0x28] sm:$0xff] %vm311_vm0, %v4590_v43  ;;  %v4589_v46 = vmax.f32 %v4557_v2, 0.0  ;;  %v4037_v54 = vpop.permute.xlu0 %4036 }
 0x567   : > { %4107 = vst.msk [vmem:[#allocation3 + $0xc8] sm:$0xff] %vm1976_vm10, %v4037_v54 }
 0x568   : > { %4621 = vst.msk [vmem:[%s7193_s29 + $0x20] sm:$0xff] %vm311_vm0, %v4589_v46  ;;  %v3083_v19 = vpop.permute.xlu1 %3082  ;;  %v7591_v46 = vld [vmem:[#allocation15_spill] sm:$0xff] }
 0x569   : > { %3150 = vst.msk [vmem:[#allocation3 + $0xe0] sm:$0xff] %vm1010_vm4, %v3083_v19 }
 0x56a   : > { %v3655_v24 = vpop.permute.xlu0 %3654 }
 0x56b   : > { %3724 = vst.msk [vmem:[#allocation3 + $0xd0] sm:$0xff] %vm1590_vm8, %v3655_v24 }
 0x56c   : > { %v3847_v63 = vpop.permute.xlu1 %3846 }
 0x56d   : > { %3916 = vst.msk [vmem:[#allocation3 + $0xd0] sm:$0xff] %vm1783_vm9, %v3847_v63 }
 0x56e   : > { %v3657_v12 = vpop.permute.xlu0 %3656  ;;  %v4139_v8 = vld [vmem:[#allocation3 + $0xc8] sm:$0xff] }
 0x56f   : > { %3725 = vst.msk [vmem:[#allocation3 + $0xd8] sm:$0xff] %vm1590_vm8, %v3657_v12  ;;  %4966 = vmatmul.mubr.msk.f32.gmra.mxu1 %vm2046_vm11, %v4139_v8  ;;  %v7592_v8 = vld [vmem:[#allocation14_spill] sm:$0xff] }
 0x570   : > { %v3275_v50 = vpop.permute.xlu1 %3274 }
 0x571   : > { %3342 = vst.msk [vmem:[#allocation3 + $0xe0] sm:$0xff] %vm1203_vm5, %v3275_v50  ;;  %v4940_v52 = vpop.f32.mrf.mxu1 }
 0x572   : > { %v4489_v22 = vmul.f32 %v4940_v52, %v7173_v1  ;;  %v3085_v3 = vpop.permute.xlu0 %3084 }
 0x573   : > { %3151 = vst.msk [vmem:[#allocation3 + $0xe8] sm:$0xff] %vm1010_vm4, %v3085_v3  ;;  %v4346_v55 = vpop.f32.mrf.mxu1 }
 0x574   : > { %v4528_v29 = vadd.f32 %v7179_v39, %v4489_v22  ;;  %v4488_v53 = vmul.f32 %v7173_v1, %v4346_v55  ;;  %v4039_v40 = vpop.permute.xlu1 %4038 }
 0x575   : > { %4108 = vst.msk [vmem:[#allocation3 + $0xd0] sm:$0xff] %vm1976_vm10, %v4039_v40 }
 0x576   : > { %v4560_v16 = vadd.f32 %v4528_v29, %v7587_v56  ;;  %v4527_v35 = vadd.f32 %v7179_v39, %v4488_v53  ;;  %v3849_v4 = vpop.permute.xlu0 %3848 }
 0x577   : > { %3917 = vst.msk [vmem:[#allocation3 + $0xd8] sm:$0xff] %vm1783_vm9, %v3849_v4  ;;  %v7593_v4 = vld [vmem:[#allocation17_spill] sm:$0xff] }
 0x578   : > { %v4592_v51 = vmax.f32 %v4560_v16, 0.0  ;;  %v4559_v6 = vadd.f32 %v4527_v35, %v7588_v15  ;;  %v3467_v28 = vpop.permute.xlu1 %3466 }
 0x579   : > { %3534 = vst.msk [vmem:[#allocation3 + $0xe0] sm:$0xff] %vm1396_vm6, %v3467_v28  ;;  %v7594_v28 = vld [vmem:[#allocation16_spill] sm:$0xff] }
 0x57a   : > { %4624 = vst.msk [vmem:[%s7193_s29 + $0x38] sm:$0xff] %vm311_vm0, %v4592_v51  ;;  %v4591_v30 = vmax.f32 %v4559_v6, 0.0  ;;  %v3277_v57 = vpop.permute.xlu0 %3276 }
 0x57b   : > { %3343 = vst.msk [vmem:[#allocation3 + $0xe8] sm:$0xff] %vm1203_vm5, %v3277_v57 }
 0x57c   : > { %4623 = vst.msk [vmem:[%s7193_s29 + $0x30] sm:$0xff] %vm311_vm0, %v4591_v30  ;;  %v3469_v13 = vpop.permute.xlu1 %3468  ;;  %v4140_v37 = vld [vmem:[#allocation3 + $0xd0] sm:$0xff] }
 0x57d   : > { %3535 = vst.msk [vmem:[#allocation3 + $0xe8] sm:$0xff] %vm1396_vm6, %v3469_v13  ;;  %4968 = vmatprep.mubr.msk.f32.mxu1 %vm2046_vm11, %v4140_v37 }
 0x57e   : > { %v4041_v41 = vpop.permute.xlu0 %4040 }
 0x57f   : > { %4109 = vst.msk [vmem:[#allocation3 + $0xd8] sm:$0xff] %vm1976_vm10, %v4041_v41 }
 0x580   : > { %v3087_v58 = vpop.permute.xlu1 %3086 }
 0x581   : > { %3152 = vst.msk [vmem:[#allocation3 + $0xf0] sm:$0xff] %vm1010_vm4, %v3087_v58 }
 0x582   : > { %v3659_v48 = vpop.permute.xlu0 %3658 }
 0x583   : > { %3726 = vst.msk [vmem:[#allocation3 + $0xe0] sm:$0xff] %vm1590_vm8, %v3659_v48 }
 0x584   : > { %v3851_v9 = vpop.permute.xlu1 %3850 }
 0x585   : > { %3918 = vst.msk [vmem:[#allocation3 + $0xe0] sm:$0xff] %vm1783_vm9, %v3851_v9  ;;  %v4943_v26 = vpop.f32.mrf.mxu1  ;;  %v7595_v9 = vld [vmem:[#allocation19_spill] sm:$0xff] }
 0x586   : > { %v4491_v36 = vmul.f32 %v4943_v26, %v7173_v1  ;;  %v3661_v7 = vpop.permute.xlu0 %3660  ;;  %v4141_v32 = vld [vmem:[#allocation3 + $0xd8] sm:$0xff] }
 0x587   : > { %3727 = vst.msk [vmem:[#allocation3 + $0xe8] sm:$0xff] %vm1590_vm8, %v3661_v7  ;;  %v4356_v61 = vpop.f32.mrf.mxu1  ;;  %4969 = vmatmul.mubr.msk.f32.gmra.mxu1 %vm2046_vm11, %v4141_v32  ;;  %v7596_v32 = vld [vmem:[#allocation18_spill] sm:$0xff] }
 0x588   : > { %v4530_v5 = vadd.f32 %v7179_v39, %v4491_v36  ;;  %v4490_v45 = vmul.f32 %v7173_v1, %v4356_v61  ;;  %v3279_v31 = vpop.permute.xlu1 %3278 }
 0x589   : > { %3344 = vst.msk [vmem:[#allocation3 + $0xf0] sm:$0xff] %vm1203_vm5, %v3279_v31 }
 0x58a   : > { %v4562_v17 = vadd.f32 %v4530_v5, %v7589_v42  ;;  %v4529_v23 = vadd.f32 %v7179_v39, %v4490_v45  ;;  %v3089_v18 = vpop.permute.xlu0 %3088 }
 0x58b   : > { %3153 = vst.msk [vmem:[#allocation3 + $0xf8] sm:$0xff] %vm1010_vm4, %v3089_v18  ;;  %v7597_v18 = vld [vmem:[#allocation21_spill] sm:$0xff] }
 0x58c   : > { %v4594_v38 = vmax.f32 %v4562_v17, 0.0  ;;  %v4561_v21 = vadd.f32 %v4529_v23, %v7590_v33  ;;  %v4043_v0 = vpop.permute.xlu1 %4042 }
 0x58d   : > { %4110 = vst.msk [vmem:[#allocation3 + $0xe0] sm:$0xff] %vm1976_vm10, %v4043_v0  ;;  %v7598_v0 = vld [vmem:[#allocation20_spill] sm:$0xff] }
 0x58e   : > { %4626 = vst.msk [vmem:[%s7193_s29 + $0x48] sm:$0xff] %vm311_vm0, %v4594_v38  ;;  %v4593_v62 = vmax.f32 %v4561_v21, 0.0  ;;  %v3853_v47 = vpop.permute.xlu0 %3852 }
 0x58f   : > { %3919 = vst.msk [vmem:[#allocation3 + $0xe8] sm:$0xff] %vm1783_vm9, %v3853_v47 }
 0x590   : > { %4625 = vst.msk [vmem:[%s7193_s29 + $0x40] sm:$0xff] %vm311_vm0, %v4593_v62  ;;  %v3471_v27 = vpop.permute.xlu1 %3470 }
 0x591   : > { %3536 = vst.msk [vmem:[#allocation3 + $0xf0] sm:$0xff] %vm1396_vm6, %v3471_v27 }
 0x592   : > { %v3281_v34 = vpop.permute.xlu0 %3280 }
 0x593   : > { %3345 = vst.msk [vmem:[#allocation3 + $0xf8] sm:$0xff] %vm1203_vm5, %v3281_v34 }
 0x594   : > { %v3473_v59 = vpop.permute.xlu1 %3472  ;;  %v4142_v20 = vld [vmem:[#allocation3 + $0xe0] sm:$0xff] }
 0x595   : > { %3537 = vst.msk [vmem:[#allocation3 + $0xf8] sm:$0xff] %vm1396_vm6, %v3473_v59  ;;  %4971 = vmatprep.mubr.msk.f32.mxu1 %vm2046_vm11, %v4142_v20 }
 0x596   : > { %v4045_v11 = vpop.permute.xlu0 %4044 }
 0x597   : > { %4111 = vst.msk [vmem:[#allocation3 + $0xe8] sm:$0xff] %vm1976_vm10, %v4045_v11 }
 0x598   : > { %v3665_v44 = vpop.permute.xlu1 %3664 }
 0x599   : > { %v4946_v14 = vpop.f32.mrf.mxu1  ;;  %3729 = vst.msk [vmem:[#allocation3 + $0xf8] sm:$0xff] %vm1590_vm8, %v3665_v44  ;;  %v7599_v44 = vld [vmem:[#allocation23_spill] sm:$0xff] }
 0x59a   : > { %v4493_v10 = vmul.f32 %v4946_v14, %v7173_v1  ;;  %v3663_v43 = vpop.permute.xlu0 %3662 }
 0x59b   : > { %3728 = vst.msk [vmem:[#allocation3 + $0xf0] sm:$0xff] %vm1590_vm8, %v3663_v43  ;;  %v4366_v60 = vpop.f32.mrf.mxu1 }
 0x59c   : > { %v4532_v2 = vadd.f32 %v7179_v39, %v4493_v10  ;;  %v4492_v25 = vmul.f32 %v7173_v1, %v4366_v60  ;;  %v3857_v49 = vpop.permute.xlu1 %3856  ;;  %v7600_v60 = vld [vmem:[#allocation22_spill] sm:$0xff] }
 0x59d   : > { %3921 = vst.msk [vmem:[#allocation3 + $0xf8] sm:$0xff] %vm1783_vm9, %v3857_v49 }
 0x59e   : > { %v4564_v54 = vadd.f32 %v4532_v2, %v7591_v46  ;;  %v4531_v19 = vadd.f32 %v7179_v39, %v4492_v25  ;;  %v3855_v24 = vpop.permute.xlu0 %3854  ;;  %v4143_v63 = vld [vmem:[#allocation3 + $0xe8] sm:$0xff] }
 0x59f   : > { %3920 = vst.msk [vmem:[#allocation3 + $0xf0] sm:$0xff] %vm1783_vm9, %v3855_v24  ;;  %4972 = vmatmul.mubr.msk.f32.gmra.mxu1 %vm2046_vm11, %v4143_v63  ;;  %v7601_v63 = vld [vmem:[#allocation25_spill] sm:$0xff] }
 0x5a0   : > { %v4596_v12 = vmax.f32 %v4564_v54, 0.0  ;;  %v4563_v50 = vadd.f32 %v4531_v19, %v7592_v8  ;;  %v4049_v52 = vpop.permute.xlu1 %4048 }
 0x5a1   : > { %4113 = vst.msk [vmem:[#allocation3 + $0xf8] sm:$0xff] %vm1976_vm10, %v4049_v52  ;;  %v7602_v52 = vld [vmem:[#allocation24_spill] sm:$0xff] }
 0x5a2   : > { %4628 = vst.msk [vmem:[%s7193_s29 + $0x58] sm:$0xff] %vm311_vm0, %v4596_v12  ;;  %v4595_v22 = vmax.f32 %v4563_v50, 0.0  ;;  %v4047_v3 = vpop.permute.xlu0 %4046 }
 0x5a3   : > { %4112 = vst.msk [vmem:[#allocation3 + $0xf0] sm:$0xff] %vm1976_vm10, %v4047_v3 }
 0x5a4   : > { %4627 = vst.msk [vmem:[%s7193_s29 + $0x50] sm:$0xff] %vm311_vm0, %v4595_v22 }
 0x5a8   : > { %v4145_v55 = vld [vmem:[#allocation3 + $0xf8] sm:$0xff] }
 0x5aa   : > { %v4144_v29 = vld [vmem:[#allocation3 + $0xf0] sm:$0xff] }
 0x5ab   : > { %4974 = vmatprep.mubr.msk.f32.mxu1 %vm2046_vm11, %v4144_v29 }
 0x5ac   : > { %4975 = vmatmul.mubr.msk.f32.gmra.mxu1 %vm2046_vm11, %v4145_v55 }
 0x5ad   : > { %v4949_v53 = vpop.f32.mrf.mxu1 }
 0x5ae   : > { %v4495_v40 = vmul.f32 %v4949_v53, %v7173_v1 }
 0x5af   : > { %v4376_v56 = vpop.f32.mrf.mxu1 }
 0x5b0   : > { %v4534_v16 = vadd.f32 %v7179_v39, %v4495_v40  ;;  %v4494_v35 = vmul.f32 %v7173_v1, %v4376_v56 }
 0x5b2   : > { %v4566_v51 = vadd.f32 %v4534_v16, %v7593_v4  ;;  %v4533_v15 = vadd.f32 %v7179_v39, %v4494_v35  ;;  %v7603_v16 = vld [vmem:[#allocation27_spill] sm:$0xff] }
 0x5b4   : > { %v4598_v6 = vmax.f32 %v4566_v51, 0.0  ;;  %v4565_v30 = vadd.f32 %v4533_v15, %v7594_v28  ;;  %v7604_v15 = vld [vmem:[#allocation26_spill] sm:$0xff] }
 0x5b6   : > { %4630 = vst.msk [vmem:[%s7193_s29 + $0x68] sm:$0xff] %vm311_vm0, %v4598_v6  ;;  %v4597_v57 = vmax.f32 %v4565_v30, 0.0 }
 0x5b8   : > { %4629 = vst.msk [vmem:[%s7193_s29 + $0x60] sm:$0xff] %vm311_vm0, %v4597_v57 }
 0x5c1   : > { %v4952_v13 = vpop.f32.mrf.mxu1 }
 0x5c2   : > { %v4497_v37 = vmul.f32 %v4952_v13, %v7173_v1 }
 0x5c3   : > { %v4386_v41 = vpop.f32.mrf.mxu1 }
 0x5c4   : > { %v4536_v58 = vadd.f32 %v7179_v39, %v4497_v37  ;;  %v4496_v48 = vmul.f32 %v7173_v1, %v4386_v41 }
 0x5c6   : > { %v4568_v26 = vadd.f32 %v4536_v58, %v7595_v9  ;;  %v4535_v36 = vadd.f32 %v7179_v39, %v4496_v48  ;;  %v7605_v58 = vld [vmem:[#allocation29_spill] sm:$0xff] }
 0x5c8   : > { %v4600_v7 = vmax.f32 %v4568_v26, 0.0  ;;  %v4567_v61 = vadd.f32 %v4535_v36, %v7596_v32  ;;  %v7606_v36 = vld [vmem:[#allocation28_spill] sm:$0xff] }
 0x5ca   : > { %4632 = vst.msk [vmem:[%s7193_s29 + $0x78] sm:$0xff] %vm311_vm0, %v4600_v7  ;;  %v4599_v5 = vmax.f32 %v4567_v61, 0.0 }
 0x5cc   : > { %4631 = vst.msk [vmem:[%s7193_s29 + $0x70] sm:$0xff] %vm311_vm0, %v4599_v5 }
 0x5d5   : > { %v4955_v45 = vpop.f32.mrf.mxu1 }
 0x5d6   : > { %v4499_v31 = vmul.f32 %v4955_v45, %v7173_v1 }
 0x5d7   : > { %v4396_v42 = vpop.f32.mrf.mxu1 }
 0x5d8   : > { %v4538_v17 = vadd.f32 %v7179_v39, %v4499_v31  ;;  %v4498_v23 = vmul.f32 %v7173_v1, %v4396_v42 }
 0x5da   : > { %v4570_v38 = vadd.f32 %v4538_v17, %v7597_v18  ;;  %v4537_v33 = vadd.f32 %v7179_v39, %v4498_v23  ;;  %v7607_v17 = vld [vmem:[#allocation31_spill] sm:$0xff] }
 0x5dc   : > { %v4602_v21 = vmax.f32 %v4570_v38, 0.0  ;;  %v4569_v62 = vadd.f32 %v4537_v33, %v7598_v0  ;;  %v7608_v33 = vld [vmem:[#allocation30_spill] sm:$0xff] }
 0x5de   : > { %4634 = vst.msk [vmem:[%s7193_s29 + $0x88] sm:$0xff] %vm311_vm0, %v4602_v21  ;;  %v4601_v47 = vmax.f32 %v4569_v62, 0.0 }
 0x5e0   : > { %4633 = vst.msk [vmem:[%s7193_s29 + $0x80] sm:$0xff] %vm311_vm0, %v4601_v47 }
 0x5e9   : > { %v4958_v27 = vpop.f32.mrf.mxu1 }
 0x5ea   : > { %v4501_v34 = vmul.f32 %v4958_v27, %v7173_v1 }
 0x5eb   : > { %v4406_v59 = vpop.f32.mrf.mxu1 }
 0x5ec   : > { %v4540_v20 = vadd.f32 %v7179_v39, %v4501_v34  ;;  %v4500_v11 = vmul.f32 %v7173_v1, %v4406_v59 }
 0x5ee   : > { %v4572_v14 = vadd.f32 %v4540_v20, %v7599_v44  ;;  %v4539_v10 = vadd.f32 %v7179_v39, %v4500_v11  ;;  %v7609_v20 = vld [vmem:[#allocation33_spill] sm:$0xff] }
 0x5f0   : > { %v4604_v43 = vmax.f32 %v4572_v14, 0.0  ;;  %v4571_v2 = vadd.f32 %v4539_v10, %v7600_v60  ;;  %v7610_v10 = vld [vmem:[#allocation32_spill] sm:$0xff] }
 0x5f2   : > { %4636 = vst.msk [vmem:[%s7193_s29 + $0x98] sm:$0xff] %vm311_vm0, %v4604_v43  ;;  %v4603_v25 = vmax.f32 %v4571_v2, 0.0 }
 0x5f4   : > { %4635 = vst.msk [vmem:[%s7193_s29 + $0x90] sm:$0xff] %vm311_vm0, %v4603_v25 }
 0x5fd   : > { %v4961_v49 = vpop.f32.mrf.mxu1 }
 0x5fe   : > { %v4503_v46 = vmul.f32 %v4961_v49, %v7173_v1 }
 0x5ff   : > { %v4416_v54 = vpop.f32.mrf.mxu1 }
 0x600   : > { %v4542_v19 = vadd.f32 %v7179_v39, %v4503_v46  ;;  %v4502_v24 = vmul.f32 %v7173_v1, %v4416_v54 }
 0x602   : > { %v4574_v12 = vadd.f32 %v4542_v19, %v7601_v63  ;;  %v4541_v8 = vadd.f32 %v7179_v39, %v4502_v24  ;;  %v7611_v19 = vld [vmem:[#allocation37_spill] sm:$0xff] }
 0x604   : > { %v4606_v50 = vmax.f32 %v4574_v12, 0.0  ;;  %v4573_v22 = vadd.f32 %v4541_v8, %v7602_v52  ;;  %v7612_v8 = vld [vmem:[#allocation35_spill] sm:$0xff] }
 0x606   : > { %4638 = vst.msk [vmem:[%s7193_s29 + $0xa8] sm:$0xff] %vm311_vm0, %v4606_v50  ;;  %v4605_v3 = vmax.f32 %v4573_v22, 0.0 }
 0x608   : > { %4637 = vst.msk [vmem:[%s7193_s29 + $0xa0] sm:$0xff] %vm311_vm0, %v4605_v3 }
 0x617   : > { %v4964_v55 = vpop.f32.mrf.mxu1 }
 0x618   : > { %v4505_v29 = vmul.f32 %v4964_v55, %v7173_v1 }
 0x619   : > { %v4426_v53 = vpop.f32.mrf.mxu1 }
 0x61a   : > { %v4544_v40 = vadd.f32 %v7179_v39, %v4505_v29  ;;  %v4504_v56 = vmul.f32 %v7173_v1, %v4426_v53 }
 0x61c   : > { %v4576_v35 = vadd.f32 %v4544_v40, %v7603_v16  ;;  %v4543_v4 = vadd.f32 %v7179_v39, %v4504_v56 }
 0x61e   : > { %v4608_v51 = vmax.f32 %v4576_v35, 0.0  ;;  %v4575_v6 = vadd.f32 %v4543_v4, %v7604_v15 }
 0x620   : > { %4640 = vst.msk [vmem:[%s7193_s29 + $0xb8] sm:$0xff] %vm311_vm0, %v4608_v51  ;;  %v4607_v28 = vmax.f32 %v4575_v6, 0.0 }
 0x622   : > { %4639 = vst.msk [vmem:[%s7193_s29 + $0xb0] sm:$0xff] %vm311_vm0, %v4607_v28 }
 0x62f   : > { %v4967_v30 = vpop.f32.mrf.mxu1 }
 0x630   : > { %v4507_v57 = vmul.f32 %v4967_v30, %v7173_v1 }
 0x631   : > { %v4436_v13 = vpop.f32.mrf.mxu1 }
 0x632   : > { %v4546_v37 = vadd.f32 %v7179_v39, %v4507_v57  ;;  %v4506_v41 = vmul.f32 %v7173_v1, %v4436_v13 }
 0x634   : > { %v4578_v48 = vadd.f32 %v4546_v37, %v7605_v58  ;;  %v4545_v9 = vadd.f32 %v7179_v39, %v4506_v41 }
 0x636   : > { %v4610_v26 = vmax.f32 %v4578_v48, 0.0  ;;  %v4577_v7 = vadd.f32 %v4545_v9, %v7606_v36 }
 0x638   : > { %4642 = vst.msk [vmem:[%s7193_s29 + $0xc8] sm:$0xff] %vm311_vm0, %v4610_v26  ;;  %v4609_v32 = vmax.f32 %v4577_v7, 0.0 }
 0x63a   : > { %4641 = vst.msk [vmem:[%s7193_s29 + $0xc0] sm:$0xff] %vm311_vm0, %v4609_v32 }
 0x647   : > { %v4970_v61 = vpop.f32.mrf.mxu1 }
 0x648   : > { %v4509_v5 = vmul.f32 %v4970_v61, %v7173_v1 }
 0x649   : > { %v4446_v45 = vpop.f32.mrf.mxu1 }
 0x64a   : > { %v4548_v31 = vadd.f32 %v7179_v39, %v4509_v5  ;;  %v4508_v42 = vmul.f32 %v7173_v1, %v4446_v45 }
 0x64c   : > { %v4580_v23 = vadd.f32 %v4548_v31, %v7607_v17  ;;  %v4547_v18 = vadd.f32 %v7179_v39, %v4508_v42 }
 0x64e   : > { %v4612_v38 = vmax.f32 %v4580_v23, 0.0  ;;  %v4579_v21 = vadd.f32 %v4547_v18, %v7608_v33 }
 0x650   : > { %4644 = vst.msk [vmem:[%s7193_s29 + $0xd8] sm:$0xff] %vm311_vm0, %v4612_v38  ;;  %v4611_v0 = vmax.f32 %v4579_v21, 0.0 }
 0x652   : > { %4643 = vst.msk [vmem:[%s7193_s29 + $0xd0] sm:$0xff] %vm311_vm0, %v4611_v0 }
 0x65f   : > { %v4973_v62 = vpop.f32.mrf.mxu1 }
 0x660   : > { %v4511_v47 = vmul.f32 %v4973_v62, %v7173_v1 }
 0x661   : > { %v4456_v27 = vpop.f32.mrf.mxu1 }
 0x662   : > { %v4550_v34 = vadd.f32 %v7179_v39, %v4511_v47  ;;  %v4510_v59 = vmul.f32 %v7173_v1, %v4456_v27 }
 0x664   : > { %v4582_v11 = vadd.f32 %v4550_v34, %v7609_v20  ;;  %v4549_v44 = vadd.f32 %v7179_v39, %v4510_v59 }
 0x666   : > { %v4614_v14 = vmax.f32 %v4582_v11, 0.0  ;;  %v4581_v43 = vadd.f32 %v4549_v44, %v7610_v10 }
 0x668   : > { %4646 = vst.msk [vmem:[%s7193_s29 + $0xe8] sm:$0xff] %vm311_vm0, %v4614_v14  ;;  %v4613_v60 = vmax.f32 %v4581_v43, 0.0 }
 0x66a   : > { %4645 = vst.msk [vmem:[%s7193_s29 + $0xe0] sm:$0xff] %vm311_vm0, %v4613_v60 }
 0x66c   : > { %v4976_v2 = vpop.f32.mrf.mxu1 }
 0x66d   : > { %v4513_v25 = vmul.f32 %v4976_v2, %v7173_v1 }
 0x66e   : > { %v4466_v49 = vpop.f32.mrf.mxu1 }
 0x66f   : > { %v4552_v46 = vadd.f32 %v7179_v39, %v4513_v25  ;;  %v4512_v54 = vmul.f32 %v7173_v1, %v4466_v49 }
 0x671   : > { %v4584_v24 = vadd.f32 %v4552_v46, %v7611_v19  ;;  %v4551_v63 = vadd.f32 %v7179_v39, %v4512_v54 }
 0x673   : > { %v4616_v12 = vmax.f32 %v4584_v24, 0.0  ;;  %v4583_v50 = vadd.f32 %v4551_v63, %v7612_v8 }
 0x675   : > { %4648 = vst.msk [vmem:[%s7193_s29 + $0xf8] sm:$0xff] %vm311_vm0, %v4616_v12  ;;  %v4615_v52 = vmax.f32 %v4583_v50, 0.0 }
 0x677   : > { %4647 = vst.msk [vmem:[%s7193_s29 + $0xf0] sm:$0xff] %vm311_vm0, %v4615_v52 }
 0x678 PF: > { %s17_s24 = sadd.s32 1, %s5000_s24  }
 0x679   : > { %p14_p4 = scmp.ge.s32.totalorder %s17_s24, 4  }
 0x67b   :  { %16 = sbr.rel (!%p14_p4) target bundleno = 1 (0x1), region = 80 }

</bundles_post_ra>
